<compile_context>
chip_gen: v7x
topology: tpu7x:2x2x1
jax: 0.10.0
libtpu: 0.0.40
codegen_flags: <defaults>
</compile_context>

<pallas_src>
import jax
import jax.numpy as jnp
from jax.experimental import pallas as pl
from jax.experimental.pallas import tpu as pltpu

_LN_EPS = 1e-5


# ----------------------------------------------------------------------------
# Kernel
# ----------------------------------------------------------------------------
def gate_kernel(x_ref, y_ref, w1_ref, w2_ref, w3_ref, p12_ref, p3_ref,
                ph_ref, pd_ref, out_ref):
    x = x_ref[...].astype(jnp.float32)                 # (TB, D)
    y = y_ref[...].astype(jnp.float32)                 # (TB, D)
    xy = jnp.concatenate([x, y], axis=-1)              # (TB, 2D) fused input

    p12 = p12_ref[...]                                  # (6, 2H) b1,g1,be1,b2,g2,be2
    p3 = p3_ref[...]                                    # (3, 2D) b3,g3,be3
    ph = ph_ref[...]                                    # (2H, 2H) per-half mean matrix
    pd = pd_ref[...]                                    # (2D, 2D) per-half mean matrix
    hp = jax.lax.Precision.HIGHEST

    def dot_w(v, w_ref):
        # Weight matmul on the MXU; operands may be bf16, accumulation is f32.
        return jnp.dot(v.astype(w_ref.dtype), w_ref[...],
                       preferred_element_type=jnp.float32)

    def ln_relu(h, gamma, beta, p):
        # Per-half LayerNorm via block-diagonal averaging matmuls (no lane slices).
        mu = jnp.dot(h, p, precision=hp, preferred_element_type=jnp.float32)
        d = h - mu
        var = jnp.dot(d * d, p, precision=hp, preferred_element_type=jnp.float32)
        inv = jax.lax.rsqrt(var + _LN_EPS)              # EUP rsqrt
        return jnp.maximum(d * inv * gamma + beta, 0.0)

    h = dot_w(xy, w1_ref) + p12[0:1, :]
    h = ln_relu(h, p12[1:2, :], p12[2:3, :], ph)
    h = dot_w(h, w2_ref) + p12[3:4, :]
    h = ln_relu(h, p12[4:5, :], p12[5:6, :], ph)
    h = dot_w(h, w3_ref) + p3[0:1, :]
    h = ln_relu(h, p3[1:2, :], p3[2:3, :], pd)          # (TB, 2D) = [z1 | z2]

    D = out_ref.shape[-1]
    z = jax.nn.sigmoid(h[:, :D] + h[:, D:])
    out_ref[...] = (y + (x - y) * z).astype(out_ref.dtype)


# ----------------------------------------------------------------------------
# Wrapper / layout plumbing
# ----------------------------------------------------------------------------
def _block_diag(a, b):
    m1, n1 = a.shape
    m2, n2 = b.shape
    out = jnp.zeros((m1 + m2, n1 + n2), dtype=a.dtype)
    out = out.at[:m1, :n1].set(a)
    out = out.at[m1:, n1:].set(b)
    return out


def _half_mean_mat(n):
    """(n, n) block-diagonal matrix: 1/(n/2) where row/col are in the same half."""
    half = n // 2
    idx = jnp.arange(n)
    same = (idx[:, None] // half) == (idx[None, :] // half)
    return jnp.where(same, 1.0 / half, 0.0).astype(jnp.float32)


def _pick_tb(B):
    if B <= 512:
        return B
    for tb in (512, 256, 128):
        if B % tb == 0:
            return tb
    return B  # single big step as a fallback


def gate_forward(x, y, params1, params2, *, tb=None, mxu_dtype=jnp.float32):
    """x, y: (B, D) float32.  params*: PyTorch-layout MLP params
    (w1,b1,g1,be1, w2,b2,g2,be2, w3,b3,g3,be3) with weights (out, in)."""
    B, D = x.shape
    H = 3 * D
    if tb is None:
        tb = _pick_tb(B)
    assert B % tb == 0, "batch must be divisible by the batch tile"

    def fuse(p1, p2):
        (w1a, b1a, g1a, be1a, w2a, b2a, g2a, be2a, w3a, b3a, g3a, be3a) = p1
        (w1b, b1b, g1b, be1b, w2b, b2b, g2b, be2b, w3b, b3b, g3b, be3b) = p2
        w1 = _block_diag(w1a.T, w1b.T).astype(mxu_dtype)   # (2D, 2H)
        w2 = _block_diag(w2a.T, w2b.T).astype(mxu_dtype)   # (2H, 2H)
        w3 = _block_diag(w3a.T, w3b.T).astype(mxu_dtype)   # (2H, 2D)
        cat = lambda a, b: jnp.concatenate([a, b], axis=0)
        p12 = jnp.stack([cat(b1a, b1b), cat(g1a, g1b), cat(be1a, be1b),
                         cat(b2a, b2b), cat(g2a, g2b), cat(be2a, be2b)],
                        axis=0).astype(jnp.float32)          # (6, 2H)
        p3 = jnp.stack([cat(b3a, b3b), cat(g3a, g3b), cat(be3a, be3b)],
                       axis=0).astype(jnp.float32)           # (3, 2D)
        return w1, w2, w3, p12, p3

    w1, w2, w3, p12, p3 = fuse(params1, params2)
    ph = _half_mean_mat(2 * H)
    pd = _half_mean_mat(2 * D)
    resident = (w1, w2, w3, p12, p3, ph, pd)

    xy_spec = pl.BlockSpec((tb, D), lambda i: (i, 0))
    # Resident (per-call constant) operands: full-array blocks, constant index_map
    # -> DMA'd once, no re-fetch per batch step.  (For very large D on v7x one
    # would single-buffer these / stream the HxH block; not needed here.)
    res_specs = [pl.BlockSpec(a.shape, lambda i: (0, 0)) for a in resident]
    out_spec = pl.BlockSpec((tb, D), lambda i: (i, 0))

    # Advisory cost estimate.
    mm_flops = 2 * B * ((2 * D) * (2 * H) + (2 * H) * (2 * H) + (2 * H) * (2 * D))
    ln_flops = 2 * B * 2 * (2 * (2 * H) * (2 * H) + (2 * D) * (2 * D))
    transc = B * (2 * H + 2 * H + 2 * D) + B * D          # LN rsqrts + sigmoid
    resident_bytes = sum(int(a.size) * a.dtype.itemsize for a in resident)
    bytes_io = 4 * (x.size + y.size + B * D) + resident_bytes
    cost = pl.CostEstimate(flops=int(mm_flops + ln_flops),
                           transcendentals=int(transc),
                           bytes_accessed=int(bytes_io))

    # VMEM budget: resident weights (double-buffered by default) + streamed
    # x/y/out tiles + intermediates, with headroom; capped well under physical.
    tile_bytes = 4 * tb * (3 * D)
    inter_bytes = 8 * tb * (2 * H) * 4
    vmem_limit = int(min(100 << 20,
                         max(32 << 20,
                             2 * resident_bytes + 4 * tile_bytes + inter_bytes + (4 << 20))))

    return pl.pallas_call(
        gate_kernel,
        out_shape=jax.ShapeDtypeStruct((B, D), jnp.float32),
        grid=(B // tb,),
        in_specs=[xy_spec, xy_spec] + res_specs,
        out_specs=out_spec,
        compiler_params=pltpu.CompilerParams(
            dimension_semantics=("parallel",),
            vmem_limit_bytes=vmem_limit),
        cost_estimate=cost,
    )(x, y, *resident)


# ----------------------------------------------------------------------------
# Pure-JAX reference (unfused, HIGHEST precision)
# ----------------------------------------------------------------------------
def gate_reference(x, y, params1, params2):
    hp = jax.lax.Precision.HIGHEST

    def ln(h, g, b):
        mu = jnp.mean(h, axis=-1, keepdims=True)
        var = jnp.mean((h - mu) ** 2, axis=-1, keepdims=True)
        return (h - mu) / jnp.sqrt(var + _LN_EPS) * g + b

    def mlp(v, p):
        (w1, b1, g1, be1, w2, b2, g2, be2, w3, b3, g3, be3) = p
        h = jnp.maximum(ln(jnp.dot(v, w1.T, precision=hp) + b1, g1, be1), 0.0)
        h = jnp.maximum(ln(jnp.dot(h, w2.T, precision=hp) + b2, g2, be2), 0.0)
        h = jnp.maximum(ln(jnp.dot(h, w3.T, precision=hp) + b3, g3, be3), 0.0)
        return h

    z = jax.nn.sigmoid(mlp(x, params1) + mlp(y, params2))
    return x * z + y * (1.0 - z)


if __name__ == "__main__":
    B, D = 16, 32
    H = 3 * D
    key = jax.random.PRNGKey(0)
    keys = jax.random.split(key, 26)

    x = jax.random.normal(keys[0], (B, D), dtype=jnp.float32)
    y = jax.random.normal(keys[1], (B, D), dtype=jnp.float32)

    def linear_init(kw, kb, out_dim, in_dim):
        bound = 1.0 / (in_dim ** 0.5)
        w = jax.random.uniform(kw, (out_dim, in_dim), jnp.float32, -bound, bound)
        b = jax.random.uniform(kb, (out_dim,), jnp.float32, -bound, bound)
        return w, b

    def mlp_params(ks):
        w1, b1 = linear_init(ks[0], ks[1], H, D)
        w2, b2 = linear_init(ks[2], ks[3], H, H)
        w3, b3 = linear_init(ks[4], ks[5], D, H)
        g1 = 1.0 + 0.1 * jax.random.normal(ks[6], (H,), jnp.float32)
        be1 = 0.1 * jax.random.normal(ks[7], (H,), jnp.float32)
        g2 = 1.0 + 0.1 * jax.random.normal(ks[8], (H,), jnp.float32)
        be2 = 0.1 * jax.random.normal(ks[9], (H,), jnp.float32)
        g3 = 1.0 + 0.1 * jax.random.normal(ks[10], (D,), jnp.float32)
        be3 = 0.1 * jax.random.normal(ks[11], (D,), jnp.float32)
        return (w1, b1, g1, be1, w2, b2, g2, be2, w3, b3, g3, be3)

    params1 = mlp_params(keys[2:14])
    params2 = mlp_params(keys[14:26])

    out = gate_forward(x, y, params1, params2)     # tb = B -> single grid step
    out = jax.block_until_ready(out)

    ref = gate_reference(x, y, params1, params2)
    assert out.shape == (B, D)
    assert jnp.allclose(out, ref, atol=1e-4, rtol=1e-4), "mismatch vs reference"

    print("KERNEL_OK")
</pallas_src>

<mosaic_0001>
module attributes {stable_mosaic.version = 11 : i64} {
  func.func @gate_kernel(%arg0: i32, %arg1: memref<16x32xf32, #tpu.memory_space<vmem>>, %arg2: memref<16x32xf32, #tpu.memory_space<vmem>>, %arg3: memref<64x192xf32, #tpu.memory_space<vmem>>, %arg4: memref<192x192xf32, #tpu.memory_space<vmem>>, %arg5: memref<192x64xf32, #tpu.memory_space<vmem>>, %arg6: memref<6x192xf32, #tpu.memory_space<vmem>>, %arg7: memref<3x64xf32, #tpu.memory_space<vmem>>, %arg8: memref<192x192xf32, #tpu.memory_space<vmem>>, %arg9: memref<64x64xf32, #tpu.memory_space<vmem>>, %arg10: memref<16x32xf32, #tpu.memory_space<vmem>>) attributes {dimension_semantics = [#tpu.dimension_semantics<parallel>], iteration_bounds = array<i64: 1>, scalar_prefetch = 0 : i64, scratch_operands = 0 : i64, tpu.core_type = #tpu.core_type<tc>, window_params = [{transform_indices = @transform_0, window_bounds = array<i64: 16, 32>}, {transform_indices = @transform_1, window_bounds = array<i64: 16, 32>}, {pipeline_mode = #tpu.pipeline_mode<synchronous>, transform_indices = @transform_2, window_bounds = array<i64: 64, 192>}, {pipeline_mode = #tpu.pipeline_mode<synchronous>, transform_indices = @transform_3, window_bounds = array<i64: 192, 192>}, {pipeline_mode = #tpu.pipeline_mode<synchronous>, transform_indices = @transform_4, window_bounds = array<i64: 192, 64>}, {pipeline_mode = #tpu.pipeline_mode<synchronous>, transform_indices = @transform_5, window_bounds = array<i64: 6, 192>}, {pipeline_mode = #tpu.pipeline_mode<synchronous>, transform_indices = @transform_6, window_bounds = array<i64: 3, 64>}, {pipeline_mode = #tpu.pipeline_mode<synchronous>, transform_indices = @transform_7, window_bounds = array<i64: 192, 192>}, {pipeline_mode = #tpu.pipeline_mode<synchronous>, transform_indices = @transform_8, window_bounds = array<i64: 64, 64>}, {transform_indices = @transform_9, window_bounds = array<i64: 16, 32>}]} {
    %c0 = arith.constant 0 : index
    %c0_0 = arith.constant 0 : index
    %0 = vector.load %arg1[%c0, %c0_0] : memref<16x32xf32, #tpu.memory_space<vmem>>, vector<16x32xf32>
    %c0_1 = arith.constant 0 : index
    %c0_2 = arith.constant 0 : index
    %1 = vector.load %arg2[%c0_1, %c0_2] : memref<16x32xf32, #tpu.memory_space<vmem>>, vector<16x32xf32>
    %2 = tpu.concatenate %0, %1 in 1 : vector<16x32xf32>, vector<16x32xf32> -> vector<16x64xf32>
    %c0_3 = arith.constant 0 : index
    %c0_4 = arith.constant 0 : index
    %3 = vector.load %arg6[%c0_3, %c0_4] : memref<6x192xf32, #tpu.memory_space<vmem>>, vector<6x192xf32>
    %c0_5 = arith.constant 0 : index
    %c0_6 = arith.constant 0 : index
    %4 = vector.load %arg7[%c0_5, %c0_6] : memref<3x64xf32, #tpu.memory_space<vmem>>, vector<3x64xf32>
    %c0_7 = arith.constant 0 : index
    %c0_8 = arith.constant 0 : index
    %5 = vector.load %arg8[%c0_7, %c0_8] : memref<192x192xf32, #tpu.memory_space<vmem>>, vector<192x192xf32>
    %c0_9 = arith.constant 0 : index
    %c0_10 = arith.constant 0 : index
    %6 = vector.load %arg9[%c0_9, %c0_10] : memref<64x64xf32, #tpu.memory_space<vmem>>, vector<64x64xf32>
    %c0_11 = arith.constant 0 : index
    %c0_12 = arith.constant 0 : index
    %7 = vector.load %arg3[%c0_11, %c0_12] : memref<64x192xf32, #tpu.memory_space<vmem>>, vector<64x192xf32>
    %cst = arith.constant dense<0.000000e+00> : vector<16x192xf32>
    %8 = tpu.matmul %2, %7, %cst {dimension_numbers = #tpu.dot_dimension_numbers<[1], [0], [0], [1], [0, 0, 1, 1], [], []>} : vector<16x64xf32>, vector<64x192xf32>, vector<16x192xf32> -> vector<16x192xf32>
    %9 = vector.extract_strided_slice %3 {offsets = [0, 0], sizes = [1, 192], strides = [1, 1]} : vector<6x192xf32> to vector<1x192xf32>
    %10 = vector.broadcast %9 : vector<1x192xf32> to vector<16x192xf32>
    %11 = arith.addf %8, %10 : vector<16x192xf32>
    %12 = vector.extract_strided_slice %3 {offsets = [1, 0], sizes = [1, 192], strides = [1, 1]} : vector<6x192xf32> to vector<1x192xf32>
    %13 = vector.extract_strided_slice %3 {offsets = [2, 0], sizes = [1, 192], strides = [1, 1]} : vector<6x192xf32> to vector<1x192xf32>
    %cst_13 = arith.constant dense<0.000000e+00> : vector<16x192xf32>
    %14 = tpu.matmul %11, %5, %cst_13 {dimension_numbers = #tpu.dot_dimension_numbers<[1], [0], [0], [1], [0, 0, 1, 1], [], []>, precision = #tpu.contract_precision<fp32>} : vector<16x192xf32>, vector<192x192xf32>, vector<16x192xf32> -> vector<16x192xf32>
    %15 = arith.subf %11, %14 : vector<16x192xf32>
    %16 = arith.mulf %15, %15 : vector<16x192xf32>
    %cst_14 = arith.constant dense<0.000000e+00> : vector<16x192xf32>
    %17 = tpu.matmul %16, %5, %cst_14 {dimension_numbers = #tpu.dot_dimension_numbers<[1], [0], [0], [1], [0, 0, 1, 1], [], []>, precision = #tpu.contract_precision<fp32>} : vector<16x192xf32>, vector<192x192xf32>, vector<16x192xf32> -> vector<16x192xf32>
    %cst_15 = arith.constant 9.99999974E-6 : f32
    %18 = vector.broadcast %cst_15 : f32 to vector<16x192xf32>
    %19 = arith.addf %17, %18 : vector<16x192xf32>
    %20 = math.rsqrt %19 : vector<16x192xf32>
    %21 = arith.mulf %15, %20 : vector<16x192xf32>
    %22 = vector.broadcast %12 : vector<1x192xf32> to vector<16x192xf32>
    %23 = arith.mulf %21, %22 : vector<16x192xf32>
    %24 = vector.broadcast %13 : vector<1x192xf32> to vector<16x192xf32>
    %25 = arith.addf %23, %24 : vector<16x192xf32>
    %cst_16 = arith.constant 0.000000e+00 : f32
    %26 = vector.broadcast %cst_16 : f32 to vector<16x192xf32>
    %27 = arith.maximumf %25, %26 : vector<16x192xf32>
    %c0_17 = arith.constant 0 : index
    %c0_18 = arith.constant 0 : index
    %28 = vector.load %arg4[%c0_17, %c0_18] : memref<192x192xf32, #tpu.memory_space<vmem>>, vector<192x192xf32>
    %cst_19 = arith.constant dense<0.000000e+00> : vector<16x192xf32>
    %29 = tpu.matmul %27, %28, %cst_19 {dimension_numbers = #tpu.dot_dimension_numbers<[1], [0], [0], [1], [0, 0, 1, 1], [], []>} : vector<16x192xf32>, vector<192x192xf32>, vector<16x192xf32> -> vector<16x192xf32>
    %30 = vector.extract_strided_slice %3 {offsets = [3, 0], sizes = [1, 192], strides = [1, 1]} : vector<6x192xf32> to vector<1x192xf32>
    %31 = vector.broadcast %30 : vector<1x192xf32> to vector<16x192xf32>
    %32 = arith.addf %29, %31 : vector<16x192xf32>
    %33 = vector.extract_strided_slice %3 {offsets = [4, 0], sizes = [1, 192], strides = [1, 1]} : vector<6x192xf32> to vector<1x192xf32>
    %34 = vector.extract_strided_slice %3 {offsets = [5, 0], sizes = [1, 192], strides = [1, 1]} : vector<6x192xf32> to vector<1x192xf32>
    %cst_20 = arith.constant dense<0.000000e+00> : vector<16x192xf32>
    %35 = tpu.matmul %32, %5, %cst_20 {dimension_numbers = #tpu.dot_dimension_numbers<[1], [0], [0], [1], [0, 0, 1, 1], [], []>, precision = #tpu.contract_precision<fp32>} : vector<16x192xf32>, vector<192x192xf32>, vector<16x192xf32> -> vector<16x192xf32>
    %36 = arith.subf %32, %35 : vector<16x192xf32>
    %37 = arith.mulf %36, %36 : vector<16x192xf32>
    %cst_21 = arith.constant dense<0.000000e+00> : vector<16x192xf32>
    %38 = tpu.matmul %37, %5, %cst_21 {dimension_numbers = #tpu.dot_dimension_numbers<[1], [0], [0], [1], [0, 0, 1, 1], [], []>, precision = #tpu.contract_precision<fp32>} : vector<16x192xf32>, vector<192x192xf32>, vector<16x192xf32> -> vector<16x192xf32>
    %cst_22 = arith.constant 9.99999974E-6 : f32
    %39 = vector.broadcast %cst_22 : f32 to vector<16x192xf32>
    %40 = arith.addf %38, %39 : vector<16x192xf32>
    %41 = math.rsqrt %40 : vector<16x192xf32>
    %42 = arith.mulf %36, %41 : vector<16x192xf32>
    %43 = vector.broadcast %33 : vector<1x192xf32> to vector<16x192xf32>
    %44 = arith.mulf %42, %43 : vector<16x192xf32>
    %45 = vector.broadcast %34 : vector<1x192xf32> to vector<16x192xf32>
    %46 = arith.addf %44, %45 : vector<16x192xf32>
    %cst_23 = arith.constant 0.000000e+00 : f32
    %47 = vector.broadcast %cst_23 : f32 to vector<16x192xf32>
    %48 = arith.maximumf %46, %47 : vector<16x192xf32>
    %c0_24 = arith.constant 0 : index
    %c0_25 = arith.constant 0 : index
    %49 = vector.load %arg5[%c0_24, %c0_25] : memref<192x64xf32, #tpu.memory_space<vmem>>, vector<192x64xf32>
    %cst_26 = arith.constant dense<0.000000e+00> : vector<16x64xf32>
    %50 = tpu.matmul %48, %49, %cst_26 {dimension_numbers = #tpu.dot_dimension_numbers<[1], [0], [0], [1], [0, 0, 1, 1], [], []>} : vector<16x192xf32>, vector<192x64xf32>, vector<16x64xf32> -> vector<16x64xf32>
    %51 = vector.extract_strided_slice %4 {offsets = [0, 0], sizes = [1, 64], strides = [1, 1]} : vector<3x64xf32> to vector<1x64xf32>
    %52 = vector.broadcast %51 : vector<1x64xf32> to vector<16x64xf32>
    %53 = arith.addf %50, %52 : vector<16x64xf32>
    %54 = vector.extract_strided_slice %4 {offsets = [1, 0], sizes = [1, 64], strides = [1, 1]} : vector<3x64xf32> to vector<1x64xf32>
    %55 = vector.extract_strided_slice %4 {offsets = [2, 0], sizes = [1, 64], strides = [1, 1]} : vector<3x64xf32> to vector<1x64xf32>
    %cst_27 = arith.constant dense<0.000000e+00> : vector<16x64xf32>
    %56 = tpu.matmul %53, %6, %cst_27 {dimension_numbers = #tpu.dot_dimension_numbers<[1], [0], [0], [1], [0, 0, 1, 1], [], []>, precision = #tpu.contract_precision<fp32>} : vector<16x64xf32>, vector<64x64xf32>, vector<16x64xf32> -> vector<16x64xf32>
    %57 = arith.subf %53, %56 : vector<16x64xf32>
    %58 = arith.mulf %57, %57 : vector<16x64xf32>
    %cst_28 = arith.constant dense<0.000000e+00> : vector<16x64xf32>
    %59 = tpu.matmul %58, %6, %cst_28 {dimension_numbers = #tpu.dot_dimension_numbers<[1], [0], [0], [1], [0, 0, 1, 1], [], []>, precision = #tpu.contract_precision<fp32>} : vector<16x64xf32>, vector<64x64xf32>, vector<16x64xf32> -> vector<16x64xf32>
    %cst_29 = arith.constant 9.99999974E-6 : f32
    %60 = vector.broadcast %cst_29 : f32 to vector<16x64xf32>
    %61 = arith.addf %59, %60 : vector<16x64xf32>
    %62 = math.rsqrt %61 : vector<16x64xf32>
    %63 = arith.mulf %57, %62 : vector<16x64xf32>
    %64 = vector.broadcast %54 : vector<1x64xf32> to vector<16x64xf32>
    %65 = arith.mulf %63, %64 : vector<16x64xf32>
    %66 = vector.broadcast %55 : vector<1x64xf32> to vector<16x64xf32>
    %67 = arith.addf %65, %66 : vector<16x64xf32>
    %cst_30 = arith.constant 0.000000e+00 : f32
    %68 = vector.broadcast %cst_30 : f32 to vector<16x64xf32>
    %69 = arith.maximumf %67, %68 : vector<16x64xf32>
    %70 = vector.extract_strided_slice %69 {offsets = [0, 0], sizes = [16, 32], strides = [1, 1]} : vector<16x64xf32> to vector<16x32xf32>
    %71 = vector.extract_strided_slice %69 {offsets = [0, 32], sizes = [16, 32], strides = [1, 1]} : vector<16x64xf32> to vector<16x32xf32>
    %72 = arith.addf %70, %71 : vector<16x32xf32>
    %73 = arith.negf %72 : vector<16x32xf32>
    %74 = math.exp %73 : vector<16x32xf32>
    %cst_31 = arith.constant 1.000000e+00 : f32
    %75 = vector.broadcast %cst_31 : f32 to vector<16x32xf32>
    %76 = arith.addf %75, %74 : vector<16x32xf32>
    %77 = arith.divf %75, %76 : vector<16x32xf32>
    %78 = arith.subf %0, %1 : vector<16x32xf32>
    %79 = arith.mulf %78, %77 : vector<16x32xf32>
    %80 = arith.addf %1, %79 : vector<16x32xf32>
    %c0_32 = arith.constant 0 : index
    %c0_33 = arith.constant 0 : index
    %81 = vector.load %arg10[%c0_32, %c0_33] : memref<16x32xf32, #tpu.memory_space<vmem>>, vector<16x32xf32>
    tpu.vector_store %arg10[%c0_32, %c0_33], %80 {strides = array<i32>} : memref<16x32xf32, #tpu.memory_space<vmem>>, vector<16x32xf32>,
    return
  }
  func.func @transform_0(%arg0: i32) -> (i32, i32) {
    %c0_i32 = arith.constant 0 : i32
    %c0_i32_0 = arith.constant 0 : i32
    return %arg0, %c0_i32 : i32, i32
  }
  func.func @transform_1(%arg0: i32) -> (i32, i32) {
    %c0_i32 = arith.constant 0 : i32
    %c0_i32_0 = arith.constant 0 : i32
    return %arg0, %c0_i32 : i32, i32
  }
  func.func @transform_2(%arg0: i32) -> (i32, i32) {
    %c0_i32 = arith.constant 0 : i32
    %c0_i32_0 = arith.constant 0 : i32
    %c0_i32_1 = arith.constant 0 : i32
    return %c0_i32, %c0_i32_0 : i32, i32
  }
  func.func @transform_3(%arg0: i32) -> (i32, i32) {
    %c0_i32 = arith.constant 0 : i32
    %c0_i32_0 = arith.constant 0 : i32
    %c0_i32_1 = arith.constant 0 : i32
    return %c0_i32, %c0_i32_0 : i32, i32
  }
  func.func @transform_4(%arg0: i32) -> (i32, i32) {
    %c0_i32 = arith.constant 0 : i32
    %c0_i32_0 = arith.constant 0 : i32
    %c0_i32_1 = arith.constant 0 : i32
    return %c0_i32, %c0_i32_0 : i32, i32
  }
  func.func @transform_5(%arg0: i32) -> (i32, i32) {
    %c0_i32 = arith.constant 0 : i32
    %c0_i32_0 = arith.constant 0 : i32
    %c0_i32_1 = arith.constant 0 : i32
    return %c0_i32, %c0_i32_0 : i32, i32
  }
  func.func @transform_6(%arg0: i32) -> (i32, i32) {
    %c0_i32 = arith.constant 0 : i32
    %c0_i32_0 = arith.constant 0 : i32
    %c0_i32_1 = arith.constant 0 : i32
    return %c0_i32, %c0_i32_0 : i32, i32
  }
  func.func @transform_7(%arg0: i32) -> (i32, i32) {
    %c0_i32 = arith.constant 0 : i32
    %c0_i32_0 = arith.constant 0 : i32
    %c0_i32_1 = arith.constant 0 : i32
    return %c0_i32, %c0_i32_0 : i32, i32
  }
  func.func @transform_8(%arg0: i32) -> (i32, i32) {
    %c0_i32 = arith.constant 0 : i32
    %c0_i32_0 = arith.constant 0 : i32
    %c0_i32_1 = arith.constant 0 : i32
    return %c0_i32, %c0_i32_0 : i32, i32
  }
  func.func @transform_9(%arg0: i32) -> (i32, i32) {
    %c0_i32 = arith.constant 0 : i32
    %c0_i32_0 = arith.constant 0 : i32
    return %arg0, %c0_i32 : i32, i32
  }
}

</mosaic_0001>

<bundles_post_ra>
// kernel: tpu_custom_call.1
= control target key start
LH: loop header
LB: loop body
LE: loop exit
PB: predicated region body
PF: predicated region fallthrough
CT: control target
= control target key end

     0   :  { %14 = vsyncpa [#allocation3], 0  ;;  %s10748_s0 = inlined_call_operand.vmem [shape: f32[16,32], index: 0, kind: input, shape index: {}]   ;;  %s10749_s1 = inlined_call_operand.vmem [shape: f32[16,32], index: 1, kind: input, shape index: {}]   ;;  %s10750_s2 = inlined_call_operand.vmem [shape: f32[64,192], index: 2, kind: input, shape index: {}]   ;;  %s10751_s3 = inlined_call_operand.hbm [shape: f32[192,192], index: 3, kind: input, shape index: {}]   ;;  %s10752_s4 = inlined_call_operand.vmem [shape: f32[192,64], index: 4, kind: input, shape index: {}]   ;;  %s10753_s5 = inlined_call_operand.vmem [shape: f32[6,192], index: 5, kind: input, shape index: {}]   ;;  %s10754_s6 = inlined_call_operand.vmem [shape: f32[3,64], index: 6, kind: input, shape index: {}]   ;;  %s10755_s7 = inlined_call_operand.hbm [shape: f32[192,192], index: 7, kind: input, shape index: {}]   ;;  %s10756_s8 = inlined_call_operand.vmem [shape: f32[64,64], index: 8, kind: input, shape index: {}]   ;;  %s10757_s9 = inlined_call_operand.hbm [shape: f32[16,32], index: 9, kind: output, shape index: {}]  }
   0x1   :  { %15 = vsyncpa [#allocation6], 0 }
   0x2   :  { %16 = vsyncpa [#allocation4], 0  ;;  %s8424_s30 = smov [#allocation2]   ;;  %s8352_s13 = scalar_lea.hbm %s10751_s3, 6144 }
   0x3   :  { %s28_s10 = sshll.u32 %s8424_s30, 4  ;;  %p8353_p0 = scmp.ne.s32.totalorder %s10751_s3, %s8352_s13  ;;  %s29_s10 = int_to_ptr.vmem [resolvable:$true] %s28_s10 }
   0x4   :  { %p8356_p1 = scmp.lt.u32.totalorder %s8352_s13, %s10751_s3 }
   0x6   :  { %p8358_p2 = pnand %p8356_p1, %p8353_p0 }
   0x8   :  { %8361 = shalt.err (!%p8358_p2)
}
   0x9   :  { %s8362_s18 = scalar_lea.vmem %s29_s10, 6144  ;;  %p8367_p4 = scmp.lt.s32.totalorder %s29_s10, %s29_s10 }
   0xa   :  { %p8363_p3 = scmp.ne.s32.totalorder %s29_s10, %s8362_s18  ;;  %p8368_p5 = scmp.lt.s32.totalorder %s8362_s18, %s8362_s18 }
   0xc   :  { %p8369_p6 = por %p8368_p5, %p8367_p4 }
   0xe   :  { %p8370_p7 = pnand %p8369_p6, %p8363_p3 }
  0x10   :  { %8373 = shalt.err (!%p8370_p7)
}
  0x11   :  { %s8425_s19 = smov 256   ;;  %s8426_s20 = smov 16  }
  0x12   :  { %34 = dma.hbm_to_vmem [thread:$0]  %s10751_s3, 6144, %s29_s10, [#allocation3], %s8425_s19, %s8425_s19, %s8426_s20  }
  0x13   :  { %s8427_s23 = smov [#allocation5]   ;;  %s8374_s27 = scalar_lea.hbm %s10755_s7, 6144 }
  0x14   :  { %s46_s24 = sshll.u32 %s8427_s23, 4  ;;  %p8375_p8 = scmp.ne.s32.totalorder %s10755_s7, %s8374_s27  ;;  %s47_s24 = int_to_ptr.vmem [resolvable:$true] %s46_s24 }
  0x15   :  { %p8378_p9 = scmp.lt.u32.totalorder %s8374_s27, %s10755_s7 }
  0x17   :  { %p8380_p10 = pnand %p8378_p9, %p8375_p8 }
  0x19   :  { %8383 = shalt.err (!%p8380_p10)
}
  0x1a   :  { %s8384_s12 = scalar_lea.vmem %s47_s24, 6144  ;;  %p8389_p12 = scmp.lt.s32.totalorder %s47_s24, %s47_s24 }
  0x1b   :  { %p8385_p11 = scmp.ne.s32.totalorder %s47_s24, %s8384_s12  ;;  %p8390_p13 = scmp.lt.s32.totalorder %s8384_s12, %s8384_s12 }
  0x1d   :  { %p8391_p0 = por %p8390_p13, %p8389_p12 }
  0x1f   :  { %p8392_p1 = pnand %p8391_p0, %p8385_p11 }
  0x21   :  { %8395 = shalt.err (!%p8392_p1)
}
  0x22   :  { %52 = dma.hbm_to_vmem [thread:$0]  %s10755_s7, 6144, %s47_s24, [#allocation6], %s8425_s19, %s8425_s19, %s8426_s20  }
  0x23   :  { %8418 = dma.done.wait [#allocation3], 6144  }
  0x24   :  { %8419 = vsyncadd [#allocation3], 4294961152 }
  0x25   :  { %8420 = dma.done.wait [#allocation6], 6144  }
  0x26   :  { %8421 = vsyncadd [#allocation6], 4294961152  ;;  %v8428_v0 = vmov 0.0   ;;  %v63_v1 = vld [vmem:[%s10749_s1] sm:$0xff]  ;;  %s8429_s15 = smov 32   ;;  %v64_v2 = vld [vmem:[%s10749_s1 + $0x8] sm:$0xff] }
  0x27   :  { %230 = vmatprep.mubr.f32.mxu0 %v8428_v0  ;;  %67 = vrot.lane.b32.xlu0 %v63_v1, %s8429_s15  ;;  %v136_v3 = vld [vmem:[%s10750_s2 + $0x8] sm:$0xff]  ;;  %v138_v4 = vld [vmem:[%s10750_s2 + $0x18] sm:$0xff]  ;;  %v135_v6 = vld [vmem:[%s10750_s2] sm:$0xff]  ;;  %vm73_vm0 = vcmask 261120   ;;  %vm159_vm1 = vcmask 523264   ;;  %s8432_s10 = smov [#allocation7]  }
  0x28   :  { %v6753_v5 = vpack.c.bf16 %v138_v4, %v136_v3  ;;  %v137_v7 = vld [vmem:[%s10750_s2 + $0x10] sm:$0xff]  ;;  %v140_v8 = vld [vmem:[%s10750_s2 + $0x28] sm:$0xff]  ;;  %v142_v10 = vld [vmem:[%s10750_s2 + $0x38] sm:$0xff] }
  0x29   :  { %v6755_v9 = vpack.c.bf16 %v137_v7, %v135_v6  ;;  %v139_v11 = vld [vmem:[%s10750_s2 + $0x20] sm:$0xff]  ;;  %v141_v12 = vld [vmem:[%s10750_s2 + $0x30] sm:$0xff]  ;;  %v6757_v13 = vpack.c.bf16 %v142_v10, %v140_v8  ;;  %v144_v14 = vld [vmem:[%s10750_s2 + $0x48] sm:$0xff] }
  0x2a   :  { %6754 = vmatprep.subr.bf16.mxu0 %v6753_v5  ;;  %v146_v15 = vld [vmem:[%s10750_s2 + $0x58] sm:$0xff]  ;;  %v6759_v16 = vpack.c.bf16 %v141_v12, %v139_v11  ;;  %v143_v17 = vld [vmem:[%s10750_s2 + $0x40] sm:$0xff]  ;;  %v145_v18 = vld [vmem:[%s10750_s2 + $0x50] sm:$0xff] }
  0x2b   :  { %69 = vrot.lane.b32.xlu0 %v64_v2, %s8429_s15  ;;  %6756 = vmatpush1.bf16.msra.mxu0 %v6755_v9  ;;  %v6761_v19 = vpack.c.bf16 %v146_v15, %v144_v14  ;;  %v148_v20 = vld [vmem:[%s10750_s2 + $0x68] sm:$0xff]  ;;  %v150_v21 = vld [vmem:[%s10750_s2 + $0x78] sm:$0xff]  ;;  %v8563_v25 = vld [vmem:[#allocation5] sm:$0xff]  ;;  %v6763_v27 = vpack.c.bf16 %v145_v18, %v143_v17 }
  0x2c   :  { %6758 = vmatprep.subr.bf16.mxu0 %v6757_v13  ;;  %v8558_v22 = vld [vmem:[#allocation5 + $0x8] sm:$0xff]  ;;  %v8560_v23 = vld [vmem:[#allocation5 + $0x18] sm:$0xff]  ;;  %v8565_v26 = vld [vmem:[#allocation5 + $0x10] sm:$0xff]  ;;  %v10789_v30 = vand.u32 4294901760, %v8563_v25  ;;  %v6765_v35 = vpack.c.bf16 %v150_v21, %v148_v20 }
  0x2d   :  { %v10791_v24 = vand.u32 4294901760, %v8558_v22  ;;  %v147_v28 = vld [vmem:[%s10750_s2 + $0x60] sm:$0xff]  ;;  %v10790_v29 = vand.u32 4294901760, %v8560_v23  ;;  %v10788_v31 = vand.u32 4294901760, %v8565_v26  ;;  %v8573_v32 = vld [vmem:[#allocation5 + $0x28] sm:$0xff]  ;;  %v8575_v33 = vld [vmem:[#allocation5 + $0x38] sm:$0xff] }
  0x2e   :  { %v8577_v34 = vld [vmem:[#allocation5 + $0x20] sm:$0xff]  ;;  %v10787_v36 = vand.u32 4294901760, %v8573_v32  ;;  %v10786_v37 = vand.u32 4294901760, %v8575_v33  ;;  %v8581_v38 = vld [vmem:[#allocation5 + $0x30] sm:$0xff]  ;;  %v8584_v40 = vld [vmem:[#allocation5 + $0x48] sm:$0xff] }
  0x2f   :  { %6760 = vmatpush1.bf16.msra.mxu0 %v6759_v16  ;;  %v10777_v39 = vand.u32 4294901760, %v8577_v34  ;;  %v8586_v41 = vld [vmem:[#allocation5 + $0x58] sm:$0xff]  ;;  %v149_v42 = vld [vmem:[%s10750_s2 + $0x70] sm:$0xff]  ;;  %v8595_v43 = vpack.c.bf16 %v10790_v29, %v10791_v24  ;;  %v8601_v44 = vpack.c.bf16 %v10788_v31, %v10789_v30  ;;  %v10776_v45 = vand.u32 4294901760, %v8581_v38  ;;  %v8605_v47 = vld [vmem:[#allocation5 + $0x40] sm:$0xff] }
  0x30   :  { %6762 = vmatprep.subr.bf16.mxu0 %v6761_v19  ;;  %v10775_v46 = vand.u32 4294901760, %v8584_v40  ;;  %v8607_v48 = vld [vmem:[#allocation5 + $0x50] sm:$0xff]  ;;  %v8613_v49 = vpack.c.bf16 %v10786_v37, %v10787_v36  ;;  %v10774_v50 = vand.u32 4294901760, %v8586_v41  ;;  %v8616_v51 = vld [vmem:[#allocation5 + $0x68] sm:$0xff]  ;;  %v8618_v52 = vld [vmem:[#allocation5 + $0x78] sm:$0xff]  ;;  %v6767_v53 = vpack.c.bf16 %v149_v42, %v147_v28 }
  0x31   :  { %11063 = vst [vmem:[#allocation11_spill] sm:$0xff] %v8595_v43  ;;  %11064 = vst [vmem:[#allocation12_spill] sm:$0xff] %v8601_v44  ;;  %6770 = vmatprep.subr.bf16.mxu1 %v8595_v43  ;;  %v8626_v54 = vpack.c.bf16 %v10776_v45, %v10777_v39  ;;  %v10771_v55 = vand.u32 4294901760, %v8605_v47  ;;  %v10768_v56 = vand.u32 4294901760, %v8607_v48  ;;  %v10767_v58 = vand.u32 4294901760, %v8616_v51  ;;  %v8639_v60 = vld [vmem:[#allocation5 + $0x60] sm:$0xff] }
  0x32   :  { %11065 = vst [vmem:[#allocation13_spill] sm:$0xff] %v8613_v49  ;;  %6772 = vmatpush1.bf16.msra.mxu1 %v8601_v44  ;;  %v8635_v57 = vpack.c.bf16 %v10774_v50, %v10775_v46  ;;  %v10766_v59 = vand.u32 4294901760, %v8618_v52  ;;  %v8641_v61 = vld [vmem:[#allocation5 + $0x70] sm:$0xff]  ;;  %v8643_v62 = vld [vmem:[#allocation5 + $0x88] sm:$0xff]  ;;  %v8645_v63 = vld [vmem:[#allocation5 + $0x98] sm:$0xff]  ;;  %v10765_v2 = vand.u32 4294901760, %v8639_v60 }
  0x33   :  { %6764 = vmatpush1.bf16.msra.mxu0 %v6763_v27  ;;  %11066 = vst [vmem:[#allocation14_spill] sm:$0xff] %v8626_v54  ;;  %6774 = vmatprep.subr.bf16.mxu1 %v8613_v49  ;;  %v8652_v1 = vpack.c.bf16 %v10768_v56, %v10771_v55  ;;  %v10764_v3 = vand.u32 4294901760, %v8641_v61  ;;  %v10761_v5 = vand.u32 4294901760, %v8643_v62  ;;  %v10758_v6 = vand.u32 4294901760, %v8645_v63  ;;  %v8665_v7 = vld [vmem:[#allocation5 + $0x80] sm:$0xff]  ;;  %v8667_v8 = vld [vmem:[#allocation5 + $0x90] sm:$0xff] }
  0x34   :  { %6766 = vmatprep.subr.bf16.mxu0 %v6765_v35  ;;  %11067 = vst [vmem:[#allocation15_spill] sm:$0xff] %v8635_v57  ;;  %v8661_v4 = vpack.c.bf16 %v10766_v59, %v10767_v58  ;;  %v8670_v9 = vld [vmem:[#allocation5 + $0xa8] sm:$0xff]  ;;  %v8672_v10 = vld [vmem:[#allocation5 + $0xb8] sm:$0xff]  ;;  %v10760_v12 = vand.u32 4294901760, %v8665_v7  ;;  %v10759_v13 = vand.u32 4294901760, %v8667_v8  ;;  %v8692_v17 = vld [vmem:[#allocation5 + $0xa0] sm:$0xff] }
  0x35   :  { %11068 = vst [vmem:[#allocation16_spill] sm:$0xff] %v8652_v1  ;;  %v8679_v11 = vpack.c.bf16 %v10764_v3, %v10765_v2  ;;  %v8688_v14 = vpack.c.bf16 %v10758_v6, %v10761_v5  ;;  %v10763_v15 = vand.u32 4294901760, %v8670_v9  ;;  %v10762_v16 = vand.u32 4294901760, %v8672_v10  ;;  %v8694_v18 = vld [vmem:[#allocation5 + $0xb0] sm:$0xff]  ;;  %v8696_v19 = vld [vmem:[#allocation5 + $0xc8] sm:$0xff]  ;;  %v8698_v20 = vld [vmem:[#allocation5 + $0xd8] sm:$0xff] }
  0x36   :  { %6776 = vmatpush1.bf16.msra.mxu1 %v8626_v54  ;;  %11069 = vst [vmem:[#allocation17_spill] sm:$0xff] %v8661_v4  ;;  %v8705_v21 = vpack.c.bf16 %v10759_v13, %v10760_v12  ;;  %v10770_v27 = vand.u32 4294901760, %v8692_v17  ;;  %v10769_v28 = vand.u32 4294901760, %v8694_v18  ;;  %v10773_v42 = vand.u32 4294901760, %v8696_v19  ;;  %v8718_v6 = vld [vmem:[#allocation5 + $0xc0] sm:$0xff]  ;;  %v8720_v13 = vld [vmem:[#allocation5 + $0xd0] sm:$0xff] }
  0x37   :  { %6768 = vmatpush1.bf16.msra.mxu0 %v6767_v53  ;;  %6778 = vmatprep.subr.bf16.mxu1 %v8635_v57  ;;  %11070 = vst [vmem:[#allocation18_spill] sm:$0xff] %v8679_v11  ;;  %11071 = vst [vmem:[#allocation19_spill] sm:$0xff] %v8688_v14  ;;  %v8714_v35 = vpack.c.bf16 %v10762_v16, %v10763_v15  ;;  %v10772_v53 = vand.u32 4294901760, %v8698_v20  ;;  %v8722_v12 = vld [vmem:[#allocation5 + $0xe8] sm:$0xff]  ;;  %v8724_v5 = vld [vmem:[#allocation5 + $0xf8] sm:$0xff]  ;;  %v10783_v15 = vand.u32 4294901760, %v8718_v6 }
  0x38   :  { %7058 = vmatprep.subr.bf16.mxu0 %v8595_v43  ;;  %11072 = vst [vmem:[#allocation20_spill] sm:$0xff] %v8705_v21  ;;  %11074 = vst [vmem:[#allocation22_spill] sm:$0xff] %v8720_v13  ;;  %v8731_v16 = vpack.c.bf16 %v10769_v28, %v10770_v27  ;;  %v10778_v3 = vand.u32 4294901760, %v8720_v13  ;;  %v10780_v59 = vand.u32 4294901760, %v8722_v12  ;;  %v10779_v58 = vand.u32 4294901760, %v8724_v5  ;;  %v8744_v56 = vld [vmem:[#allocation5 + $0xe0] sm:$0xff] }
  0x39   :  { %11073 = vst [vmem:[#allocation21_spill] sm:$0xff] %v8714_v35  ;;  %11075 = vst [vmem:[#allocation23_spill] sm:$0xff] %v8722_v12  ;;  %v8740_v2 = vpack.c.bf16 %v10772_v53, %v10773_v42  ;;  %v8746_v28 = vld [vmem:[#allocation5 + $0xf0] sm:$0xff]  ;;  %v8748_v27 = vld [vmem:[#allocation5 + $0x108] sm:$0xff]  ;;  %v10782_v42 = vand.u32 4294901760, %v8744_v56 }
  0x3a   :  { %6780 = vmatpush1.bf16.msra.mxu1 %v8652_v1  ;;  %11076 = vst [vmem:[#allocation24_spill] sm:$0xff] %v8724_v5  ;;  %11077 = vst [vmem:[#allocation25_spill] sm:$0xff] %v8731_v16  ;;  %v8750_v55 = vld [vmem:[#allocation5 + $0x118] sm:$0xff]  ;;  %v8757_v53 = vpack.c.bf16 %v10778_v3, %v10783_v15  ;;  %v10781_v50 = vand.u32 4294901760, %v8746_v28  ;;  %v8766_v46 = vpack.c.bf16 %v10779_v58, %v10780_v59  ;;  %v10785_v45 = vand.u32 4294901760, %v8748_v27  ;;  %v61_v59 = vld [vmem:[%s10748_s0] sm:$0xff] }
  0x3b   :  { %6782 = vmatprep.subr.bf16.mxu1 %v8661_v4  ;;  %11078 = vst [vmem:[#allocation26_spill] sm:$0xff] %v8740_v2  ;;  %11079 = vst [vmem:[#allocation27_spill] sm:$0xff] %v8744_v56  ;;  %v10784_v39 = vand.u32 4294901760, %v8750_v55  ;;  %v62_v15 = vld [vmem:[%s10748_s0 + $0x8] sm:$0xff]  ;;  %v115_v31 = vld [vmem:[#allocation5 + $0x120] sm:$0xff] }
  0x3c   :  { %11080 = vst [vmem:[#allocation28_spill] sm:$0xff] %v8746_v28  ;;  %11081 = vst [vmem:[#allocation29_spill] sm:$0xff] %v8748_v27  ;;  %v8775_v3 = vpack.c.bf16 %v10781_v50, %v10782_v42  ;;  %v117_v30 = vld [vmem:[#allocation5 + $0x130] sm:$0xff]  ;;  %v323_v29 = vand.u32 4294901760, %v115_v31 }
  0x3d   :  { %11082 = vst [vmem:[#allocation30_spill] sm:$0xff] %v8750_v55  ;;  %11083 = vst [vmem:[#allocation31_spill] sm:$0xff] %v8757_v53  ;;  %v8782_v58 = vpack.c.bf16 %v10784_v39, %v10785_v45  ;;  %v327_v24 = vand.u32 4294901760, %v117_v30  ;;  %v8849_v55 = vld [vmem:[#allocation5 + $0x160] sm:$0xff]  ;;  %v8851_v27 = vld [vmem:[#allocation5 + $0x170] sm:$0xff] }
  0x3e   :  { %6784 = vmatpush1.bf16.msra.mxu1 %v8679_v11  ;;  %11084 = vst [vmem:[#allocation32_spill] sm:$0xff] %v8766_v46  ;;  %11085 = vst [vmem:[#allocation33_spill] sm:$0xff] %v8775_v3 }
  0x3f   :  { %6786 = vmatprep.subr.bf16.mxu1 %v8688_v14  ;;  %11086 = vst [vmem:[#allocation34_spill] sm:$0xff] %v8782_v58 }
  0x42   :  { %6788 = vmatpush1.bf16.msra.mxu1 %v8705_v21 }
  0x43   :  { %6790 = vmatprep.subr.bf16.mxu1 %v8714_v35 }
  0x46   :  { %6792 = vmatpush1.bf16.msra.mxu1 %v8731_v16 }
  0x47   :  { %6794 = vmatprep.subr.bf16.mxu1 %v8740_v2 }
  0x4a   :  { %6796 = vmatpush1.bf16.msra.mxu1 %v8757_v53 }
  0x4b   :  { %6798 = vmatprep.subr.bf16.mxu1 %v8766_v46 }
  0x4e   :  { %6800 = vmatpush1.bf16.msra.mxu1 %v8775_v3 }
  0x4f   :  { %6802 = vmatprep.subr.bf16.mxu1 %v8782_v58 }
  0x99   :  { %v68_v50 = vpop.permute.xlu0 %67 }
  0x9a   :  { %v74_v42 = vsel %vm73_vm0, %v61_v59, %v68_v50 }
  0x9b   :  { %6397 = vmatmul.mubr.msk.f32.vlgmr.msra.gmra.mrb[0].mxu0 %vm159_vm1, %v74_v42  ;;  %v118_v42 = vld [vmem:[#allocation5 + $0x138] sm:$0xff] }
  0x9c   :  { %236 = vmatprep.mubr.f32.mxu0 %v8428_v0  ;;  %7060 = vmatpush1.bf16.msra.mxu0 %v8601_v44  ;;  %v111_v0 = vld [vmem:[#allocation5 + $0x100] sm:$0xff]  ;;  %v325_v36 = vand.u32 4294901760, %v118_v42  ;;  %v8845_v44 = vld [vmem:[#allocation5 + $0x178] sm:$0xff] }
  0x9d   :  { %v70_v39 = vpop.permute.xlu0 %69  ;;  %7062 = vmatprep.subr.bf16.mxu0 %v8613_v49  ;;  %v124_v49 = vld [vmem:[#allocation5 + $0x168] sm:$0xff]  ;;  %v341_v43 = vand.u32 4294901760, %v8845_v44 }
  0x9e   :  { %v75_v45 = vsel %vm73_vm0, %v62_v15, %v70_v39  ;;  %v113_v39 = vld [vmem:[#allocation5 + $0x110] sm:$0xff]  ;;  %v116_v15 = vld [vmem:[#allocation5 + $0x128] sm:$0xff] }
  0x9f   :  { %6398 = vmatmul.mubr.msk.f32.gmra.mrb[2].mxu0 %vm159_vm1, %v75_v45  ;;  %v315_v45 = vand.u32 4294901760, %v111_v0  ;;  %v319_v50 = vand.u32 4294901760, %v113_v39  ;;  %v321_v37 = vand.u32 4294901760, %v116_v15 }
  0xa0   :  { %7064 = vmatpush1.bf16.msra.mxu0 %v8626_v54 }
  0xa1   :  { %7066 = vmatprep.subr.bf16.mxu0 %v8635_v57  ;;  %v8813_v59 = vpack.c.bf16 %v319_v50, %v315_v45  ;;  %v11093_v57 = vand.u32 4294901760, %v8560_v23 }
  0xa3   :  { %11087 = vst [vmem:[#allocation35_spill] sm:$0xff] %v8813_v59  ;;  %6804 = vmatpush1.bf16.msra.mxu1 %v8813_v59  ;;  %v8841_v54 = vsub.f32 %v8560_v23, %v11093_v57  ;;  %v339_v23 = vand.u32 4294901760, %v8849_v55  ;;  %v10852_v57 = vand.u32 4294901760, %v8851_v27 }
  0xa4   :  { %7068 = vmatpush1.bf16.msra.mxu0 %v8652_v1 }
  0xa5   :  { %7070 = vmatprep.subr.bf16.mxu0 %v8661_v4  ;;  %v11091_v4 = vand.u32 4294901760, %v8558_v22  ;;  %11094 = vst [vmem:[#allocation40_spill] sm:$0xff] %v8841_v54 }
  0xa7   :  { %v8836_v1 = vsub.f32 %v8558_v22, %v11091_v4  ;;  %v10850_v4 = vand.u32 4294901760, %v8841_v54 }
  0xa8   :  { %7072 = vmatpush1.bf16.msra.mxu0 %v8679_v11 }
  0xa9   :  { %7074 = vmatprep.subr.bf16.mxu0 %v8688_v14  ;;  %11092 = vst [vmem:[#allocation39_spill] sm:$0xff] %v8836_v1  ;;  %v10851_v22 = vand.u32 4294901760, %v8836_v1  ;;  %v409_v5 = vsub.f32 %v8841_v54, %v10850_v4  ;;  %v8880_v4 = vsub.f32 %v111_v0, %v315_v45 }
  0xab   :  { %v397_v56 = vsub.f32 %v8836_v1, %v10851_v22  ;;  %v410_v13 = vand.u32 4294901760, %v409_v5  ;;  %11099 = vst [vmem:[#allocation45_spill] sm:$0xff] %v8880_v4  ;;  %v8882_v22 = vsub.f32 %v113_v39, %v319_v50  ;;  %v8902_v39 = vsub.f32 %v117_v30, %v327_v24 }
  0xac   :  { %7076 = vmatpush1.bf16.msra.mxu0 %v8705_v21  ;;  %v8825_v21 = vld [vmem:[#allocation5 + $0x150] sm:$0xff] }
  0xad   :  { %7078 = vmatprep.subr.bf16.mxu0 %v8714_v35  ;;  %v119_v35 = vld [vmem:[#allocation5 + $0x140] sm:$0xff]  ;;  %v335_v14 = vand.u32 4294901760, %v8825_v21  ;;  %v398_v12 = vand.u32 4294901760, %v397_v56  ;;  %11100 = vst [vmem:[#allocation46_spill] sm:$0xff] %v8882_v22  ;;  %v10857_v56 = vand.u32 4294901760, %v8880_v4  ;;  %v10870_v5 = vand.u32 4294901760, %v8882_v22 }
  0xae   :  { %11104 = vst [vmem:[#allocation50_spill] sm:$0xff] %v8902_v39 }
  0xaf   :  { %v607_v0 = vsub.f32 %v8882_v22, %v10870_v5 }
  0xb0   :  { %7080 = vmatpush1.bf16.msra.mxu0 %v8731_v16 }
  0xb1   :  { %7082 = vmatprep.subr.bf16.mxu0 %v8740_v2 }
  0xb4   :  { %7084 = vmatpush1.bf16.msra.mxu0 %v8757_v53  ;;  %v8821_v53 = vld [vmem:[#allocation5 + $0x158] sm:$0xff] }
  0xb5   :  { %7086 = vmatprep.subr.bf16.mxu0 %v8766_v46  ;;  %v120_v46 = vld [vmem:[#allocation5 + $0x148] sm:$0xff]  ;;  %v333_v16 = vand.u32 4294901760, %v8821_v53 }
  0xb6   :  { %v329_v2 = vand.u32 4294901760, %v120_v46 }
  0xb7   :  { %v8916_v30 = vsub.f32 %v8821_v53, %v333_v16 }
  0xb8   :  { %7088 = vmatpush1.bf16.msra.mxu0 %v8775_v3  ;;  %v8817_v3 = vpack.c.bf16 %v325_v36, %v321_v37  ;;  %v8831_v11 = vpack.c.bf16 %v333_v16, %v329_v2 }
  0xb9   :  { %7090 = vmatprep.subr.bf16.mxu0 %v8782_v58  ;;  %v8819_v58 = vpack.c.bf16 %v327_v24, %v323_v29  ;;  %11106 = vst [vmem:[#allocation52_spill] sm:$0xff] %v8916_v30 }
  0xba   :  { %11088 = vst [vmem:[#allocation36_spill] sm:$0xff] %v8817_v3  ;;  %6806 = vmatprep.subr.bf16.mxu1 %v8817_v3  ;;  %11090 = vst [vmem:[#allocation38_spill] sm:$0xff] %v8831_v11 }
  0xbb   :  { %11089 = vst [vmem:[#allocation37_spill] sm:$0xff] %v8819_v58  ;;  %6808 = vmatpush1.bf16.msra.mxu1 %v8819_v58 }
  0xbc   :  { %7092 = vmatpush1.bf16.msra.mxu0 %v8813_v59  ;;  %v331_v59 = vand.u32 4294901760, %v119_v35  ;;  %6810 = vmatprep.subr.bf16.mxu1 %v8831_v11 }
  0xbd   :  { %7094 = vmatprep.subr.bf16.mxu0 %v8817_v3 }
  0xbe   :  { %v8843_v3 = vpack.c.bf16 %v335_v14, %v331_v59 }
  0xc0   :  { %7096 = vmatpush1.bf16.msra.mxu0 %v8819_v58  ;;  %11095 = vst [vmem:[#allocation41_spill] sm:$0xff] %v8843_v3  ;;  %v337_v58 = vand.u32 4294901760, %v124_v49  ;;  %6812 = vmatpush1.bf16.msra.mxu1 %v8843_v3 }
  0xc1   :  { %7098 = vmatprep.subr.bf16.mxu0 %v8831_v11  ;;  %v8870_v11 = vpack.c.bf16 %v10852_v57, %v339_v23  ;;  %v8884_v57 = vsub.f32 %v116_v15, %v321_v37 }
  0xc2   :  { %v8860_v28 = vpack.c.bf16 %v341_v43, %v337_v58 }
  0xc3   :  { %11097 = vst [vmem:[#allocation43_spill] sm:$0xff] %v8870_v11  ;;  %11101 = vst [vmem:[#allocation47_spill] sm:$0xff] %v8884_v57 }
  0xc4   :  { %7100 = vmatpush1.bf16.msra.mxu0 %v8843_v3  ;;  %11096 = vst [vmem:[#allocation42_spill] sm:$0xff] %v8860_v28  ;;  %6814 = vmatprep.subr.bf16.mxu1 %v8860_v28  ;;  %v8876_v3 = vpack.c.bf16 %v410_v13, %v398_v12  ;;  %v595_v12 = vsub.f32 %v8880_v4, %v10857_v56  ;;  %v608_v56 = vand.u32 4294901760, %v607_v0 }
  0xc5   :  { %7102 = vmatprep.subr.bf16.mxu0 %v8860_v28  ;;  %6816 = vmatpush1.bf16.msra.mxu1 %v8870_v11  ;;  %v10858_v28 = vand.u32 4294901760, %v8884_v57  ;;  %v8892_v13 = vsub.f32 %v118_v42, %v325_v36  ;;  %v8927_v0 = vsub.f32 %v8825_v21, %v335_v14 }
  0xc6   :  { %11098 = vst [vmem:[#allocation44_spill] sm:$0xff] %v8876_v3  ;;  %6818 = vmatprep.subr.bf16.mxu1 %v8876_v3  ;;  %v596_v45 = vand.u32 4294901760, %v595_v12  ;;  %v8918_v12 = vsub.f32 %v119_v35, %v331_v59 }
  0xc7   :  { %11102 = vst [vmem:[#allocation48_spill] sm:$0xff] %v8892_v13  ;;  %v613_v37 = vsub.f32 %v8884_v57, %v10858_v28  ;;  %v10859_v50 = vand.u32 4294901760, %v8892_v13  ;;  %11109 = vst [vmem:[#allocation55_spill] sm:$0xff] %v8927_v0  ;;  %v10868_v59 = vand.u32 4294901760, %v8927_v0 }
  0xc8   :  { %7104 = vmatpush1.bf16.msra.mxu0 %v8870_v11  ;;  %v8894_v11 = vsub.f32 %v115_v31, %v323_v29  ;;  %v10869_v29 = vand.u32 4294901760, %v8902_v39  ;;  %v8907_v31 = vsub.f32 %v120_v46, %v329_v2  ;;  %11107 = vst [vmem:[#allocation53_spill] sm:$0xff] %v8918_v12  ;;  %v8920_v28 = vpack.c.bf16 %v608_v56, %v596_v45 }
  0xc9   :  { %7106 = vmatprep.subr.bf16.mxu0 %v8876_v3  ;;  %v614_v36 = vand.u32 4294901760, %v613_v37  ;;  %v625_v42 = vsub.f32 %v8892_v13, %v10859_v50  ;;  %v10863_v16 = vand.u32 4294901760, %v8918_v12  ;;  %v8935_v56 = vsub.f32 %v124_v49, %v337_v58 }
  0xca   :  { %11103 = vst [vmem:[#allocation49_spill] sm:$0xff] %v8894_v11  ;;  %v10860_v15 = vand.u32 4294901760, %v8894_v11  ;;  %11105 = vst [vmem:[#allocation51_spill] sm:$0xff] %v8907_v31  ;;  %v631_v46 = vsub.f32 %v8902_v39, %v10869_v29  ;;  %v10862_v2 = vand.u32 4294901760, %v8907_v31  ;;  %v655_v49 = vsub.f32 %v8927_v0, %v10868_v59 }
  0xcb   :  { %11108 = vst [vmem:[#allocation54_spill] sm:$0xff] %v8920_v28  ;;  %v626_v37 = vand.u32 4294901760, %v625_v42  ;;  %11110 = vst [vmem:[#allocation56_spill] sm:$0xff] %v8935_v56  ;;  %v643_v21 = vsub.f32 %v8918_v12, %v10863_v16  ;;  %v8946_v42 = vsub.f32 %v8845_v44, %v341_v43  ;;  %v10864_v58 = vand.u32 4294901760, %v8935_v56 }
  0xcc   :  { %v619_v24 = vsub.f32 %v8894_v11, %v10860_v15  ;;  %v10861_v15 = vand.u32 4294901760, %v8916_v30  ;;  %v632_v53 = vand.u32 4294901760, %v631_v46  ;;  %v637_v35 = vsub.f32 %v8907_v31, %v10862_v2 }
  0xcd   :  { %v8937_v45 = vpack.c.bf16 %v626_v37, %v614_v36  ;;  %11112 = vst [vmem:[#allocation58_spill] sm:$0xff] %v8946_v42  ;;  %v644_v37 = vand.u32 4294901760, %v643_v21  ;;  %v8956_v2 = vsub.f32 %v8849_v55, %v339_v23  ;;  %v656_v16 = vand.u32 4294901760, %v655_v49 }
  0xce   :  { %v620_v50 = vand.u32 4294901760, %v619_v24  ;;  %v649_v14 = vsub.f32 %v8916_v30, %v10861_v15  ;;  %v638_v46 = vand.u32 4294901760, %v637_v35  ;;  %v10867_v15 = vand.u32 4294901760, %v8946_v42 }
  0xcf   :  { %11111 = vst [vmem:[#allocation57_spill] sm:$0xff] %v8937_v45  ;;  %11114 = vst [vmem:[#allocation60_spill] sm:$0xff] %v8956_v2  ;;  %v661_v43 = vsub.f32 %v8935_v56, %v10864_v58  ;;  %v11115_v44 = vand.u32 4294901760, %v8851_v27  ;;  %v8972_v55 = vpack.c.bf16 %v656_v16, %v644_v37  ;;  %v11131_v29 = vand.u32 4294901760, %v8573_v32 }
  0xd0   :  { %v8948_v24 = vpack.c.bf16 %v632_v53, %v620_v50  ;;  %v650_v36 = vand.u32 4294901760, %v649_v14  ;;  %v673_v35 = vsub.f32 %v8946_v42, %v10867_v15  ;;  %v10866_v14 = vand.u32 4294901760, %v8956_v2 }
  0xd1   :  { %v8964_v50 = vsub.f32 %v8851_v27, %v11115_v44  ;;  %11118 = vst [vmem:[#allocation63_spill] sm:$0xff] %v8972_v55  ;;  %v662_v23 = vand.u32 4294901760, %v661_v43  ;;  %v8991_v44 = vpack.c.bf16 %v8882_v22, %v8880_v4  ;;  %v11130_v15 = vand.u32 4294901760, %v8565_v26 }
  0xd2   :  { %11113 = vst [vmem:[#allocation59_spill] sm:$0xff] %v8948_v24  ;;  %v8966_v53 = vpack.c.bf16 %v650_v36, %v638_v46  ;;  %v674_v49 = vand.u32 4294901760, %v673_v35  ;;  %v667_v58 = vsub.f32 %v8956_v2, %v10866_v14  ;;  %v8983_v46 = vpack.c.bf16 %v8841_v54, %v8836_v1 }
  0xd3   :  { %11116 = vst [vmem:[#allocation61_spill] sm:$0xff] %v8964_v50  ;;  %v10865_v21 = vand.u32 4294901760, %v8964_v50  ;;  %11122 = vst [vmem:[#allocation67_spill] sm:$0xff] %v8991_v44  ;;  %v8995_v35 = vpack.c.bf16 %v8892_v13, %v8884_v57  ;;  %v9025_v59 = vsub.f32 %v8565_v26, %v11130_v15  ;;  %v9030_v5 = vsub.f32 %v8573_v32, %v11131_v29 }
  0xd4   :  { %11117 = vst [vmem:[#allocation62_spill] sm:$0xff] %v8966_v53  ;;  %11119 = vst [vmem:[#allocation64_spill] sm:$0xff] %v8983_v46  ;;  %v8985_v36 = vpack.c.bf16 %v674_v49, %v662_v23  ;;  %v668_v16 = vand.u32 4294901760, %v667_v58  ;;  %v9003_v23 = vpack.c.bf16 %v8916_v30, %v8907_v31  ;;  %v9007_v58 = vpack.c.bf16 %v8927_v0, %v8918_v12 }
  0xd5   :  { %v679_v27 = vsub.f32 %v8964_v50, %v10865_v21  ;;  %11123 = vst [vmem:[#allocation68_spill] sm:$0xff] %v8995_v35  ;;  %v8999_v21 = vpack.c.bf16 %v8902_v39, %v8894_v11  ;;  %v9011_v49 = vpack.c.bf16 %v8946_v42, %v8935_v56  ;;  %v11132_v3 = vand.u32 4294901760, %v8575_v33 }
  0xd6   :  { %11120 = vst [vmem:[#allocation65_spill] sm:$0xff] %v8985_v36  ;;  %11125 = vst [vmem:[#allocation70_spill] sm:$0xff] %v9003_v23  ;;  %v10882_v29 = vand.u32 4294901760, %v9025_v59  ;;  %v10883_v42 = vand.u32 4294901760, %v9030_v5  ;;  %v11142_v12 = vand.u32 4294901760, %v8605_v47 }
  0xd7   :  { %v680_v37 = vand.u32 4294901760, %v679_v27  ;;  %11124 = vst [vmem:[#allocation69_spill] sm:$0xff] %v8999_v21  ;;  %11126 = vst [vmem:[#allocation71_spill] sm:$0xff] %v9007_v58  ;;  %v9015_v27 = vpack.c.bf16 %v8964_v50, %v8956_v2  ;;  %v9035_v50 = vsub.f32 %v8575_v33, %v11132_v3  ;;  %v11133_v2 = vand.u32 4294901760, %v8577_v34  ;;  %v76_v33 = vld [vmem:[%s10753_s5] sm:$0x3f] }
  0xd8   :  { %11127 = vst [vmem:[#allocation72_spill] sm:$0xff] %v9011_v49  ;;  %v11170_v58 = vand.u32 4294901760, %v8672_v10 }
  0xd9   :  { %v8987_v43 = vpack.c.bf16 %v680_v37, %v668_v16  ;;  %11128 = vst [vmem:[#allocation73_spill] sm:$0xff] %v9015_v27  ;;  %v151_v16 = vlaneseq  ;;  %v11129_v37 = vand.u32 4294901760, %v8563_v25  ;;  %v11139_v3 = vand.u32 4294901760, %v9035_v50 }
  0xdb   :  { %11121 = vst [vmem:[#allocation66_spill] sm:$0xff] %v8987_v43  ;;  %v9020_v14 = vsub.f32 %v8563_v25, %v11129_v37  ;;  %v9040_v25 = vsub.f32 %v8577_v34, %v11133_v2  ;;  %v11134_v37 = vand.u32 4294901760, %v8581_v38  ;;  %v9047_v15 = vshrl.u32 %v151_v16, 7 }
  0xdc   :  { %v11136_v2 = vand.u32 4294901760, %v8584_v40  ;;  %v11138_v16 = vand.u32 4294901760, %v8586_v41 }
  0xdd   :  { %v9045_v26 = vsub.f32 %v8581_v38, %v11134_v37  ;;  %11135 = vst [vmem:[#allocation74_spill] sm:$0xff] %v9047_v15  ;;  %v10880_v32 = vand.u32 4294901760, %v9020_v14  ;;  %v9061_v38 = vsub.s32 0, %v9047_v15 }
  0xde   :  { %v9058_v56 = vsub.f32 %v8584_v40, %v11136_v2  ;;  %v9066_v37 = vsub.f32 %v8586_v41, %v11138_v16  ;;  %v415_v40 = vsub.f32 %v9025_v59, %v10882_v29  ;;  %v421_v2 = vsub.f32 %v9030_v5, %v10883_v42  ;;  %v77_v42 = vld [vmem:[%s10753_s5 + $0x8] sm:$0x3f] }
  0xdf   :  { %11137 = vst [vmem:[#allocation75_spill] sm:$0xff] %v9061_v38  ;;  %v403_v34 = vsub.f32 %v9020_v14, %v10880_v32  ;;  %v433_v41 = vsub.f32 %v9035_v50, %v11139_v3  ;;  %v11140_v16 = vand.u32 4294901760, %v9040_v25  ;;  %v11141_v0 = vand.u32 4294901760, %v9045_v26 }
  0xe0   :  { %v9092_v29 = vsub.f32 %v8605_v47, %v11142_v12  ;;  %v10893_v30 = vand.u32 4294901760, %v9058_v56  ;;  %v11143_v3 = vand.u32 4294901760, %v8607_v48  ;;  %v416_v11 = vand.u32 4294901760, %v415_v40 }
  0xe1   :  { %v427_v15 = vsub.f32 %v9040_v25, %v11140_v16  ;;  %v439_v32 = vsub.f32 %v9045_v26, %v11141_v0  ;;  %v154_v16 = vrot.slane %v76_v33, %v9061_v38  ;;  %v10894_v0 = vand.u32 4294901760, %v9066_v37 }
  0xe2   :  { %v9101_v31 = vsub.f32 %v8607_v48, %v11143_v3  ;;  %v404_v39 = vand.u32 4294901760, %v403_v34  ;;  %v422_v13 = vand.u32 4294901760, %v421_v2  ;;  %v434_v47 = vand.u32 4294901760, %v433_v41 }
  0xe3   :  { %v158_v12 = vrot.slane %v77_v42, %v9061_v38  ;;  %v428_v57 = vand.u32 4294901760, %v427_v15  ;;  %v440_v22 = vand.u32 4294901760, %v439_v32  ;;  %v10896_v4 = vand.u32 4294901760, %v9092_v29 }
  0xe4   :  { %v445_v54 = vsub.f32 %v9058_v56, %v10893_v30  ;;  %v10895_v48 = vand.u32 4294901760, %v9101_v31  ;;  %v11144_v33 = vand.u32 4294901760, %v8616_v51  ;;  %v457_v42 = vsub.f32 %v9066_v37, %v10894_v0 }
  0xe5   :  { %v9121_v40 = vpack.c.bf16 %v416_v11, %v404_v39  ;;  %v9123_v2 = vpack.c.bf16 %v434_v47, %v422_v13  ;;  %v9127_v30 = vpack.c.bf16 %v440_v22, %v428_v57 }
  0xe6   :  { %v9114_v3 = vsub.f32 %v8616_v51, %v11144_v33  ;;  %v9132_v51 = vsub.f32 %v9092_v29, %v10896_v4  ;;  %v11150_v33 = vand.u32 4294901760, %v8618_v52  ;;  %v446_v11 = vand.u32 4294901760, %v445_v54 }
  0xe7   :  { %11146 = vst [vmem:[#allocation77_spill] sm:$0xff] %v9121_v40  ;;  %11147 = vst [vmem:[#allocation78_spill] sm:$0xff] %v9123_v2  ;;  %v9145_v13 = vsub.f32 %v9101_v31, %v10895_v48  ;;  %v458_v47 = vand.u32 4294901760, %v457_v42  ;;  %v11156_v42 = vand.u32 4294901760, %v8643_v62 }
  0xe8   :  { %11149 = vst [vmem:[#allocation80_spill] sm:$0xff] %v9127_v30  ;;  %v9137_v0 = vsub.f32 %v8618_v52, %v11150_v33  ;;  %v11152_v33 = vand.u32 4294901760, %v8641_v61 }
  0xea   :  { %v9158_v54 = vsub.f32 %v8641_v61, %v11152_v33  ;;  %v11158_v33 = vand.u32 4294901760, %v8645_v63 }
 0x16e   :  { %v232_v34 = vpop.f32.mrb[0].mxu0 }
 0x16f   :  { %v9119_v15 = vadd.f32 %v232_v34, %v154_v16  ;;  %v234_v32 = vpop.f32.mrb[1].mxu0 }
 0x170   :  { %v9125_v41 = vadd.f32 %v234_v32, %v158_v12  ;;  %v11151_v32 = vand.u32 4294901760, %v8639_v60 }
 0x171   :  { %11145 = vst [vmem:[#allocation76_spill] sm:$0xff] %v9119_v15  ;;  %v9140_v34 = vand.u32 4294901760, %v9119_v15 }
 0x172   :  { %11148 = vst [vmem:[#allocation79_spill] sm:$0xff] %v9125_v41  ;;  %v244_v57 = vsel %vm159_vm1, %v9125_v41, 0  ;;  %v238_v39 = vpop.f32.mrb[2].mxu0  ;;  %v9153_v52 = vsub.f32 %v8639_v60, %v11151_v32  ;;  %v9171_v41 = vsub.f32 %v8643_v62, %v11156_v42  ;;  %v11159_v42 = vand.u32 4294901760, %v9114_v3 }
 0x173   :  { %v9162_v48 = vsub.f32 %v9119_v15, %v9140_v34  ;;  %v9164_v4 = vand.u32 4294901760, %v244_v57  ;;  %v9166_v22 = vadd.f32 %v238_v39, %v154_v16  ;;  %v240_v38 = vpop.f32.mrb[3].mxu0  ;;  %v9180_v15 = vsub.f32 %v8645_v63, %v11158_v33 }
 0x174   :  { %v9173_v60 = vadd.f32 %v240_v38, %v158_v12  ;;  %v464_v38 = vand.u32 4294901760, %v9145_v13  ;;  %v469_v32 = vsub.f32 %v9114_v3, %v11159_v42  ;;  %v11162_v63 = vand.u32 4294901760, %v8665_v7 }
 0x175   :  { %11153 = vst [vmem:[#allocation81_spill] sm:$0xff] %v9162_v48  ;;  %11154 = vst [vmem:[#allocation82_spill] sm:$0xff] %v9164_v4  ;;  %v9183_v16 = vsub.f32 %v244_v57, %v9164_v4  ;;  %v9186_v39 = vand.u32 4294901760, %v9166_v22  ;;  %v11166_v42 = vand.u32 4294901760, %v8670_v9  ;;  %v11173_v21 = vand.u32 4294901760, %v9171_v41 }
 0x176   :  { %11155 = vst [vmem:[#allocation83_spill] sm:$0xff] %v9166_v22  ;;  %11157 = vst [vmem:[#allocation84_spill] sm:$0xff] %v9173_v60  ;;  %v247_v12 = vsel %vm159_vm1, %v9173_v60, 0  ;;  %v11161_v60 = vand.u32 4294901760, %v9162_v48  ;;  %v9212_v33 = vsub.f32 %v8665_v7, %v11162_v63  ;;  %v9231_v7 = vpack.c.bf16 %v458_v47, %v446_v11 }
 0x177   :  { %v9199_v57 = vsub.f32 %v9166_v22, %v9186_v39  ;;  %v9201_v61 = vand.u32 4294901760, %v247_v12  ;;  %v11163_v22 = vand.u32 4294901760, %v8667_v8  ;;  %v11165_v13 = vand.u32 4294901760, %v9183_v16 }
 0x178   :  { %v370_v1 = vsub.f32 %v9162_v48, %v11161_v60  ;;  %v9229_v48 = vsub.f32 %v8670_v9, %v11166_v42  ;;  %11167 = vst [vmem:[#allocation87_spill] sm:$0xff] %v9231_v7  ;;  %v11168_v63 = vand.u32 4294901760, %v9137_v0  ;;  %v11172_v47 = vand.u32 4294901760, %v9158_v54 }
 0x179   :  { %11160 = vst [vmem:[#allocation85_spill] sm:$0xff] %v9199_v57  ;;  %v9217_v27 = vsub.f32 %v8667_v8, %v11163_v22  ;;  %v9220_v62 = vsub.f32 %v247_v12, %v9201_v61  ;;  %v364_v49 = vsub.f32 %v9183_v16, %v11165_v13  ;;  %v11169_v22 = vand.u32 4294901760, %v9153_v52 }
 0x17a   :  { %v481_v8 = vsub.f32 %v9137_v0, %v11168_v63  ;;  %v9242_v13 = vsub.f32 %v8672_v10, %v11170_v58  ;;  %v11171_v9 = vand.u32 4294901760, %v9199_v57  ;;  %v487_v42 = vsub.f32 %v9158_v54, %v11172_v47 }
 0x17b   :  { %11164 = vst [vmem:[#allocation86_spill] sm:$0xff] %v9220_v62  ;;  %v475_v12 = vsub.f32 %v9153_v52, %v11169_v22  ;;  %v365_v60 = vand.u32 4294901760, %v364_v49  ;;  %v10913_v23 = vand.u32 4294901760, %v9220_v62  ;;  %v371_v63 = vand.u32 4294901760, %v370_v1 }
 0x17c   :  { %v386_v11 = vsub.f32 %v9199_v57, %v11171_v9  ;;  %v493_v22 = vsub.f32 %v9171_v41, %v11173_v21  ;;  %v11174_v35 = vand.u32 4294901760, %v9180_v15  ;;  %v11175_v1 = vand.u32 4294901760, %v8692_v17 }
 0x17d   :  { %366 = vmatprep.mubr.f32.mxu1 %v365_v60  ;;  %v380_v49 = vsub.f32 %v9220_v62, %v10913_v23  ;;  %v11176_v58 = vand.u32 4294901760, %v8694_v18  ;;  %v11177_v23 = vand.u32 4294901760, %v8696_v19  ;;  %v470_v62 = vand.u32 4294901760, %v469_v32 }
 0x17e   :  { %v505_v10 = vsub.f32 %v9180_v15, %v11174_v35  ;;  %v9266_v57 = vsub.f32 %v8692_v17, %v11175_v1  ;;  %372 = vmatmul.mubr.f32.vlgmr.msra.gmra.mrb[0].mxu1 %v371_v63  ;;  %v387_v21 = vand.u32 4294901760, %v386_v11  ;;  %v482_v17 = vand.u32 4294901760, %v481_v8 }
 0x17f   :  { %v9272_v60 = vsub.f32 %v8694_v18, %v11176_v58  ;;  %v9277_v9 = vsub.f32 %v8696_v19, %v11177_v23  ;;  %6820 = vmatpush1.bf16.msra.mxu1 %v9121_v40  ;;  %v381_v47 = vand.u32 4294901760, %v380_v49  ;;  %v11179_v63 = vand.u32 4294901760, %v8698_v20 }
 0x180   :  { %6822 = vmatprep.subr.bf16.mxu1 %v9123_v2  ;;  %v476_v1 = vand.u32 4294901760, %v475_v12  ;;  %v488_v18 = vand.u32 4294901760, %v487_v42  ;;  %v494_v58 = vand.u32 4294901760, %v493_v22  ;;  %v506_v35 = vand.u32 4294901760, %v505_v10  ;;  %v11189_v22 = vld [vmem:[#allocation22_spill] sm:$0xff] }
 0x181   :  { %11178 = vst [vmem:[#allocation88_spill] sm:$0xff] %v9277_v9  ;;  %v9283_v11 = vsub.f32 %v8698_v20, %v11179_v63  ;;  %382 = vmatprep.mubr.f32.mxu1 %v381_v47  ;;  %v11181_v19 = vand.u32 4294901760, %v9212_v33  ;;  %v11182_v49 = vand.u32 4294901760, %v9217_v27  ;;  %v11183_v8 = vand.u32 4294901760, %v9229_v48 }
 0x182   :  { %388 = vmatmul.mubr.f32.gmra.mrb[2].mxu1 %v387_v21  ;;  %v11184_v12 = vand.u32 4294901760, %v9242_v13  ;;  %v11185_v47 = vand.u32 4294901760, %v8718_v6  ;;  %v11190_v63 = vand.u32 4294901760, %v11189_v22 }
 0x183   :  { %11180 = vst [vmem:[#allocation89_spill] sm:$0xff] %v9283_v11  ;;  %v499_v23 = vsub.f32 %v9212_v33, %v11181_v19  ;;  %v511_v32 = vsub.f32 %v9217_v27, %v11182_v49  ;;  %v517_v20 = vsub.f32 %v9229_v48, %v11183_v8  ;;  %6824 = vmatpush1.bf16.msra.mxu1 %v9127_v30  ;;  %v11186_v49 = vand.u32 4294901760, %v9132_v51  ;;  %v11193_v30 = vld [vmem:[#allocation23_spill] sm:$0xff] }
 0x184   :  { %v529_v42 = vsub.f32 %v9242_v13, %v11184_v12  ;;  %v9304_v19 = vsub.f32 %v8718_v6, %v11185_v47  ;;  %699 = vmatprep.mubr.f32.mxu1 %v9164_v4  ;;  %v9312_v8 = vpack.c.bf16 %v482_v17, %v470_v62  ;;  %v9318_v10 = vsub.f32 %v11189_v22, %v11190_v63  ;;  %v11195_v62 = vld [vmem:[#allocation24_spill] sm:$0xff]  ;;  %v11207_v4 = vld [vmem:[#allocation30_spill] sm:$0xff] }
 0x185   :  { %v9310_v21 = vpack.c.bf16 %v464_v38, %v11186_v49  ;;  %6826 = vmatprep.subr.bf16.mxu1 %v9231_v7  ;;  %v9321_v6 = vpack.c.bf16 %v488_v18, %v476_v1  ;;  %v9323_v47 = vpack.c.bf16 %v506_v35, %v494_v58  ;;  %v11194_v2 = vand.u32 4294901760, %v11193_v30 }
 0x186   :  { %11188 = vst [vmem:[#allocation91_spill] sm:$0xff] %v9312_v8  ;;  %v11196_v38 = vand.u32 4294901760, %v11195_v62  ;;  %v500_v49 = vand.u32 4294901760, %v499_v23  ;;  %v512_v12 = vand.u32 4294901760, %v511_v32  ;;  %v518_v63 = vand.u32 4294901760, %v517_v20 }
 0x187   :  { %11187 = vst [vmem:[#allocation90_spill] sm:$0xff] %v9310_v21  ;;  %11191 = vst [vmem:[#allocation22_spill] sm:$0xff] %v9321_v6  ;;  %v9328_v51 = vsub.f32 %v11193_v30, %v11194_v2  ;;  %v11197_v22 = vand.u32 4294901760, %v9266_v57  ;;  %v530_v18 = vand.u32 4294901760, %v529_v42  ;;  %v11198_v35 = vand.u32 4294901760, %v9272_v60  ;;  %6828 = vmatpush1.bf16.msra.mxu1 %v9310_v21  ;;  %v11205_v21 = vld [vmem:[#allocation29_spill] sm:$0xff] }
 0x188   :  { %11192 = vst [vmem:[#allocation92_spill] sm:$0xff] %v9323_v47  ;;  %v9333_v17 = vsub.f32 %v11195_v62, %v11196_v38  ;;  %v11199_v30 = vand.u32 4294901760, %v9277_v9  ;;  %v11200_v23 = vand.u32 4294901760, %v9283_v11  ;;  %v11201_v62 = vld [vmem:[#allocation27_spill] sm:$0xff]  ;;  %6830 = vmatprep.subr.bf16.mxu1 %v9312_v8  ;;  %v11208_v44 = vand.u32 4294901760, %v11207_v4 }
 0x189   :  { %v523_v1 = vsub.f32 %v9266_v57, %v11197_v22  ;;  %v535_v58 = vsub.f32 %v9272_v60, %v11198_v35  ;;  %v11202_v42 = vand.u32 4294901760, %v11201_v62  ;;  %v11203_v22 = vld [vmem:[#allocation28_spill] sm:$0xff] }
 0x18a   :  { %v541_v2 = vsub.f32 %v9277_v9, %v11199_v30  ;;  %v553_v32 = vsub.f32 %v9283_v11, %v11200_v23  ;;  %v11204_v35 = vand.u32 4294901760, %v11203_v22  ;;  %v11206_v23 = vand.u32 4294901760, %v11205_v21 }
 0x18b   :  { %v9353_v38 = vsub.f32 %v11201_v62, %v11202_v42  ;;  %v9371_v62 = vsub.f32 %v11207_v4, %v11208_v44  ;;  %v9373_v42 = vpack.c.bf16 %v512_v12, %v500_v49  ;;  %v536_v8 = vand.u32 4294901760, %v535_v58  ;;  %6832 = vmatpush1.bf16.msra.mxu1 %v9321_v6  ;;  %v11277_v6 = vld [vmem:[#allocation40_spill] sm:$0xff] }
 0x18c   :  { %v9358_v40 = vsub.f32 %v11203_v22, %v11204_v35  ;;  %v9366_v20 = vsub.f32 %v11205_v21, %v11206_v23  ;;  %v524_v22 = vand.u32 4294901760, %v523_v1  ;;  %v9375_v35 = vpack.c.bf16 %v530_v18, %v518_v63  ;;  %6834 = vmatprep.subr.bf16.mxu1 %v9323_v47 }
 0x18d   :  { %11209 = vst [vmem:[#allocation23_spill] sm:$0xff] %v9373_v42  ;;  %v542_v11 = vand.u32 4294901760, %v541_v2  ;;  %v11211_v30 = vand.u32 4294901760, %v9304_v19  ;;  %v554_v21 = vand.u32 4294901760, %v553_v32  ;;  %v11212_v23 = vand.u32 4294901760, %v9318_v10 }
 0x18e   :  { %11210 = vst [vmem:[#allocation24_spill] sm:$0xff] %v9375_v35  ;;  %v10935_v4 = vand.u32 4294901760, %v9353_v38  ;;  %v10936_v44 = vand.u32 4294901760, %v9358_v40  ;;  %v11213_v12 = vand.u32 4294901760, %v9328_v51  ;;  %v11214_v63 = vand.u32 4294901760, %v9333_v17 }
 0x18f   :  { %v547_v7 = vsub.f32 %v9304_v19, %v11211_v30  ;;  %v559_v9 = vsub.f32 %v9318_v10, %v11212_v23  ;;  %v9395_v2 = vpack.c.bf16 %v536_v8, %v524_v22  ;;  %6836 = vmatpush1.bf16.msra.mxu1 %v9373_v42  ;;  %v9398_v30 = vpack.c.bf16 %v554_v21, %v542_v11  ;;  %v11275_v42 = vld [vmem:[#allocation39_spill] sm:$0xff] }
 0x190   :  { %v565_v49 = vsub.f32 %v9328_v51, %v11213_v12  ;;  %v577_v1 = vsub.f32 %v9333_v17, %v11214_v63  ;;  %v571_v12 = vsub.f32 %v9353_v38, %v10935_v4  ;;  %v583_v63 = vsub.f32 %v9358_v40, %v10936_v44  ;;  %6838 = vmatprep.subr.bf16.mxu1 %v9375_v35 }
 0x191   :  { %11215 = vst [vmem:[#allocation27_spill] sm:$0xff] %v9395_v2  ;;  %v548_v32 = vand.u32 4294901760, %v547_v7  ;;  %11216 = vst [vmem:[#allocation28_spill] sm:$0xff] %v9398_v30  ;;  %v560_v23 = vand.u32 4294901760, %v559_v9  ;;  %v11217_v8 = vand.u32 4294901760, %v9366_v20  ;;  %v11218_v11 = vand.u32 4294901760, %v9371_v62 }
 0x192   :  { %v566_v18 = vand.u32 4294901760, %v565_v49  ;;  %v578_v58 = vand.u32 4294901760, %v577_v1  ;;  %v572_v21 = vand.u32 4294901760, %v571_v12  ;;  %v584_v4 = vand.u32 4294901760, %v583_v63 }
 0x193   :  { %v589_v7 = vsub.f32 %v9366_v20, %v11217_v8  ;;  %v601_v9 = vsub.f32 %v9371_v62, %v11218_v11  ;;  %6840 = vmatpush1.bf16.msra.mxu1 %v9395_v2  ;;  %v9414_v22 = vpack.c.bf16 %v560_v23, %v548_v32  ;;  %v9453_v32 = vpack.c.bf16 %v9066_v37, %v9058_v56  ;;  %v11274_v2 = vld [vmem:[#allocation42_spill] sm:$0xff] }
 0x194   :  { %6842 = vmatprep.subr.bf16.mxu1 %v9398_v30  ;;  %v9417_v44 = vpack.c.bf16 %v578_v58, %v566_v18  ;;  %v9420_v35 = vpack.c.bf16 %v584_v4, %v572_v21  ;;  %v9436_v4 = vpack.c.bf16 %v9025_v59, %v9020_v14  ;;  %v9441_v18 = vpack.c.bf16 %v9035_v50, %v9030_v5  ;;  %v11273_v30 = vld [vmem:[#allocation41_spill] sm:$0xff] }
 0x195   :  { %11219 = vst [vmem:[#allocation29_spill] sm:$0xff] %v9414_v22  ;;  %v590_v49 = vand.u32 4294901760, %v589_v7  ;;  %v602_v1 = vand.u32 4294901760, %v601_v9  ;;  %v9448_v58 = vpack.c.bf16 %v9045_v26, %v9040_v25  ;;  %11226 = vst [vmem:[#allocation98_spill] sm:$0xff] %v9453_v32  ;;  %v9460_v23 = vpack.c.bf16 %v9101_v31, %v9092_v29 }
 0x196   :  { %11220 = vst [vmem:[#allocation30_spill] sm:$0xff] %v9417_v44  ;;  %11221 = vst [vmem:[#allocation93_spill] sm:$0xff] %v9420_v35  ;;  %v9465_v12 = vpack.c.bf16 %v9137_v0, %v9114_v3  ;;  %v9470_v63 = vpack.c.bf16 %v9158_v54, %v9153_v52  ;;  %v9475_v7 = vpack.c.bf16 %v9180_v15, %v9171_v41  ;;  %v11276_v47 = vand.u32 4294901760, %v11275_v42 }
 0x197   :  { %6844 = vmatpush1.bf16.msra.mxu1 %v9414_v22  ;;  %v9423_v8 = vpack.c.bf16 %v602_v1, %v590_v49  ;;  %11223 = vst [vmem:[#allocation95_spill] sm:$0xff] %v9436_v4  ;;  %11224 = vst [vmem:[#allocation96_spill] sm:$0xff] %v9441_v18  ;;  %v9480_v11 = vpack.c.bf16 %v9217_v27, %v9212_v33  ;;  %v9485_v9 = vpack.c.bf16 %v9242_v13, %v9229_v48  ;;  %v11234_v49 = vld [vmem:[#allocation88_spill] sm:$0xff]  ;;  %v11235_v1 = vld [vmem:[#allocation89_spill] sm:$0xff] }
 0x198   :  { %6846 = vmatprep.subr.bf16.mxu1 %v9417_v44  ;;  %11225 = vst [vmem:[#allocation97_spill] sm:$0xff] %v9448_v58  ;;  %11227 = vst [vmem:[#allocation99_spill] sm:$0xff] %v9460_v23  ;;  %v9490_v21 = vpack.c.bf16 %v9272_v60, %v9266_v57  ;;  %v11271_v44 = vld [vmem:[#allocation37_spill] sm:$0xff]  ;;  %v11272_v22 = vld [vmem:[#allocation38_spill] sm:$0xff] }
 0x199   :  { %11222 = vst [vmem:[#allocation94_spill] sm:$0xff] %v9423_v8  ;;  %11228 = vst [vmem:[#allocation100_spill] sm:$0xff] %v9465_v12 }
 0x19a   :  { %11229 = vst [vmem:[#allocation101_spill] sm:$0xff] %v9470_v63  ;;  %11230 = vst [vmem:[#allocation102_spill] sm:$0xff] %v9475_v7 }
 0x19b   :  { %6848 = vmatpush1.bf16.msra.mxu1 %v9420_v35  ;;  %11231 = vst [vmem:[#allocation103_spill] sm:$0xff] %v9480_v11  ;;  %11232 = vst [vmem:[#allocation104_spill] sm:$0xff] %v9485_v9  ;;  %v11270_v35 = vld [vmem:[#allocation36_spill] sm:$0xff] }
 0x19c   :  { %6850 = vmatprep.subr.bf16.mxu1 %v9423_v8  ;;  %11233 = vst [vmem:[#allocation105_spill] sm:$0xff] %v9490_v21  ;;  %v11269_v8 = vld [vmem:[#allocation35_spill] sm:$0xff] }
 0x19f   :  { %6852 = vmatpush1.bf16.msra.mxu1 %v8920_v28  ;;  %v11268_v28 = vld [vmem:[#allocation34_spill] sm:$0xff] }
 0x1a0   :  { %6854 = vmatprep.subr.bf16.mxu1 %v8937_v45  ;;  %v11267_v45 = vld [vmem:[#allocation33_spill] sm:$0xff] }
 0x1a3   :  { %6856 = vmatpush1.bf16.msra.mxu1 %v8948_v24  ;;  %v11264_v24 = vld [vmem:[#allocation26_spill] sm:$0xff] }
 0x1a4   :  { %6858 = vmatprep.subr.bf16.mxu1 %v8966_v53  ;;  %v11263_v53 = vld [vmem:[#allocation25_spill] sm:$0xff] }
 0x1a7   :  { %6860 = vmatpush1.bf16.msra.mxu1 %v8972_v55  ;;  %v11262_v55 = vld [vmem:[#allocation21_spill] sm:$0xff] }
 0x1a8   :  { %6862 = vmatprep.subr.bf16.mxu1 %v8985_v36  ;;  %v11261_v36 = vld [vmem:[#allocation20_spill] sm:$0xff] }
 0x1ab   :  { %6864 = vmatpush1.bf16.msra.mxu1 %v8987_v43  ;;  %v11260_v43 = vld [vmem:[#allocation19_spill] sm:$0xff] }
 0x1ac   :  { %6866 = vmatprep.subr.bf16.mxu1 %v8983_v46  ;;  %v11259_v46 = vld [vmem:[#allocation18_spill] sm:$0xff] }
 0x1ae   :  { %701 = vmatmul.mubr.f32.vlgmr.msra.gmra.mrb[0].mxu1 %v9140_v34 }
 0x1af   :  { %707 = vmatprep.mubr.f32.mxu1 %v9201_v61  ;;  %6868 = vmatpush1.bf16.msra.mxu1 %v9436_v4  ;;  %v11249_v4 = vld [vmem:[#allocation81_spill] sm:$0xff] }
 0x1b0   :  { %6870 = vmatprep.subr.bf16.mxu1 %v9441_v18  ;;  %v11248_v18 = vld [vmem:[#allocation11_spill] sm:$0xff] }
 0x1b2   :  { %709 = vmatmul.mubr.f32.gmra.mrb[2].mxu1 %v9186_v39 }
 0x1b3   :  { %6872 = vmatpush1.bf16.msra.mxu1 %v9448_v58  ;;  %877 = vmatprep.mubr.f32.mxu1 %v9183_v16  ;;  %v11246_v58 = vld [vmem:[#allocation72_spill] sm:$0xff] }
 0x1b4   :  { %6874 = vmatprep.subr.bf16.mxu1 %v9453_v32  ;;  %v11245_v32 = vld [vmem:[#allocation71_spill] sm:$0xff] }
 0x1b7   :  { %6876 = vmatpush1.bf16.msra.mxu1 %v9460_v23  ;;  %v11243_v23 = vld [vmem:[#allocation69_spill] sm:$0xff] }
 0x1b8   :  { %6878 = vmatprep.subr.bf16.mxu1 %v9465_v12  ;;  %v11242_v12 = vld [vmem:[#allocation68_spill] sm:$0xff] }
 0x1bb   :  { %6880 = vmatpush1.bf16.msra.mxu1 %v9470_v63  ;;  %v9495_v63 = vpack.c.bf16 %v11235_v1, %v11234_v49 }
 0x1bc   :  { %6882 = vmatprep.subr.bf16.mxu1 %v9475_v7  ;;  %v9500_v7 = vpack.c.bf16 %v9318_v10, %v9304_v19 }
 0x1bd   :  { %11236 = vst [vmem:[#allocation88_spill] sm:$0xff] %v9495_v63 }
 0x1be   :  { %11237 = vst [vmem:[#allocation89_spill] sm:$0xff] %v9500_v7 }
 0x1bf   :  { %6884 = vmatpush1.bf16.msra.mxu1 %v9480_v11  ;;  %v9505_v11 = vpack.c.bf16 %v9333_v17, %v9328_v51 }
 0x1c0   :  { %6886 = vmatprep.subr.bf16.mxu1 %v9485_v9  ;;  %v9510_v9 = vpack.c.bf16 %v9358_v40, %v9353_v38 }
 0x1c1   :  { %11238 = vst [vmem:[#allocation106_spill] sm:$0xff] %v9505_v11 }
 0x1c2   :  { %11239 = vst [vmem:[#allocation107_spill] sm:$0xff] %v9510_v9 }
 0x1c3   :  { %6888 = vmatpush1.bf16.msra.mxu1 %v9490_v21  ;;  %v9515_v21 = vpack.c.bf16 %v9371_v62, %v9366_v20 }
 0x1c4   :  { %6890 = vmatprep.subr.bf16.mxu1 %v9495_v63  ;;  %v11241_v63 = vld [vmem:[#allocation67_spill] sm:$0xff] }
 0x1c5   :  { %11240 = vst [vmem:[#allocation108_spill] sm:$0xff] %v9515_v21 }
 0x1c7   :  { %6892 = vmatpush1.bf16.msra.mxu1 %v9500_v7  ;;  %v11244_v7 = vld [vmem:[#allocation70_spill] sm:$0xff] }
 0x1c8   :  { %6894 = vmatprep.subr.bf16.mxu1 %v9505_v11  ;;  %v11247_v11 = vld [vmem:[#allocation73_spill] sm:$0xff] }
 0x1cb   :  { %6896 = vmatpush1.bf16.msra.mxu1 %v9510_v9  ;;  %v11250_v9 = vld [vmem:[#allocation86_spill] sm:$0xff] }
 0x1cc   :  { %6898 = vmatprep.subr.bf16.mxu1 %v9515_v21  ;;  %v11251_v21 = vld [vmem:[#allocation12_spill] sm:$0xff] }
 0x1cf   :  { %6900 = vmatpush1.bf16.msra.mxu1 %v11241_v63  ;;  %v11252_v63 = vld [vmem:[#allocation13_spill] sm:$0xff] }
 0x1d0   :  { %6902 = vmatprep.subr.bf16.mxu1 %v11242_v12  ;;  %v11253_v12 = vld [vmem:[#allocation85_spill] sm:$0xff] }
 0x1d3   :  { %6904 = vmatpush1.bf16.msra.mxu1 %v11243_v23  ;;  %v11254_v23 = vld [vmem:[#allocation14_spill] sm:$0xff] }
 0x1d4   :  { %6906 = vmatprep.subr.bf16.mxu1 %v11244_v7  ;;  %v11258_v7 = vld [vmem:[#allocation17_spill] sm:$0xff] }
 0x1d7   :  { %6908 = vmatpush1.bf16.msra.mxu1 %v11245_v32  ;;  %v11255_v32 = vand.u32 4294901760, %v9183_v16  ;;  %v11265_v16 = vld [vmem:[#allocation31_spill] sm:$0xff] }
 0x1d8   :  { %6910 = vmatprep.subr.bf16.mxu1 %v11246_v58  ;;  %v11256_v58 = vld [vmem:[#allocation15_spill] sm:$0xff] }
 0x1db   :  { %6912 = vmatpush1.bf16.msra.mxu1 %v11247_v11  ;;  %v11257_v11 = vld [vmem:[#allocation16_spill] sm:$0xff] }
 0x1dc   :  { %6914 = vmatprep.subr.bf16.mxu1 %v11248_v18 }
 0x1de   :  { %880 = vmatmul.mubr.f32.vlgmr.msra.gmra.mrb[0].mxu1 %v11249_v4 }
 0x1df   :  { %887 = vmatprep.mubr.f32.mxu1 %v11250_v9  ;;  %6916 = vmatpush1.bf16.msra.mxu1 %v11251_v21 }
 0x1e0   :  { %6918 = vmatprep.subr.bf16.mxu1 %v11252_v63 }
 0x1e2   :  { %890 = vmatmul.mubr.f32.gmra.mrb[2].mxu1 %v11253_v12 }
 0x1e3   :  { %6920 = vmatpush1.bf16.msra.mxu1 %v11254_v23  ;;  %1011 = vmatprep.mubr.f32.mxu1 %v11255_v32  ;;  %v11266_v32 = vld [vmem:[#allocation32_spill] sm:$0xff] }
 0x1e4   :  { %6922 = vmatprep.subr.bf16.mxu1 %v11256_v58 }
 0x1e7   :  { %6924 = vmatpush1.bf16.msra.mxu1 %v11257_v11 }
 0x1e8   :  { %6926 = vmatprep.subr.bf16.mxu1 %v11258_v7 }
 0x1eb   :  { %6928 = vmatpush1.bf16.msra.mxu1 %v11259_v46 }
 0x1ec   :  { %6930 = vmatprep.subr.bf16.mxu1 %v11260_v43 }
 0x1ef   :  { %6932 = vmatpush1.bf16.msra.mxu1 %v11261_v36 }
 0x1f0   :  { %6934 = vmatprep.subr.bf16.mxu1 %v11262_v55 }
 0x1f3   :  { %6936 = vmatpush1.bf16.msra.mxu1 %v11263_v53 }
 0x1f4   :  { %6938 = vmatprep.subr.bf16.mxu1 %v11264_v24 }
 0x1f7   :  { %6940 = vmatpush1.bf16.msra.mxu1 %v11265_v16 }
 0x1f8   :  { %6942 = vmatprep.subr.bf16.mxu1 %v11266_v32  ;;  %v11278_v32 = vand.u32 4294901760, %v11277_v6  ;;  %v11284_v6 = vand.u32 4294901760, %v11249_v4 }
 0x1fa   :  { %v9558_v16 = vpack.c.bf16 %v11278_v32, %v11276_v47  ;;  %v11285_v47 = vand.u32 4294901760, %v11250_v9  ;;  %v11297_v9 = vand.u32 4294901760, %v9158_v54  ;;  %v11306_v54 = vand.u32 4294901760, %v9242_v13 }
 0x1fb   :  { %6944 = vmatpush1.bf16.msra.mxu1 %v11267_v45  ;;  %v11279_v45 = vld [vmem:[#allocation43_spill] sm:$0xff]  ;;  %v11315_v13 = vand.u32 4294901760, %v9318_v10  ;;  %v11323_v10 = vand.u32 4294901760, %v9366_v20  ;;  %v11336_v20 = vld [vmem:[#allocation49_spill] sm:$0xff] }
 0x1fc   :  { %6946 = vmatprep.subr.bf16.mxu1 %v11268_v28 }
 0x1ff   :  { %6948 = vmatpush1.bf16.msra.mxu1 %v11269_v8  ;;  %v11280_v8 = vand.u32 4294901760, %v9020_v14  ;;  %v11287_v14 = vand.u32 4294901760, %v9045_v26  ;;  %v11293_v26 = vand.u32 4294901760, %v9101_v31  ;;  %v11299_v31 = vand.u32 4294901760, %v9171_v41 }
 0x200   :  { %6950 = vmatprep.subr.bf16.mxu1 %v11270_v35  ;;  %v11281_v35 = vand.u32 4294901760, %v9025_v59  ;;  %v11286_v59 = vand.u32 4294901760, %v9040_v25  ;;  %v11292_v25 = vand.u32 4294901760, %v9092_v29  ;;  %v11300_v29 = vand.u32 4294901760, %v9180_v15 }
 0x201   :  { %v11308_v15 = vand.u32 4294901760, %v9266_v57  ;;  %v11309_v41 = vand.u32 4294901760, %v9272_v60  ;;  %v11317_v57 = vand.u32 4294901760, %v9328_v51  ;;  %v11318_v60 = vand.u32 4294901760, %v9333_v17  ;;  %v11326_v51 = vld [vmem:[#allocation45_spill] sm:$0xff] }
 0x202   :  { %v9565_v28 = vpack.c.bf16 %v11281_v35, %v11280_v8  ;;  %v9583_v42 = vpack.c.bf16 %v11287_v14, %v11286_v59  ;;  %v9600_v8 = vpack.c.bf16 %v11293_v26, %v11292_v25  ;;  %v11327_v17 = vand.u32 4294901760, %v11326_v51 }
 0x203   :  { %6952 = vmatpush1.bf16.msra.mxu1 %v11271_v44  ;;  %v9642_v14 = vpack.c.bf16 %v11309_v41, %v11308_v15  ;;  %v11343_v41 = vld [vmem:[#allocation52_spill] sm:$0xff] }
 0x204   :  { %6954 = vmatprep.subr.bf16.mxu1 %v11272_v22 }
 0x205   :  { %11310 = vst [vmem:[#allocation13_spill] sm:$0xff] %v9642_v14 }
 0x207   :  { %6956 = vmatpush1.bf16.msra.mxu1 %v11273_v30  ;;  %v11282_v30 = vand.u32 4294901760, %v9030_v5  ;;  %v11288_v5 = vand.u32 4294901760, %v9058_v56  ;;  %v11294_v56 = vand.u32 4294901760, %v9114_v3  ;;  %v11303_v3 = vand.u32 4294901760, %v9217_v27 }
 0x208   :  { %6958 = vmatprep.subr.bf16.mxu1 %v11274_v2  ;;  %v11283_v2 = vand.u32 4294901760, %v9035_v50  ;;  %v11289_v50 = vand.u32 4294901760, %v9066_v37  ;;  %v11295_v37 = vand.u32 4294901760, %v9137_v0  ;;  %v11302_v0 = vand.u32 4294901760, %v9212_v33 }
 0x209   :  { %v11311_v27 = vand.u32 4294901760, %v11234_v49  ;;  %v11312_v33 = vand.u32 4294901760, %v11235_v1  ;;  %v11320_v49 = vand.u32 4294901760, %v9353_v38  ;;  %v11321_v1 = vand.u32 4294901760, %v9358_v40  ;;  %v11331_v40 = vld [vmem:[#allocation47_spill] sm:$0xff] }
 0x20a   :  { %v9572_v22 = vpack.c.bf16 %v11283_v2, %v11282_v30  ;;  %v9590_v35 = vpack.c.bf16 %v11289_v50, %v11288_v5  ;;  %v11290_v2 = vand.u32 4294901760, %v11253_v12  ;;  %v11291_v30 = vld [vmem:[#allocation82_spill] sm:$0xff]  ;;  %v9607_v4 = vpack.c.bf16 %v11295_v37, %v11294_v56 }
 0x20b   :  { %6960 = vmatpush1.bf16.msra.mxu1 %v11279_v45  ;;  %v11296_v12 = vand.u32 4294901760, %v9153_v52  ;;  %v11305_v52 = vand.u32 4294901760, %v9229_v48  ;;  %v9649_v5 = vpack.c.bf16 %v11312_v33, %v11311_v27  ;;  %v11314_v48 = vand.u32 4294901760, %v9304_v19  ;;  %v11328_v56 = vld [vmem:[#allocation46_spill] sm:$0xff] }
 0x20c   :  { %6962 = vmatprep.subr.bf16.mxu1 %v9558_v16  ;;  %v9670_v25 = vpack.c.bf16 %v11321_v1, %v11320_v49  ;;  %v11324_v19 = vand.u32 4294901760, %v9371_v62  ;;  %v11329_v37 = vand.u32 4294901760, %v11328_v56  ;;  %v11332_v38 = vand.u32 4294901760, %v11331_v40  ;;  %v11351_v1 = vld [vmem:[#allocation56_spill] sm:$0xff]  ;;  %v11358_v40 = vld [vmem:[#allocation61_spill] sm:$0xff] }
 0x20d   :  { %v9614_v32 = vpack.c.bf16 %v11297_v9, %v11296_v12  ;;  %v9635_v59 = vpack.c.bf16 %v11306_v54, %v11305_v52  ;;  %11313 = vst [vmem:[#allocation85_spill] sm:$0xff] %v9649_v5  ;;  %v9656_v50 = vpack.c.bf16 %v11315_v13, %v11314_v48  ;;  %v11333_v9 = vld [vmem:[#allocation48_spill] sm:$0xff]  ;;  %v11337_v62 = vand.u32 4294901760, %v11336_v20  ;;  %v11341_v54 = vld [vmem:[#allocation51_spill] sm:$0xff]  ;;  %v11346_v48 = vld [vmem:[#allocation53_spill] sm:$0xff] }
 0x20e   :  { %1015 = vmatmul.mubr.f32.vlgmr.msra.gmra.mrb[0].mxu1 %v11284_v6  ;;  %v9621_v6 = vpack.c.bf16 %v11300_v29, %v11299_v31  ;;  %11322 = vst [vmem:[#allocation16_spill] sm:$0xff] %v9670_v25  ;;  %v9677_v26 = vpack.c.bf16 %v11324_v19, %v11323_v10  ;;  %v9684_v12 = vpack.c.bf16 %v11329_v37, %v11327_v17  ;;  %v11334_v31 = vand.u32 4294901760, %v11333_v9  ;;  %v11353_v19 = vld [vmem:[#allocation58_spill] sm:$0xff]  ;;  %v11356_v56 = vld [vmem:[#allocation60_spill] sm:$0xff]  ;;  %v11363_v20 = vld [vmem:[#allocation33_spill] sm:$0xff] }
 0x20f   :  { %1023 = vmatprep.mubr.f32.mxu1 %v11285_v47  ;;  %6964 = vmatpush1.bf16.msra.mxu1 %v9565_v28  ;;  %11298 = vst [vmem:[#allocation11_spill] sm:$0xff] %v9614_v32  ;;  %v9628_v47 = vpack.c.bf16 %v11303_v3, %v11302_v0  ;;  %11307 = vst [vmem:[#allocation12_spill] sm:$0xff] %v9635_v59  ;;  %v11338_v0 = vld [vmem:[#allocation50_spill] sm:$0xff]  ;;  %v11342_v15 = vand.u32 4294901760, %v11341_v54  ;;  %v11344_v27 = vand.u32 4294901760, %v11343_v41  ;;  %v11347_v13 = vand.u32 4294901760, %v11346_v48 }
 0x210   :  { %6966 = vmatprep.subr.bf16.mxu1 %v9572_v22  ;;  %11301 = vst [vmem:[#allocation81_spill] sm:$0xff] %v9621_v6  ;;  %11316 = vst [vmem:[#allocation14_spill] sm:$0xff] %v9656_v50  ;;  %v9691_v29 = vpack.c.bf16 %v11334_v31, %v11332_v38  ;;  %v11339_v3 = vand.u32 4294901760, %v11338_v0  ;;  %v11352_v10 = vand.u32 4294901760, %v11351_v1  ;;  %v11354_v51 = vand.u32 4294901760, %v11353_v19  ;;  %v11361_v31 = vld [vmem:[#allocation31_spill] sm:$0xff] }
 0x211   :  { %11304 = vst [vmem:[#allocation86_spill] sm:$0xff] %v9628_v47  ;;  %11325 = vst [vmem:[#allocation17_spill] sm:$0xff] %v9677_v26  ;;  %v9705_v33 = vpack.c.bf16 %v11344_v27, %v11342_v15  ;;  %v11357_v37 = vand.u32 4294901760, %v11356_v56  ;;  %v11359_v38 = vand.u32 4294901760, %v11358_v40  ;;  %v11365_v0 = vld [vmem:[#allocation35_spill] sm:$0xff]  ;;  %v11367_v54 = vld [vmem:[#allocation38_spill] sm:$0xff] }
 0x212   :  { %1027 = vmatmul.mubr.f32.gmra.mrb[2].mxu1 %v11290_v2  ;;  %v9663_v2 = vpack.c.bf16 %v11318_v60, %v11317_v57  ;;  %11330 = vst [vmem:[#allocation18_spill] sm:$0xff] %v9684_v12  ;;  %11335 = vst [vmem:[#allocation26_spill] sm:$0xff] %v9691_v29  ;;  %v9698_v52 = vpack.c.bf16 %v11339_v3, %v11337_v62  ;;  %v11348_v57 = vld [vmem:[#allocation55_spill] sm:$0xff]  ;;  %v9719_v17 = vpack.c.bf16 %v11354_v51, %v11352_v10  ;;  %v11364_v62 = vld [vmem:[#allocation34_spill] sm:$0xff] }
 0x213   :  { %6968 = vmatpush1.bf16.msra.mxu1 %v9583_v42  ;;  %1242 = vmatprep.mubr.f32.mxu1 %v11291_v30  ;;  %11345 = vst [vmem:[#allocation39_spill] sm:$0xff] %v9705_v33  ;;  %v11349_v60 = vand.u32 4294901760, %v11348_v57  ;;  %v9726_v9 = vpack.c.bf16 %v11359_v38, %v11357_v37  ;;  %v11366_v3 = vld [vmem:[#allocation36_spill] sm:$0xff]  ;;  %v11368_v15 = vld [vmem:[#allocation41_spill] sm:$0xff]  ;;  %v11369_v41 = vld [vmem:[#allocation42_spill] sm:$0xff] }
 0x214   :  { %6970 = vmatprep.subr.bf16.mxu1 %v9590_v35  ;;  %11319 = vst [vmem:[#allocation15_spill] sm:$0xff] %v9663_v2  ;;  %11340 = vst [vmem:[#allocation37_spill] sm:$0xff] %v9698_v52  ;;  %v11370_v48 = vld [vmem:[#allocation76_spill] sm:$0xff] }
 0x215   :  { %v9712_v49 = vpack.c.bf16 %v11349_v60, %v11347_v13  ;;  %11355 = vst [vmem:[#allocation43_spill] sm:$0xff] %v9719_v17  ;;  %11360 = vst [vmem:[#allocation82_spill] sm:$0xff] %v9726_v9  ;;  %v11372_v60 = vld [vmem:[#allocation79_spill] sm:$0xff]  ;;  %v11376_v40 = vld [vmem:[#allocation84_spill] sm:$0xff] }
 0x217   :  { %6972 = vmatpush1.bf16.msra.mxu1 %v9600_v8  ;;  %11350 = vst [vmem:[#allocation40_spill] sm:$0xff] %v9712_v49 }
 0x218   :  { %6974 = vmatprep.subr.bf16.mxu1 %v9607_v4 }
 0x21b   :  { %6976 = vmatpush1.bf16.msra.mxu1 %v9614_v32 }
 0x21c   :  { %6978 = vmatprep.subr.bf16.mxu1 %v9621_v6 }
 0x21f   :  { %6980 = vmatpush1.bf16.msra.mxu1 %v9628_v47 }
 0x220   :  { %6982 = vmatprep.subr.bf16.mxu1 %v9635_v59 }
 0x223   :  { %6984 = vmatpush1.bf16.msra.mxu1 %v9642_v14 }
 0x224   :  { %6986 = vmatprep.subr.bf16.mxu1 %v9649_v5 }
 0x227   :  { %6988 = vmatpush1.bf16.msra.mxu1 %v9656_v50 }
 0x228   :  { %6990 = vmatprep.subr.bf16.mxu1 %v9663_v2 }
 0x22b   :  { %6992 = vmatpush1.bf16.msra.mxu1 %v9670_v25 }
 0x22c   :  { %6994 = vmatprep.subr.bf16.mxu1 %v9677_v26 }
 0x22f   :  { %6996 = vmatpush1.bf16.msra.mxu1 %v9684_v12 }
 0x230   :  { %6998 = vmatprep.subr.bf16.mxu1 %v9691_v29 }
 0x233   :  { %7000 = vmatpush1.bf16.msra.mxu1 %v9698_v52 }
 0x234   :  { %7002 = vmatprep.subr.bf16.mxu1 %v9705_v33 }
 0x237   :  { %7004 = vmatpush1.bf16.msra.mxu1 %v9712_v49 }
 0x238   :  { %7006 = vmatprep.subr.bf16.mxu1 %v9719_v17 }
 0x23b   :  { %7008 = vmatpush1.bf16.msra.mxu1 %v9726_v9 }
 0x23c   :  { %7010 = vmatprep.subr.bf16.mxu1 %v11248_v18 }
 0x23e   :  { %1244 = vmatmul.mubr.f32.vlgmr.msra.gmra.mrb[0].mxu1 %v9140_v34 }
 0x23f   :  { %1250 = vmatprep.mubr.f32.mxu1 %v9201_v61  ;;  %7012 = vmatpush1.bf16.msra.mxu1 %v11251_v21 }
 0x240   :  { %7014 = vmatprep.subr.bf16.mxu1 %v11252_v63 }
 0x242   :  { %1252 = vmatmul.mubr.f32.gmra.mrb[2].mxu1 %v9186_v39 }
 0x243   :  { %7016 = vmatpush1.bf16.msra.mxu1 %v11254_v23  ;;  %1371 = vmatprep.mubr.f32.mxu1 %v11291_v30  ;;  %v11362_v30 = vld [vmem:[#allocation32_spill] sm:$0xff] }
 0x244   :  { %7018 = vmatprep.subr.bf16.mxu1 %v11256_v58 }
 0x247   :  { %7020 = vmatpush1.bf16.msra.mxu1 %v11257_v11 }
 0x248   :  { %7022 = vmatprep.subr.bf16.mxu1 %v11258_v7 }
 0x24b   :  { %7024 = vmatpush1.bf16.msra.mxu1 %v11259_v46 }
 0x24c   :  { %7026 = vmatprep.subr.bf16.mxu1 %v11260_v43 }
 0x24f   :  { %7028 = vmatpush1.bf16.msra.mxu1 %v11261_v36 }
 0x250   :  { %7030 = vmatprep.subr.bf16.mxu1 %v11262_v55 }
 0x253   :  { %7032 = vmatpush1.bf16.msra.mxu1 %v11263_v53 }
 0x254   :  { %7034 = vmatprep.subr.bf16.mxu1 %v11264_v24 }
 0x257   :  { %7036 = vmatpush1.bf16.msra.mxu1 %v11361_v31 }
 0x258   :  { %7038 = vmatprep.subr.bf16.mxu1 %v11362_v30 }
 0x25b   :  { %7040 = vmatpush1.bf16.msra.mxu1 %v11363_v20 }
 0x25c   :  { %7042 = vmatprep.subr.bf16.mxu1 %v11364_v62 }
 0x25f   :  { %7044 = vmatpush1.bf16.msra.mxu1 %v11365_v0 }
 0x260   :  { %7046 = vmatprep.subr.bf16.mxu1 %v11366_v3 }
 0x263   :  { %7048 = vmatpush1.bf16.msra.mxu1 %v11271_v44 }
 0x264   :  { %7050 = vmatprep.subr.bf16.mxu1 %v11367_v54 }
 0x267   :  { %7052 = vmatpush1.bf16.msra.mxu1 %v11368_v15 }
 0x268   :  { %7054 = vmatprep.subr.bf16.mxu1 %v11369_v41 }
 0x26b   :  { %7056 = vmatpush1.bf16.msra.mxu1 %v11279_v45 }
 0x26e   :  { %1373 = vmatmul.mubr.f32.vlgmr.msra.gmra.mrb[0].mxu1 %v9140_v34 }
 0x26f   :  { %1379 = vmatprep.mubr.f32.mxu1 %v9201_v61  ;;  %v11374_v61 = vld [vmem:[#allocation83_spill] sm:$0xff] }
 0x272   :  { %1381 = vmatmul.mubr.f32.gmra.mrb[2].mxu1 %v9186_v39 }
 0x341   :  { %v1374_v27 = vpop.f32.mrb[0].mxu1 }
 0x342   :  { %v9762_v13 = vsub.f32 %v11370_v48, %v1374_v27  ;;  %v1376_v57 = vpop.f32.mrb[1].mxu1 }
 0x343   :  { %v9765_v1 = vsub.f32 %v11372_v60, %v1376_v57 }
 0x344   :  { %11371 = vst [vmem:[#allocation45_spill] sm:$0xff] %v9762_v13  ;;  %v1391_v10 = vmul.f32 %v9762_v13, %v9762_v13 }
 0x345   :  { %11373 = vst [vmem:[#allocation46_spill] sm:$0xff] %v9765_v1  ;;  %v1392_v19 = vmul.f32 %v9765_v1, %v9765_v1  ;;  %v1382_v51 = vpop.f32.mrb[2].mxu1 }
 0x346   :  { %v9771_v34 = vand.u32 4294901760, %v1391_v10  ;;  %v9774_v56 = vsub.f32 %v11374_v61, %v1382_v51  ;;  %v1384_v39 = vpop.f32.mrb[3].mxu1 }
 0x347   :  { %v1396_v37 = vsel %vm159_vm1, %v1392_v19, 0  ;;  %v9778_v38 = vsub.f32 %v11376_v40, %v1384_v39 }
 0x348   :  { %11375 = vst [vmem:[#allocation47_spill] sm:$0xff] %v9774_v56  ;;  %v9781_v27 = vsub.f32 %v1391_v10, %v9771_v34  ;;  %v9783_v48 = vand.u32 4294901760, %v1396_v37  ;;  %v1393_v57 = vmul.f32 %v9774_v56, %v9774_v56 }
 0x349   :  { %11377 = vst [vmem:[#allocation48_spill] sm:$0xff] %v9778_v38  ;;  %v1394_v60 = vmul.f32 %v9778_v38, %v9778_v38 }
 0x34a   :  { %v11013_v51 = vand.u32 4294901760, %v9781_v27  ;;  %v9791_v61 = vsub.f32 %v1396_v37, %v9783_v48  ;;  %v9793_v19 = vand.u32 4294901760, %v1393_v57 }
 0x34b   :  { %v1399_v39 = vsel %vm159_vm1, %v1394_v60, 0 }
 0x34c   :  { %v9797_v10 = vsub.f32 %v1393_v57, %v9793_v19  ;;  %v9799_v40 = vand.u32 4294901760, %v1399_v39  ;;  %v11016_v1 = vand.u32 4294901760, %v9791_v61  ;;  %v1522_v38 = vsub.f32 %v9781_v27, %v11013_v51  ;;  %v11378_v51 = vld [vmem:[#allocation77_spill] sm:$0xff] }
 0x34e   :  { %v9806_v56 = vsub.f32 %v1399_v39, %v9799_v40  ;;  %v1516_v37 = vsub.f32 %v9791_v61, %v11016_v1  ;;  %v11019_v60 = vand.u32 4294901760, %v9797_v10  ;;  %v1523_v9 = vand.u32 4294901760, %v1522_v38  ;;  %v11379_v1 = vld [vmem:[#allocation78_spill] sm:$0xff]  ;;  %v11381_v38 = vld [vmem:[#allocation87_spill] sm:$0xff] }
 0x350   :  { %v1517_v13 = vand.u32 4294901760, %v1516_v37  ;;  %v11020_v57 = vand.u32 4294901760, %v9806_v56  ;;  %v1538_v17 = vsub.f32 %v9797_v10, %v11019_v60  ;;  %v11380_v37 = vld [vmem:[#allocation80_spill] sm:$0xff]  ;;  %v11383_v60 = vld [vmem:[#allocation91_spill] sm:$0xff] }
 0x352   :  { %1518 = vmatprep.mubr.f32.mxu0 %v1517_v13  ;;  %v1532_v39 = vsub.f32 %v9806_v56, %v11020_v57  ;;  %v1539_v33 = vand.u32 4294901760, %v1538_v17  ;;  %v11382_v13 = vld [vmem:[#allocation90_spill] sm:$0xff]  ;;  %v11390_v17 = vld [vmem:[#allocation29_spill] sm:$0xff] }
 0x353   :  { %1524 = vmatmul.mubr.f32.vlgmr.msra.gmra.mrb[4].mxu0 %v1523_v9  ;;  %v11384_v57 = vld [vmem:[#allocation22_spill] sm:$0xff]  ;;  %v11385_v9 = vld [vmem:[#allocation92_spill] sm:$0xff] }
 0x354   :  { %7108 = vmatpush1.bf16.msra.mxu0 %v11378_v51  ;;  %v1533_v49 = vand.u32 4294901760, %v1532_v39  ;;  %v11386_v39 = vld [vmem:[#allocation23_spill] sm:$0xff]  ;;  %v2586_v51 = vld [vmem:[#allocation2 + $0x58] sm:$0xff] }
 0x355   :  { %7110 = vmatprep.subr.bf16.mxu0 %v11379_v1  ;;  %v11387_v1 = vld [vmem:[#allocation24_spill] sm:$0xff] }
 0x356   :  { %1534 = vmatprep.mubr.f32.mxu0 %v1533_v49  ;;  %v11388_v49 = vld [vmem:[#allocation27_spill] sm:$0xff] }
 0x357   :  { %1540 = vmatmul.mubr.f32.gmra.mrb[6].mxu0 %v1539_v33  ;;  %v11389_v33 = vld [vmem:[#allocation28_spill] sm:$0xff] }
 0x358   :  { %7112 = vmatpush1.bf16.msra.mxu0 %v11380_v37  ;;  %1851 = vmatprep.mubr.f32.mxu0 %v9783_v48  ;;  %v11391_v37 = vld [vmem:[#allocation30_spill] sm:$0xff] }
 0x359   :  { %7114 = vmatprep.subr.bf16.mxu0 %v11381_v38  ;;  %v11392_v38 = vld [vmem:[#allocation93_spill] sm:$0xff] }
 0x35c   :  { %7116 = vmatpush1.bf16.msra.mxu0 %v11382_v13  ;;  %v11393_v13 = vld [vmem:[#allocation94_spill] sm:$0xff] }
 0x35d   :  { %7118 = vmatprep.subr.bf16.mxu0 %v11383_v60  ;;  %v11394_v60 = vld [vmem:[#allocation54_spill] sm:$0xff] }
 0x360   :  { %7120 = vmatpush1.bf16.msra.mxu0 %v11384_v57  ;;  %v11395_v57 = vld [vmem:[#allocation57_spill] sm:$0xff] }
 0x361   :  { %7122 = vmatprep.subr.bf16.mxu0 %v11385_v9  ;;  %v11396_v9 = vld [vmem:[#allocation59_spill] sm:$0xff] }
 0x364   :  { %7124 = vmatpush1.bf16.msra.mxu0 %v11386_v39  ;;  %v11397_v39 = vld [vmem:[#allocation62_spill] sm:$0xff] }
 0x365   :  { %7126 = vmatprep.subr.bf16.mxu0 %v11387_v1  ;;  %v11398_v1 = vld [vmem:[#allocation63_spill] sm:$0xff] }
 0x368   :  { %7128 = vmatpush1.bf16.msra.mxu0 %v11388_v49  ;;  %v11399_v49 = vld [vmem:[#allocation65_spill] sm:$0xff] }
 0x369   :  { %7130 = vmatprep.subr.bf16.mxu0 %v11389_v33  ;;  %v11400_v33 = vld [vmem:[#allocation66_spill] sm:$0xff] }
 0x36c   :  { %7132 = vmatpush1.bf16.msra.mxu0 %v11390_v17  ;;  %v11401_v17 = vld [vmem:[#allocation64_spill] sm:$0xff] }
 0x36d   :  { %7134 = vmatprep.subr.bf16.mxu0 %v11391_v37  ;;  %v11415_v37 = vld [vmem:[#allocation106_spill] sm:$0xff] }
 0x370   :  { %7136 = vmatpush1.bf16.msra.mxu0 %v11392_v38  ;;  %v11413_v38 = vld [vmem:[#allocation88_spill] sm:$0xff] }
 0x371   :  { %7138 = vmatprep.subr.bf16.mxu0 %v11393_v13  ;;  %v11402_v13 = vld [vmem:[#allocation95_spill] sm:$0xff] }
 0x374   :  { %7140 = vmatpush1.bf16.msra.mxu0 %v11394_v60  ;;  %v11403_v60 = vld [vmem:[#allocation96_spill] sm:$0xff] }
 0x375   :  { %7142 = vmatprep.subr.bf16.mxu0 %v11395_v57  ;;  %v11410_v57 = vld [vmem:[#allocation103_spill] sm:$0xff] }
 0x378   :  { %7144 = vmatpush1.bf16.msra.mxu0 %v11396_v9  ;;  %v11404_v9 = vld [vmem:[#allocation97_spill] sm:$0xff] }
 0x379   :  { %7146 = vmatprep.subr.bf16.mxu0 %v11397_v39  ;;  %v11409_v39 = vld [vmem:[#allocation102_spill] sm:$0xff] }
 0x37c   :  { %7148 = vmatpush1.bf16.msra.mxu0 %v11398_v1  ;;  %v11405_v1 = vld [vmem:[#allocation98_spill] sm:$0xff] }
 0x37d   :  { %7150 = vmatprep.subr.bf16.mxu0 %v11399_v49  ;;  %v11406_v49 = vld [vmem:[#allocation99_spill] sm:$0xff] }
 0x380   :  { %7152 = vmatpush1.bf16.msra.mxu0 %v11400_v33  ;;  %v11407_v33 = vld [vmem:[#allocation100_spill] sm:$0xff] }
 0x381   :  { %7154 = vmatprep.subr.bf16.mxu0 %v11401_v17  ;;  %v11408_v17 = vld [vmem:[#allocation101_spill] sm:$0xff] }
 0x383   :  { %1853 = vmatmul.mubr.f32.vlgmr.msra.gmra.mrb[4].mxu0 %v9771_v34 }
 0x384   :  { %1859 = vmatprep.mubr.f32.mxu0 %v9799_v40  ;;  %7156 = vmatpush1.bf16.msra.mxu0 %v11402_v13  ;;  %v11411_v13 = vld [vmem:[#allocation104_spill] sm:$0xff] }
 0x385   :  { %7158 = vmatprep.subr.bf16.mxu0 %v11403_v60  ;;  %v11412_v60 = vld [vmem:[#allocation105_spill] sm:$0xff] }
 0x387   :  { %1861 = vmatmul.mubr.f32.gmra.mrb[6].mxu0 %v9793_v19 }
 0x388   :  { %7160 = vmatpush1.bf16.msra.mxu0 %v11404_v9  ;;  %2029 = vmatprep.mubr.f32.mxu0 %v9791_v61  ;;  %v11414_v9 = vld [vmem:[#allocation89_spill] sm:$0xff] }
 0x389   :  { %7162 = vmatprep.subr.bf16.mxu0 %v11405_v1  ;;  %v11416_v1 = vld [vmem:[#allocation107_spill] sm:$0xff] }
 0x38c   :  { %7164 = vmatpush1.bf16.msra.mxu0 %v11406_v49  ;;  %v11417_v49 = vld [vmem:[#allocation108_spill] sm:$0xff] }
 0x38d   :  { %7166 = vmatprep.subr.bf16.mxu0 %v11407_v33  ;;  %v11418_v33 = vld [vmem:[#allocation67_spill] sm:$0xff] }
 0x390   :  { %7168 = vmatpush1.bf16.msra.mxu0 %v11408_v17  ;;  %v11419_v17 = vld [vmem:[#allocation68_spill] sm:$0xff] }
 0x391   :  { %7170 = vmatprep.subr.bf16.mxu0 %v11409_v39  ;;  %v11420_v39 = vld [vmem:[#allocation69_spill] sm:$0xff] }
 0x394   :  { %7172 = vmatpush1.bf16.msra.mxu0 %v11410_v57  ;;  %v11421_v57 = vld [vmem:[#allocation70_spill] sm:$0xff] }
 0x395   :  { %7174 = vmatprep.subr.bf16.mxu0 %v11411_v13  ;;  %v11422_v13 = vld [vmem:[#allocation71_spill] sm:$0xff] }
 0x398   :  { %7176 = vmatpush1.bf16.msra.mxu0 %v11412_v60  ;;  %v11423_v60 = vld [vmem:[#allocation72_spill] sm:$0xff] }
 0x399   :  { %7178 = vmatprep.subr.bf16.mxu0 %v11413_v38  ;;  %v11424_v38 = vld [vmem:[#allocation73_spill] sm:$0xff] }
 0x39c   :  { %7180 = vmatpush1.bf16.msra.mxu0 %v11414_v9  ;;  %v2584_v9 = vld [vmem:[#allocation2 + $0x48] sm:$0xff] }
 0x39d   :  { %7182 = vmatprep.subr.bf16.mxu0 %v11415_v37  ;;  %v2581_v37 = vld [vmem:[#allocation2 + $0x30] sm:$0xff] }
 0x3a0   :  { %7184 = vmatpush1.bf16.msra.mxu0 %v11416_v1  ;;  %v2579_v1 = vld [vmem:[#allocation2 + $0x20] sm:$0xff] }
 0x3a1   :  { %7186 = vmatprep.subr.bf16.mxu0 %v11417_v49 }
 0x3a4   :  { %7188 = vmatpush1.bf16.msra.mxu0 %v11418_v33 }
 0x3a5   :  { %7190 = vmatprep.subr.bf16.mxu0 %v11419_v17  ;;  %v2582_v17 = vld [vmem:[#allocation2 + $0x38] sm:$0xff] }
 0x3a8   :  { %7192 = vmatpush1.bf16.msra.mxu0 %v11420_v39  ;;  %v2580_v39 = vld [vmem:[#allocation2 + $0x28] sm:$0xff] }
 0x3a9   :  { %7194 = vmatprep.subr.bf16.mxu0 %v11421_v57  ;;  %v2575_v57 = vld [vmem:[#allocation2] sm:$0xff]  ;;  %v7349_v49 = vpack.c.bf16 %v2582_v17, %v2580_v39 }
 0x3aa   :  { %v2587_v17 = vld [vmem:[#allocation2 + $0x60] sm:$0xff] }
 0x3ac   :  { %7196 = vmatpush1.bf16.msra.mxu0 %v11422_v13  ;;  %v11425_v13 = vand.u32 4294901760, %v9791_v61 }
 0x3ad   :  { %7198 = vmatprep.subr.bf16.mxu0 %v11423_v60  ;;  %v2578_v60 = vld [vmem:[#allocation2 + $0x18] sm:$0xff] }
 0x3b0   :  { %7200 = vmatpush1.bf16.msra.mxu0 %v11424_v38  ;;  %v2576_v38 = vld [vmem:[#allocation2 + $0x8] sm:$0xff] }
 0x3b1   :  { %7202 = vmatprep.subr.bf16.mxu0 %v11248_v18  ;;  %v7345_v61 = vpack.c.bf16 %v2578_v60, %v2576_v38  ;;  %v2585_v60 = vld [vmem:[#allocation2 + $0x50] sm:$0xff]  ;;  %v2588_v38 = vld [vmem:[#allocation2 + $0x68] sm:$0xff] }
 0x3b3   :  { %2032 = vmatmul.mubr.f32.vlgmr.msra.gmra.mrb[4].mxu0 %v9781_v27  ;;  %7346 = vmatprep.subr.bf16.mxu1 %v7345_v61  ;;  %v2589_v61 = vld [vmem:[#allocation2 + $0x70] sm:$0xff] }
 0x3b4   :  { %2039 = vmatprep.mubr.f32.mxu0 %v9806_v56  ;;  %7204 = vmatpush1.bf16.msra.mxu0 %v11251_v21 }
 0x3b5   :  { %7206 = vmatprep.subr.bf16.mxu0 %v11252_v63 }
 0x3b7   :  { %2042 = vmatmul.mubr.f32.gmra.mrb[6].mxu0 %v9797_v10 }
 0x3b8   :  { %7208 = vmatpush1.bf16.msra.mxu0 %v11254_v23  ;;  %2163 = vmatprep.mubr.f32.mxu0 %v11425_v13  ;;  %v2577_v13 = vld [vmem:[#allocation2 + $0x10] sm:$0xff] }
 0x3b9   :  { %7210 = vmatprep.subr.bf16.mxu0 %v11256_v58  ;;  %v7347_v33 = vpack.c.bf16 %v2577_v13, %v2575_v57  ;;  %v2595_v13 = vld [vmem:[#allocation2 + $0xa0] sm:$0xff] }
 0x3bb   :  { %7348 = vmatpush1.bf16.msra.mxu1 %v7347_v33  ;;  %v2593_v33 = vld [vmem:[#allocation2 + $0x90] sm:$0xff] }
 0x3bc   :  { %7212 = vmatpush1.bf16.msra.mxu0 %v11257_v11  ;;  %7350 = vmatprep.subr.bf16.mxu1 %v7349_v49  ;;  %v2591_v49 = vld [vmem:[#allocation2 + $0x80] sm:$0xff] }
 0x3bd   :  { %7214 = vmatprep.subr.bf16.mxu0 %v11258_v7 }
 0x3c0   :  { %7216 = vmatpush1.bf16.msra.mxu0 %v11259_v46 }
 0x3c1   :  { %7218 = vmatprep.subr.bf16.mxu0 %v11260_v43  ;;  %v2590_v43 = vld [vmem:[#allocation2 + $0x78] sm:$0xff] }
 0x3c2   :  { %v7357_v39 = vpack.c.bf16 %v2590_v43, %v2588_v38 }
 0x3c4   :  { %7220 = vmatpush1.bf16.msra.mxu0 %v11261_v36  ;;  %v7353_v36 = vpack.c.bf16 %v2586_v51, %v2584_v9  ;;  %v7359_v51 = vpack.c.bf16 %v2589_v61, %v2587_v17  ;;  %v11428_v17 = vand.u32 4294901760, %v9797_v10  ;;  %v11431_v10 = vld [vmem:[#allocation43_spill] sm:$0xff]  ;;  %v11432_v61 = vld [vmem:[#allocation82_spill] sm:$0xff] }
 0x3c5   :  { %7222 = vmatprep.subr.bf16.mxu0 %v11262_v55  ;;  %v7351_v55 = vpack.c.bf16 %v2581_v37, %v2579_v1  ;;  %v2592_v1 = vld [vmem:[#allocation2 + $0x88] sm:$0xff]  ;;  %v2594_v37 = vld [vmem:[#allocation2 + $0x98] sm:$0xff] }
 0x3c6   :  { %v7361_v9 = vpack.c.bf16 %v2594_v37, %v2592_v1  ;;  %v11433_v1 = vld [vmem:[#allocation19_spill] sm:$0xff]  ;;  %v11434_v37 = vld [vmem:[#allocation20_spill] sm:$0xff] }
 0x3c7   :  { %7352 = vmatpush1.bf16.msra.mxu1 %v7351_v55  ;;  %v2598_v55 = vld [vmem:[#allocation2 + $0xb8] sm:$0xff] }
 0x3c8   :  { %7224 = vmatpush1.bf16.msra.mxu0 %v11263_v53  ;;  %v2583_v53 = vld [vmem:[#allocation2 + $0x40] sm:$0xff]  ;;  %7354 = vmatprep.subr.bf16.mxu1 %v7353_v36  ;;  %v7363_v36 = vpack.c.bf16 %v2593_v33, %v2591_v49  ;;  %v2601_v33 = vld [vmem:[#allocation2 + $0xd0] sm:$0xff] }
 0x3c9   :  { %7226 = vmatprep.subr.bf16.mxu0 %v11264_v24  ;;  %v7355_v57 = vpack.c.bf16 %v2585_v60, %v2583_v53  ;;  %v2596_v53 = vld [vmem:[#allocation2 + $0xa8] sm:$0xff]  ;;  %v2597_v60 = vld [vmem:[#allocation2 + $0xb0] sm:$0xff]  ;;  %v2599_v49 = vld [vmem:[#allocation2 + $0xc0] sm:$0xff] }
 0x3ca   :  { %v7365_v43 = vpack.c.bf16 %v2598_v55, %v2596_v53  ;;  %v7367_v38 = vpack.c.bf16 %v2597_v60, %v2595_v13  ;;  %v7371_v53 = vpack.c.bf16 %v2601_v33, %v2599_v49  ;;  %v2604_v55 = vld [vmem:[#allocation2 + $0xe8] sm:$0xff]  ;;  %v2603_v13 = vld [vmem:[#allocation2 + $0xe0] sm:$0xff]  ;;  %v2605_v60 = vld [vmem:[#allocation2 + $0xf0] sm:$0xff] }
 0x3cb   :  { %7356 = vmatpush1.bf16.msra.mxu1 %v7355_v57  ;;  %v11426_v57 = vand.u32 4294901760, %v9781_v27  ;;  %v11430_v27 = vld [vmem:[#allocation40_spill] sm:$0xff]  ;;  %v2611_v49 = vld [vmem:[#allocation2 + $0x120] sm:$0xff]  ;;  %v2613_v33 = vld [vmem:[#allocation2 + $0x130] sm:$0xff] }
 0x3cc   :  { %7228 = vmatpush1.bf16.msra.mxu0 %v11361_v31  ;;  %7358 = vmatprep.subr.bf16.mxu1 %v7357_v39  ;;  %v11427_v39 = vand.u32 4294901760, %v9806_v56  ;;  %v11429_v56 = vld [vmem:[#allocation39_spill] sm:$0xff] }
 0x3cd   :  { %7230 = vmatprep.subr.bf16.mxu0 %v11362_v30 }
 0x3cf   :  { %7360 = vmatpush1.bf16.msra.mxu1 %v7359_v51  ;;  %v11435_v51 = vld [vmem:[#allocation21_spill] sm:$0xff] }
 0x3d0   :  { %7232 = vmatpush1.bf16.msra.mxu0 %v11363_v20  ;;  %7362 = vmatprep.subr.bf16.mxu1 %v7361_v9  ;;  %v11436_v9 = vld [vmem:[#allocation25_spill] sm:$0xff] }
 0x3d1   :  { %7234 = vmatprep.subr.bf16.mxu0 %v11364_v62 }
 0x3d3   :  { %7364 = vmatpush1.bf16.msra.mxu1 %v7363_v36  ;;  %v2606_v36 = vld [vmem:[#allocation2 + $0xf8] sm:$0xff] }
 0x3d4   :  { %7236 = vmatpush1.bf16.msra.mxu0 %v11365_v0  ;;  %7366 = vmatprep.subr.bf16.mxu1 %v7365_v43  ;;  %v7373_v43 = vpack.c.bf16 %v2606_v36, %v2604_v55  ;;  %v2616_v55 = vld [vmem:[#allocation2 + $0x148] sm:$0xff]  ;;  %v2618_v36 = vld [vmem:[#allocation2 + $0x158] sm:$0xff] }
 0x3d5   :  { %7238 = vmatprep.subr.bf16.mxu0 %v11366_v3 }
 0x3d7   :  { %7368 = vmatpush1.bf16.msra.mxu1 %v7367_v38  ;;  %v7375_v38 = vpack.c.bf16 %v2605_v60, %v2603_v13  ;;  %v2615_v13 = vld [vmem:[#allocation2 + $0x140] sm:$0xff]  ;;  %v2617_v60 = vld [vmem:[#allocation2 + $0x150] sm:$0xff] }
 0x3d8   :  { %7240 = vmatpush1.bf16.msra.mxu0 %v11271_v44 }
 0x3d9   :  { %7242 = vmatprep.subr.bf16.mxu0 %v11367_v54 }
 0x3dc   :  { %7244 = vmatpush1.bf16.msra.mxu0 %v11368_v15 }
 0x3dd   :  { %7246 = vmatprep.subr.bf16.mxu0 %v11369_v41 }
 0x3e0   :  { %7248 = vmatpush1.bf16.msra.mxu0 %v11279_v45 }
 0x3e1   :  { %7250 = vmatprep.subr.bf16.mxu0 %v9558_v16 }
 0x3e3   :  { %2167 = vmatmul.mubr.f32.vlgmr.msra.gmra.mrb[4].mxu0 %v11426_v57  ;;  %v2608_v57 = vld [vmem:[#allocation2 + $0x108] sm:$0xff] }
 0x3e4   :  { %2175 = vmatprep.mubr.f32.mxu0 %v11427_v39  ;;  %7252 = vmatpush1.bf16.msra.mxu0 %v9565_v28  ;;  %v2610_v39 = vld [vmem:[#allocation2 + $0x118] sm:$0xff] }
 0x3e5   :  { %7254 = vmatprep.subr.bf16.mxu0 %v9572_v22 }
 0x3e7   :  { %2179 = vmatmul.mubr.f32.gmra.mrb[6].mxu0 %v11428_v17  ;;  %v7377_v17 = vpack.c.bf16 %v2610_v39, %v2608_v57  ;;  %v2620_v57 = vld [vmem:[#allocation2 + $0x168] sm:$0xff]  ;;  %v2622_v39 = vld [vmem:[#allocation2 + $0x178] sm:$0xff] }
 0x3e8   :  { %7256 = vmatpush1.bf16.msra.mxu0 %v9583_v42  ;;  %2394 = vmatprep.mubr.f32.mxu0 %v9783_v48 }
 0x3e9   :  { %7258 = vmatprep.subr.bf16.mxu0 %v9590_v35 }
 0x3ec   :  { %7260 = vmatpush1.bf16.msra.mxu0 %v9600_v8 }
 0x3ed   :  { %7262 = vmatprep.subr.bf16.mxu0 %v9607_v4 }
 0x3f0   :  { %7264 = vmatpush1.bf16.msra.mxu0 %v9614_v32 }
 0x3f1   :  { %7266 = vmatprep.subr.bf16.mxu0 %v9621_v6 }
 0x3f4   :  { %7268 = vmatpush1.bf16.msra.mxu0 %v9628_v47 }
 0x3f5   :  { %7270 = vmatprep.subr.bf16.mxu0 %v9635_v59 }
 0x3f8   :  { %7272 = vmatpush1.bf16.msra.mxu0 %v9642_v14 }
 0x3f9   :  { %7274 = vmatprep.subr.bf16.mxu0 %v9649_v5 }
 0x3fc   :  { %7276 = vmatpush1.bf16.msra.mxu0 %v9656_v50 }
 0x3fd   :  { %7278 = vmatprep.subr.bf16.mxu0 %v9663_v2 }
 0x400   :  { %7280 = vmatpush1.bf16.msra.mxu0 %v9670_v25 }
 0x401   :  { %7282 = vmatprep.subr.bf16.mxu0 %v9677_v26 }
 0x404   :  { %7284 = vmatpush1.bf16.msra.mxu0 %v9684_v12 }
 0x405   :  { %7286 = vmatprep.subr.bf16.mxu0 %v9691_v29  ;;  %v11445_v29 = vld [vmem:[#allocation47_spill] sm:$0xff] }
 0x408   :  { %7288 = vmatpush1.bf16.msra.mxu0 %v9698_v52 }
 0x409   :  { %7290 = vmatprep.subr.bf16.mxu0 %v11429_v56 }
 0x40c   :  { %7292 = vmatpush1.bf16.msra.mxu0 %v11430_v27 }
 0x40d   :  { %7294 = vmatprep.subr.bf16.mxu0 %v11431_v10  ;;  %v2609_v10 = vld [vmem:[#allocation2 + $0x110] sm:$0xff] }
 0x410   :  { %7296 = vmatpush1.bf16.msra.mxu0 %v11432_v61  ;;  %v2607_v61 = vld [vmem:[#allocation2 + $0x100] sm:$0xff] }
 0x411   :  { %7298 = vmatprep.subr.bf16.mxu0 %v11248_v18  ;;  %v7379_v27 = vpack.c.bf16 %v2609_v10, %v2607_v61  ;;  %v2619_v10 = vld [vmem:[#allocation2 + $0x160] sm:$0xff]  ;;  %v2621_v61 = vld [vmem:[#allocation2 + $0x170] sm:$0xff] }
 0x413   :  { %2396 = vmatmul.mubr.f32.vlgmr.msra.gmra.mrb[4].mxu0 %v9771_v34 }
 0x414   :  { %2402 = vmatprep.mubr.f32.mxu0 %v9799_v40  ;;  %7300 = vmatpush1.bf16.msra.mxu0 %v11251_v21 }
 0x415   :  { %7302 = vmatprep.subr.bf16.mxu0 %v11252_v63 }
 0x417   :  { %2404 = vmatmul.mubr.f32.gmra.mrb[6].mxu0 %v9793_v19 }
 0x418   :  { %7304 = vmatpush1.bf16.msra.mxu0 %v11254_v23  ;;  %2523 = vmatprep.mubr.f32.mxu0 %v9783_v48  ;;  %v2600_v48 = vld [vmem:[#allocation2 + $0xc8] sm:$0xff] }
 0x419   :  { %7306 = vmatprep.subr.bf16.mxu0 %v11256_v58 }
 0x41c   :  { %7308 = vmatpush1.bf16.msra.mxu0 %v11257_v11 }
 0x41d   :  { %7310 = vmatprep.subr.bf16.mxu0 %v11258_v7 }
 0x420   :  { %7312 = vmatpush1.bf16.msra.mxu0 %v11259_v46 }
 0x421   :  { %7314 = vmatprep.subr.bf16.mxu0 %v11433_v1 }
 0x424   :  { %7316 = vmatpush1.bf16.msra.mxu0 %v11434_v37 }
 0x425   :  { %7318 = vmatprep.subr.bf16.mxu0 %v11435_v51 }
 0x428   :  { %7320 = vmatpush1.bf16.msra.mxu0 %v11436_v9 }
 0x429   :  { %7322 = vmatprep.subr.bf16.mxu0 %v11264_v24 }
 0x42c   :  { %7324 = vmatpush1.bf16.msra.mxu0 %v11361_v31 }
 0x42d   :  { %7326 = vmatprep.subr.bf16.mxu0 %v11362_v30 }
 0x430   :  { %7328 = vmatpush1.bf16.msra.mxu0 %v11363_v20 }
 0x431   :  { %7330 = vmatprep.subr.bf16.mxu0 %v11364_v62 }
 0x434   :  { %7332 = vmatpush1.bf16.msra.mxu0 %v11365_v0 }
 0x435   :  { %7334 = vmatprep.subr.bf16.mxu0 %v11366_v3 }
 0x438   :  { %7336 = vmatpush1.bf16.msra.mxu0 %v11271_v44 }
 0x439   :  { %7338 = vmatprep.subr.bf16.mxu0 %v11367_v54 }
 0x43c   :  { %7340 = vmatpush1.bf16.msra.mxu0 %v11368_v15 }
 0x43d   :  { %7342 = vmatprep.subr.bf16.mxu0 %v11369_v41 }
 0x440   :  { %7344 = vmatpush1.bf16.msra.mxu0 %v11279_v45 }
 0x441   :  { %7394 = vmatprep.subr.bf16.mxu0 %v11248_v18 }
 0x443   :  { %2525 = vmatmul.mubr.f32.vlgmr.msra.gmra.mrb[4].mxu0 %v9771_v34  ;;  %v11437_v34 = vld [vmem:[#allocation44_spill] sm:$0xff] }
 0x444   :  { %2531 = vmatprep.mubr.f32.mxu0 %v9799_v40  ;;  %7396 = vmatpush1.bf16.msra.mxu0 %v11251_v21 }
 0x445   :  { %7398 = vmatprep.subr.bf16.mxu0 %v11252_v63 }
 0x447   :  { %2533 = vmatmul.mubr.f32.gmra.mrb[6].mxu0 %v9793_v19  ;;  %v2602_v19 = vld [vmem:[#allocation2 + $0xd8] sm:$0xff] }
 0x448   :  { %7400 = vmatpush1.bf16.msra.mxu0 %v11254_v23  ;;  %v7369_v40 = vpack.c.bf16 %v2602_v19, %v2600_v48  ;;  %v2612_v48 = vld [vmem:[#allocation2 + $0x128] sm:$0xff]  ;;  %v2614_v19 = vld [vmem:[#allocation2 + $0x138] sm:$0xff] }
 0x449   :  { %7402 = vmatprep.subr.bf16.mxu0 %v11256_v58 }
 0x44a   :  { %7370 = vmatprep.subr.bf16.mxu1 %v7369_v40  ;;  %v7381_v40 = vpack.c.bf16 %v2614_v19, %v2612_v48 }
 0x44b   :  { %7372 = vmatpush1.bf16.msra.mxu1 %v7371_v53  ;;  %v7383_v53 = vpack.c.bf16 %v2613_v33, %v2611_v49 }
 0x44c   :  { %7404 = vmatpush1.bf16.msra.mxu0 %v11257_v11  ;;  %7374 = vmatprep.subr.bf16.mxu1 %v7373_v43  ;;  %v7385_v43 = vpack.c.bf16 %v2618_v36, %v2616_v55 }
 0x44d   :  { %7406 = vmatprep.subr.bf16.mxu0 %v11258_v7 }
 0x44f   :  { %7376 = vmatpush1.bf16.msra.mxu1 %v7375_v38  ;;  %v7387_v38 = vpack.c.bf16 %v2617_v60, %v2615_v13 }
 0x450   :  { %7408 = vmatpush1.bf16.msra.mxu0 %v11259_v46  ;;  %7378 = vmatprep.subr.bf16.mxu1 %v7377_v17  ;;  %v7391_v17 = vpack.c.bf16 %v2621_v61, %v2619_v10  ;;  %v10004_v10 = vld [vmem:[%s10753_s5 + $0x8] sm:$0x3f] }
 0x451   :  { %7410 = vmatprep.subr.bf16.mxu0 %v11433_v1  ;;  %11442 = vst [vmem:[#allocation52_spill] sm:$0xff] %v10004_v10 }
 0x453   :  { %7380 = vmatpush1.bf16.msra.mxu1 %v7379_v27  ;;  %v7389_v27 = vpack.c.bf16 %v2622_v39, %v2620_v57 }
 0x454   :  { %7412 = vmatpush1.bf16.msra.mxu0 %v11434_v37  ;;  %7382 = vmatprep.subr.bf16.mxu1 %v7381_v40 }
 0x455   :  { %7414 = vmatprep.subr.bf16.mxu0 %v11435_v51 }
 0x457   :  { %7384 = vmatpush1.bf16.msra.mxu1 %v7383_v53 }
 0x458   :  { %7416 = vmatpush1.bf16.msra.mxu0 %v11436_v9  ;;  %7386 = vmatprep.subr.bf16.mxu1 %v7385_v43  ;;  %v11438_v43 = vld [vmem:[#allocation74_spill] sm:$0xff] }
 0x459   :  { %7418 = vmatprep.subr.bf16.mxu0 %v11264_v24  ;;  %v9989_v13 = vsub.s32 1, %v11438_v43  ;;  %v9992_v60 = vsub.s32 2, %v11438_v43 }
 0x45b   :  { %7388 = vmatpush1.bf16.msra.mxu1 %v7387_v38  ;;  %11439 = vst [vmem:[#allocation49_spill] sm:$0xff] %v9989_v13  ;;  %11440 = vst [vmem:[#allocation50_spill] sm:$0xff] %v9992_v60  ;;  %v9997_v38 = vld [vmem:[%s10753_s5] sm:$0x3f] }
 0x45c   :  { %7420 = vmatpush1.bf16.msra.mxu0 %v11361_v31  ;;  %7390 = vmatprep.subr.bf16.mxu1 %v7389_v27  ;;  %11441 = vst [vmem:[#allocation51_spill] sm:$0xff] %v9997_v38  ;;  %v2550_v57 = vrot.slane %v9997_v38, %v9989_v13  ;;  %v2554_v27 = vrot.slane %v10004_v10, %v9989_v13  ;;  %v11446_v13 = vld [vmem:[#allocation48_spill] sm:$0xff] }
 0x45d   :  { %7422 = vmatprep.subr.bf16.mxu0 %v11362_v30 }
 0x45f   :  { %7392 = vmatpush1.bf16.msra.mxu1 %v7391_v17  ;;  %v11443_v17 = vld [vmem:[#allocation45_spill] sm:$0xff] }
 0x460   :  { %7424 = vmatpush1.bf16.msra.mxu0 %v11363_v20  ;;  %7682 = vmatprep.subr.bf16.mxu1 %v11248_v18 }
 0x461   :  { %7426 = vmatprep.subr.bf16.mxu0 %v11364_v62 }
 0x464   :  { %7428 = vmatpush1.bf16.msra.mxu0 %v11365_v0 }
 0x465   :  { %7430 = vmatprep.subr.bf16.mxu0 %v11366_v3 }
 0x468   :  { %7432 = vmatpush1.bf16.msra.mxu0 %v11271_v44 }
 0x469   :  { %7434 = vmatprep.subr.bf16.mxu0 %v11367_v54 }
 0x46c   :  { %7436 = vmatpush1.bf16.msra.mxu0 %v11368_v15 }
 0x46d   :  { %7438 = vmatprep.subr.bf16.mxu0 %v11369_v41 }
 0x470   :  { %7440 = vmatpush1.bf16.msra.mxu0 %v11279_v45 }
 0x471   :  { %7442 = vmatprep.subr.bf16.mxu0 %v11437_v34 }
 0x516   :  { %v2526_v48 = vpop.f32.mrb[4].mxu0 }
 0x517   :  { %v8197_v19 = vadd.f32 1e-05, %v2526_v48  ;;  %v2528_v40 = vpop.f32.mrb[5].mxu0 }
 0x518   :  { %v8198_v49 = vadd.f32 1e-05, %v2528_v40  ;;  %v11444_v40 = vld [vmem:[#allocation46_spill] sm:$0xff] }
 0x519   :  { %8318 = vrsqrt.f32 %v8197_v19  ;;  %v2562_v19 = vrot.slane %v9997_v38, %v9992_v60 }
 0x51a   :  { %8320 = vrsqrt.f32 %v8198_v49  ;;  %v2534_v33 = vpop.f32.mrb[6].mxu0 }
 0x51b   :  { %v8199_v53 = vadd.f32 1e-05, %v2534_v33  ;;  %v2536_v55 = vpop.f32.mrb[7].mxu0  ;;  %v2566_v33 = vrot.slane %v10004_v10, %v9992_v60  ;;  %v11456_v60 = vld [vmem:[#allocation24_spill] sm:$0xff] }
 0x51c   :  { %v8200_v36 = vadd.f32 1e-05, %v2536_v55 }
 0x51d   :  { %8322 = vrsqrt.f32 %v8199_v53 }
 0x51e   :  { %8324 = vrsqrt.f32 %v8200_v36 }
 0x523   :  { %v8319_v39 = vpop.eup %8318 }
 0x524   :  { %v8321_v61 = vpop.eup %8320  ;;  %v2543_v48 = vmul.f32 %v8319_v39, %v11443_v17 }
 0x525   :  { %v2544_v49 = vmul.f32 %v8321_v61, %v11444_v40 }
 0x526   :  { %v2555_v53 = vmul.f32 %v2550_v57, %v2543_v48 }
 0x527   :  { %v8323_v55 = vpop.eup %8322  ;;  %v2556_v36 = vmul.f32 %v2554_v27, %v2544_v49 }
 0x528   :  { %v8325_v56 = vpop.eup %8324  ;;  %v2567_v52 = vadd.f32 %v2562_v19, %v2555_v53  ;;  %v2545_v12 = vmul.f32 %v8323_v55, %v11445_v29 }
 0x529   :  { %v2568_v26 = vadd.f32 %v2566_v33, %v2556_v36  ;;  %v2546_v25 = vmul.f32 %v8325_v56, %v11446_v13 }
 0x52a   :  { %v2557_v2 = vmul.f32 %v2550_v57, %v2545_v12  ;;  %v2571_v50 = vmax.f32 %v2567_v52, 0.0 }
 0x52b   :  { %v2572_v39 = vmax.f32 %v2568_v26, 0.0  ;;  %v2558_v17 = vmul.f32 %v2554_v27, %v2546_v25 }
 0x52c   :  { %v2569_v5 = vadd.f32 %v2562_v19, %v2557_v2 }
 0x52d   :  { %6399 = vmatprep.mubr.msk.f32.mxu1 %vm159_vm1, %v2572_v39  ;;  %v2570_v61 = vadd.f32 %v2566_v33, %v2558_v17 }
 0x52e   :  { %2702 = vmatmul.mubr.f32.vlgmr.msra.gmra.mrb[4].mxu1 %v2571_v50  ;;  %v2573_v48 = vmax.f32 %v2569_v5, 0.0  ;;  %v2625_v5 = vsub.s32 3, %v11438_v43  ;;  %v11462_v43 = vld [vmem:[#allocation94_spill] sm:$0xff] }
 0x52f   :  { %v2574_v40 = vmax.f32 %v2570_v61, 0.0  ;;  %7684 = vmatpush1.bf16.msra.mxu1 %v11251_v21 }
 0x530   :  { %7686 = vmatprep.subr.bf16.mxu1 %v11252_v63  ;;  %v2626_v50 = vrot.slane %v9997_v38, %v2625_v5  ;;  %v2630_v2 = vrot.slane %v10004_v10, %v2625_v5  ;;  %v11460_v10 = vld [vmem:[#allocation30_spill] sm:$0xff]  ;;  %v11461_v38 = vld [vmem:[#allocation93_spill] sm:$0xff] }
 0x531   :  { %6400 = vmatprep.mubr.msk.f32.mxu1 %vm159_vm1, %v2574_v40 }
 0x532   :  { %2708 = vmatmul.mubr.f32.gmra.mrb[6].mxu1 %v2573_v48 }
 0x533   :  { %7688 = vmatpush1.bf16.msra.mxu1 %v11254_v23 }
 0x534   :  { %7690 = vmatprep.subr.bf16.mxu1 %v11256_v58 }
 0x537   :  { %7692 = vmatpush1.bf16.msra.mxu1 %v11257_v11 }
 0x538   :  { %7694 = vmatprep.subr.bf16.mxu1 %v11258_v7 }
 0x53b   :  { %7696 = vmatpush1.bf16.msra.mxu1 %v11259_v46 }
 0x53c   :  { %7698 = vmatprep.subr.bf16.mxu1 %v11433_v1 }
 0x53f   :  { %7700 = vmatpush1.bf16.msra.mxu1 %v11434_v37 }
 0x540   :  { %7702 = vmatprep.subr.bf16.mxu1 %v11435_v51 }
 0x543   :  { %7704 = vmatpush1.bf16.msra.mxu1 %v11436_v9 }
 0x544   :  { %7706 = vmatprep.subr.bf16.mxu1 %v11264_v24 }
 0x547   :  { %7708 = vmatpush1.bf16.msra.mxu1 %v11361_v31 }
 0x548   :  { %7710 = vmatprep.subr.bf16.mxu1 %v11362_v30 }
 0x54b   :  { %7712 = vmatpush1.bf16.msra.mxu1 %v11363_v20 }
 0x54c   :  { %7714 = vmatprep.subr.bf16.mxu1 %v11364_v62 }
 0x54f   :  { %7716 = vmatpush1.bf16.msra.mxu1 %v11365_v0 }
 0x550   :  { %7718 = vmatprep.subr.bf16.mxu1 %v11366_v3 }
 0x553   :  { %7720 = vmatpush1.bf16.msra.mxu1 %v11271_v44 }
 0x554   :  { %7722 = vmatprep.subr.bf16.mxu1 %v11367_v54 }
 0x557   :  { %7724 = vmatpush1.bf16.msra.mxu1 %v11368_v15 }
 0x558   :  { %7726 = vmatprep.subr.bf16.mxu1 %v11369_v41 }
 0x55b   :  { %7728 = vmatpush1.bf16.msra.mxu1 %v11279_v45 }
 0x55c   :  { %7730 = vmatprep.subr.bf16.mxu1 %v11437_v34 }
 0x601   :  { %v2703_v25 = vpop.f32.mrb[4].mxu1 }
 0x602   :  { %v10045_v26 = vadd.f32 %v2703_v25, %v2626_v50  ;;  %v2705_v12 = vpop.f32.mrb[5].mxu1 }
 0x603   :  { %v10047_v29 = vadd.f32 %v2705_v12, %v2630_v2 }
 0x604   :  { %v10050_v52 = vand.u32 4294901760, %v10045_v26 }
 0x605   :  { %v2715_v56 = vsel %vm159_vm1, %v10047_v29, 0  ;;  %v2709_v13 = vpop.f32.mrb[6].mxu1 }
 0x606   :  { %v10056_v34 = vsub.f32 %v10045_v26, %v10050_v52  ;;  %v10058_v57 = vand.u32 4294901760, %v2715_v56  ;;  %v10060_v27 = vadd.f32 %v2709_v13, %v2626_v50  ;;  %v2711_v19 = vpop.f32.mrb[7].mxu1 }
 0x607   :  { %v10062_v49 = vadd.f32 %v2711_v19, %v2630_v2  ;;  %v11447_v19 = vld [vmem:[#allocation77_spill] sm:$0xff] }
 0x608   :  { %v11042_v33 = vand.u32 4294901760, %v10056_v34  ;;  %v10066_v53 = vsub.f32 %v2715_v56, %v10058_v57  ;;  %v10069_v55 = vand.u32 4294901760, %v10060_v27 }
 0x609   :  { %v2718_v36 = vsel %vm159_vm1, %v10062_v49, 0 }
 0x60a   :  { %v10075_v39 = vsub.f32 %v10060_v27, %v10069_v55  ;;  %v10077_v17 = vand.u32 4294901760, %v2718_v36  ;;  %v11043_v61 = vand.u32 4294901760, %v10066_v53  ;;  %v2841_v40 = vsub.f32 %v10056_v34, %v11042_v33  ;;  %v11448_v33 = vld [vmem:[#allocation78_spill] sm:$0xff] }
 0x60c   :  { %v10084_v48 = vsub.f32 %v2718_v36, %v10077_v17  ;;  %v2835_v5 = vsub.f32 %v10066_v53, %v11043_v61  ;;  %v11044_v50 = vand.u32 4294901760, %v10075_v39  ;;  %v2842_v12 = vand.u32 4294901760, %v2841_v40  ;;  %v11450_v40 = vld [vmem:[#allocation87_spill] sm:$0xff] }
 0x60e   :  { %v2836_v2 = vand.u32 4294901760, %v2835_v5  ;;  %v11045_v25 = vand.u32 4294901760, %v10084_v48  ;;  %v2857_v56 = vsub.f32 %v10075_v39, %v11044_v50  ;;  %v11449_v5 = vld [vmem:[#allocation80_spill] sm:$0xff]  ;;  %v11452_v50 = vld [vmem:[#allocation91_spill] sm:$0xff] }
 0x610   :  { %2837 = vmatprep.mubr.f32.mxu0 %v2836_v2  ;;  %v2851_v13 = vsub.f32 %v10084_v48, %v11045_v25  ;;  %v2858_v61 = vand.u32 4294901760, %v2857_v56  ;;  %v11451_v2 = vld [vmem:[#allocation90_spill] sm:$0xff]  ;;  %v11457_v56 = vld [vmem:[#allocation27_spill] sm:$0xff] }
 0x611   :  { %2843 = vmatmul.mubr.f32.vlgmr.msra.gmra.mrb[8].mxu0 %v2842_v12  ;;  %v11453_v25 = vld [vmem:[#allocation22_spill] sm:$0xff]  ;;  %v11454_v12 = vld [vmem:[#allocation92_spill] sm:$0xff] }
 0x612   :  { %7444 = vmatpush1.bf16.msra.mxu0 %v11447_v19  ;;  %v2852_v36 = vand.u32 4294901760, %v2851_v13  ;;  %v11455_v13 = vld [vmem:[#allocation23_spill] sm:$0xff] }
 0x613   :  { %7446 = vmatprep.subr.bf16.mxu0 %v11448_v33 }
 0x614   :  { %2853 = vmatprep.mubr.f32.mxu0 %v2852_v36  ;;  %v11459_v36 = vld [vmem:[#allocation29_spill] sm:$0xff] }
 0x615   :  { %2859 = vmatmul.mubr.f32.gmra.mrb[10].mxu0 %v2858_v61  ;;  %v11458_v61 = vld [vmem:[#allocation28_spill] sm:$0xff] }
 0x616   :  { %7448 = vmatpush1.bf16.msra.mxu0 %v11449_v5  ;;  %3170 = vmatprep.mubr.f32.mxu0 %v10058_v57 }
 0x617   :  { %7450 = vmatprep.subr.bf16.mxu0 %v11450_v40 }
 0x61a   :  { %7452 = vmatpush1.bf16.msra.mxu0 %v11451_v2 }
 0x61b   :  { %7454 = vmatprep.subr.bf16.mxu0 %v11452_v50  ;;  %v11463_v50 = vld [vmem:[#allocation54_spill] sm:$0xff] }
 0x61e   :  { %7456 = vmatpush1.bf16.msra.mxu0 %v11453_v25  ;;  %v11464_v25 = vld [vmem:[#allocation57_spill] sm:$0xff] }
 0x61f   :  { %7458 = vmatprep.subr.bf16.mxu0 %v11454_v12  ;;  %v11465_v12 = vld [vmem:[#allocation59_spill] sm:$0xff] }
 0x622   :  { %7460 = vmatpush1.bf16.msra.mxu0 %v11455_v13  ;;  %v11466_v13 = vld [vmem:[#allocation62_spill] sm:$0xff] }
 0x623   :  { %7462 = vmatprep.subr.bf16.mxu0 %v11456_v60  ;;  %v11467_v60 = vld [vmem:[#allocation63_spill] sm:$0xff] }
 0x626   :  { %7464 = vmatpush1.bf16.msra.mxu0 %v11457_v56  ;;  %v11468_v56 = vld [vmem:[#allocation65_spill] sm:$0xff] }
 0x627   :  { %7466 = vmatprep.subr.bf16.mxu0 %v11458_v61  ;;  %v11469_v61 = vld [vmem:[#allocation66_spill] sm:$0xff] }
 0x62a   :  { %7468 = vmatpush1.bf16.msra.mxu0 %v11459_v36  ;;  %v11470_v36 = vld [vmem:[#allocation64_spill] sm:$0xff] }
 0x62b   :  { %7470 = vmatprep.subr.bf16.mxu0 %v11460_v10  ;;  %v11484_v10 = vld [vmem:[#allocation106_spill] sm:$0xff] }
 0x62e   :  { %7472 = vmatpush1.bf16.msra.mxu0 %v11461_v38  ;;  %v11482_v38 = vld [vmem:[#allocation88_spill] sm:$0xff] }
 0x62f   :  { %7474 = vmatprep.subr.bf16.mxu0 %v11462_v43  ;;  %v11471_v43 = vld [vmem:[#allocation95_spill] sm:$0xff] }
 0x632   :  { %7476 = vmatpush1.bf16.msra.mxu0 %v11463_v50  ;;  %v11472_v50 = vld [vmem:[#allocation96_spill] sm:$0xff] }
 0x633   :  { %7478 = vmatprep.subr.bf16.mxu0 %v11464_v25  ;;  %v11479_v25 = vld [vmem:[#allocation103_spill] sm:$0xff] }
 0x636   :  { %7480 = vmatpush1.bf16.msra.mxu0 %v11465_v12  ;;  %v11473_v12 = vld [vmem:[#allocation97_spill] sm:$0xff] }
 0x637   :  { %7482 = vmatprep.subr.bf16.mxu0 %v11466_v13  ;;  %v11478_v13 = vld [vmem:[#allocation102_spill] sm:$0xff] }
 0x63a   :  { %7484 = vmatpush1.bf16.msra.mxu0 %v11467_v60  ;;  %v11474_v60 = vld [vmem:[#allocation98_spill] sm:$0xff] }
 0x63b   :  { %7486 = vmatprep.subr.bf16.mxu0 %v11468_v56  ;;  %v11475_v56 = vld [vmem:[#allocation99_spill] sm:$0xff] }
 0x63e   :  { %7488 = vmatpush1.bf16.msra.mxu0 %v11469_v61  ;;  %v11476_v61 = vld [vmem:[#allocation100_spill] sm:$0xff] }
 0x63f   :  { %7490 = vmatprep.subr.bf16.mxu0 %v11470_v36  ;;  %v11477_v36 = vld [vmem:[#allocation101_spill] sm:$0xff] }
 0x641   :  { %3172 = vmatmul.mubr.f32.vlgmr.msra.gmra.mrb[8].mxu0 %v10050_v52 }
 0x642   :  { %3178 = vmatprep.mubr.f32.mxu0 %v10077_v17  ;;  %7492 = vmatpush1.bf16.msra.mxu0 %v11471_v43  ;;  %v11480_v43 = vld [vmem:[#allocation104_spill] sm:$0xff] }
 0x643   :  { %7494 = vmatprep.subr.bf16.mxu0 %v11472_v50  ;;  %v11481_v50 = vld [vmem:[#allocation105_spill] sm:$0xff] }
 0x645   :  { %3180 = vmatmul.mubr.f32.gmra.mrb[10].mxu0 %v10069_v55 }
 0x646   :  { %7496 = vmatpush1.bf16.msra.mxu0 %v11473_v12  ;;  %3348 = vmatprep.mubr.f32.mxu0 %v10066_v53  ;;  %v11483_v12 = vld [vmem:[#allocation89_spill] sm:$0xff] }
 0x647   :  { %7498 = vmatprep.subr.bf16.mxu0 %v11474_v60  ;;  %v11485_v60 = vld [vmem:[#allocation107_spill] sm:$0xff] }
 0x64a   :  { %7500 = vmatpush1.bf16.msra.mxu0 %v11475_v56  ;;  %v11486_v56 = vld [vmem:[#allocation108_spill] sm:$0xff] }
 0x64b   :  { %7502 = vmatprep.subr.bf16.mxu0 %v11476_v61  ;;  %v11487_v61 = vld [vmem:[#allocation67_spill] sm:$0xff] }
 0x64e   :  { %7504 = vmatpush1.bf16.msra.mxu0 %v11477_v36  ;;  %v11488_v36 = vld [vmem:[#allocation68_spill] sm:$0xff] }
 0x64f   :  { %7506 = vmatprep.subr.bf16.mxu0 %v11478_v13  ;;  %v11489_v13 = vld [vmem:[#allocation69_spill] sm:$0xff] }
 0x652   :  { %7508 = vmatpush1.bf16.msra.mxu0 %v11479_v25  ;;  %v11490_v25 = vld [vmem:[#allocation70_spill] sm:$0xff] }
 0x653   :  { %7510 = vmatprep.subr.bf16.mxu0 %v11480_v43  ;;  %v11491_v43 = vld [vmem:[#allocation71_spill] sm:$0xff] }
 0x656   :  { %7512 = vmatpush1.bf16.msra.mxu0 %v11481_v50  ;;  %v11492_v50 = vld [vmem:[#allocation72_spill] sm:$0xff] }
 0x657   :  { %7514 = vmatprep.subr.bf16.mxu0 %v11482_v38  ;;  %v11493_v38 = vld [vmem:[#allocation73_spill] sm:$0xff] }
 0x65a   :  { %7516 = vmatpush1.bf16.msra.mxu0 %v11483_v12 }
 0x65b   :  { %7518 = vmatprep.subr.bf16.mxu0 %v11484_v10 }
 0x65e   :  { %7520 = vmatpush1.bf16.msra.mxu0 %v11485_v60 }
 0x65f   :  { %7522 = vmatprep.subr.bf16.mxu0 %v11486_v56 }
 0x662   :  { %7524 = vmatpush1.bf16.msra.mxu0 %v11487_v61 }
 0x663   :  { %7526 = vmatprep.subr.bf16.mxu0 %v11488_v36 }
 0x666   :  { %7528 = vmatpush1.bf16.msra.mxu0 %v11489_v13 }
 0x667   :  { %7530 = vmatprep.subr.bf16.mxu0 %v11490_v25 }
 0x66a   :  { %7532 = vmatpush1.bf16.msra.mxu0 %v11491_v43  ;;  %v11494_v43 = vand.u32 4294901760, %v10066_v53  ;;  %v11496_v53 = vand.u32 4294901760, %v10084_v48 }
 0x66b   :  { %7534 = vmatprep.subr.bf16.mxu0 %v11492_v50 }
 0x66e   :  { %7536 = vmatpush1.bf16.msra.mxu0 %v11493_v38  ;;  %v11497_v38 = vand.u32 4294901760, %v10075_v39 }
 0x66f   :  { %7538 = vmatprep.subr.bf16.mxu0 %v11248_v18 }
 0x671   :  { %3351 = vmatmul.mubr.f32.vlgmr.msra.gmra.mrb[8].mxu0 %v10056_v34 }
 0x672   :  { %3358 = vmatprep.mubr.f32.mxu0 %v10084_v48  ;;  %7540 = vmatpush1.bf16.msra.mxu0 %v11251_v21  ;;  %v11501_v48 = vld [vmem:[#allocation16_spill] sm:$0xff] }
 0x673   :  { %7542 = vmatprep.subr.bf16.mxu0 %v11252_v63 }
 0x675   :  { %3361 = vmatmul.mubr.f32.gmra.mrb[10].mxu0 %v10075_v39  ;;  %v11500_v39 = vld [vmem:[#allocation15_spill] sm:$0xff] }
 0x676   :  { %7544 = vmatpush1.bf16.msra.mxu0 %v11254_v23  ;;  %3482 = vmatprep.mubr.f32.mxu0 %v11494_v43  ;;  %v11495_v43 = vand.u32 4294901760, %v10056_v34  ;;  %v11499_v34 = vld [vmem:[#allocation14_spill] sm:$0xff] }
 0x677   :  { %7546 = vmatprep.subr.bf16.mxu0 %v11256_v58 }
 0x67a   :  { %7548 = vmatpush1.bf16.msra.mxu0 %v11257_v11 }
 0x67b   :  { %7550 = vmatprep.subr.bf16.mxu0 %v11258_v7 }
 0x67e   :  { %7552 = vmatpush1.bf16.msra.mxu0 %v11259_v46 }
 0x67f   :  { %7554 = vmatprep.subr.bf16.mxu0 %v11433_v1 }
 0x682   :  { %7556 = vmatpush1.bf16.msra.mxu0 %v11434_v37 }
 0x683   :  { %7558 = vmatprep.subr.bf16.mxu0 %v11435_v51 }
 0x686   :  { %7560 = vmatpush1.bf16.msra.mxu0 %v11436_v9 }
 0x687   :  { %7562 = vmatprep.subr.bf16.mxu0 %v11264_v24 }
 0x68a   :  { %7564 = vmatpush1.bf16.msra.mxu0 %v11361_v31 }
 0x68b   :  { %7566 = vmatprep.subr.bf16.mxu0 %v11362_v30 }
 0x68e   :  { %7568 = vmatpush1.bf16.msra.mxu0 %v11363_v20 }
 0x68f   :  { %7570 = vmatprep.subr.bf16.mxu0 %v11364_v62 }
 0x692   :  { %7572 = vmatpush1.bf16.msra.mxu0 %v11365_v0 }
 0x693   :  { %7574 = vmatprep.subr.bf16.mxu0 %v11366_v3 }
 0x696   :  { %7576 = vmatpush1.bf16.msra.mxu0 %v11271_v44 }
 0x697   :  { %7578 = vmatprep.subr.bf16.mxu0 %v11367_v54 }
 0x69a   :  { %7580 = vmatpush1.bf16.msra.mxu0 %v11368_v15 }
 0x69b   :  { %7582 = vmatprep.subr.bf16.mxu0 %v11369_v41 }
 0x69e   :  { %7584 = vmatpush1.bf16.msra.mxu0 %v11279_v45 }
 0x69f   :  { %7586 = vmatprep.subr.bf16.mxu0 %v9558_v16 }
 0x6a1   :  { %3486 = vmatmul.mubr.f32.vlgmr.msra.gmra.mrb[8].mxu0 %v11495_v43  ;;  %v11502_v43 = vld [vmem:[#allocation17_spill] sm:$0xff] }
 0x6a2   :  { %3494 = vmatprep.mubr.f32.mxu0 %v11496_v53  ;;  %7588 = vmatpush1.bf16.msra.mxu0 %v9565_v28  ;;  %v11503_v53 = vld [vmem:[#allocation18_spill] sm:$0xff] }
 0x6a3   :  { %7590 = vmatprep.subr.bf16.mxu0 %v9572_v22 }
 0x6a5   :  { %3498 = vmatmul.mubr.f32.gmra.mrb[10].mxu0 %v11497_v38  ;;  %v11498_v38 = vld [vmem:[#allocation85_spill] sm:$0xff] }
 0x6a6   :  { %7592 = vmatpush1.bf16.msra.mxu0 %v9583_v42  ;;  %3713 = vmatprep.mubr.f32.mxu0 %v10058_v57 }
 0x6a7   :  { %7594 = vmatprep.subr.bf16.mxu0 %v9590_v35 }
 0x6aa   :  { %7596 = vmatpush1.bf16.msra.mxu0 %v9600_v8 }
 0x6ab   :  { %7598 = vmatprep.subr.bf16.mxu0 %v9607_v4 }
 0x6ae   :  { %7600 = vmatpush1.bf16.msra.mxu0 %v9614_v32  ;;  %v11504_v32 = vld [vmem:[#allocation26_spill] sm:$0xff] }
 0x6af   :  { %7602 = vmatprep.subr.bf16.mxu0 %v9621_v6  ;;  %v11505_v6 = vld [vmem:[#allocation37_spill] sm:$0xff] }
 0x6b2   :  { %7604 = vmatpush1.bf16.msra.mxu0 %v9628_v47  ;;  %v11506_v47 = vld [vmem:[#allocation39_spill] sm:$0xff] }
 0x6b3   :  { %7606 = vmatprep.subr.bf16.mxu0 %v9635_v59  ;;  %v11507_v59 = vld [vmem:[#allocation40_spill] sm:$0xff] }
 0x6b6   :  { %7608 = vmatpush1.bf16.msra.mxu0 %v9642_v14  ;;  %v11508_v14 = vld [vmem:[#allocation43_spill] sm:$0xff] }
 0x6b7   :  { %7610 = vmatprep.subr.bf16.mxu0 %v11498_v38  ;;  %v11509_v38 = vld [vmem:[#allocation82_spill] sm:$0xff] }
 0x6ba   :  { %7612 = vmatpush1.bf16.msra.mxu0 %v11499_v34 }
 0x6bb   :  { %7614 = vmatprep.subr.bf16.mxu0 %v11500_v39 }
 0x6be   :  { %7616 = vmatpush1.bf16.msra.mxu0 %v11501_v48 }
 0x6bf   :  { %7618 = vmatprep.subr.bf16.mxu0 %v11502_v43 }
 0x6c2   :  { %7620 = vmatpush1.bf16.msra.mxu0 %v11503_v53 }
 0x6c3   :  { %7622 = vmatprep.subr.bf16.mxu0 %v11504_v32 }
 0x6c6   :  { %7624 = vmatpush1.bf16.msra.mxu0 %v11505_v6 }
 0x6c7   :  { %7626 = vmatprep.subr.bf16.mxu0 %v11506_v47 }
 0x6ca   :  { %7628 = vmatpush1.bf16.msra.mxu0 %v11507_v59 }
 0x6cb   :  { %7630 = vmatprep.subr.bf16.mxu0 %v11508_v14 }
 0x6ce   :  { %7632 = vmatpush1.bf16.msra.mxu0 %v11509_v38 }
 0x6cf   :  { %7634 = vmatprep.subr.bf16.mxu0 %v11248_v18 }
 0x6d1   :  { %3715 = vmatmul.mubr.f32.vlgmr.msra.gmra.mrb[8].mxu0 %v10050_v52 }
 0x6d2   :  { %3721 = vmatprep.mubr.f32.mxu0 %v10077_v17  ;;  %7636 = vmatpush1.bf16.msra.mxu0 %v11251_v21 }
 0x6d3   :  { %7638 = vmatprep.subr.bf16.mxu0 %v11252_v63 }
 0x6d5   :  { %3723 = vmatmul.mubr.f32.gmra.mrb[10].mxu0 %v10069_v55 }
 0x6d6   :  { %7640 = vmatpush1.bf16.msra.mxu0 %v11254_v23  ;;  %3842 = vmatprep.mubr.f32.mxu0 %v10058_v57 }
 0x6d7   :  { %7642 = vmatprep.subr.bf16.mxu0 %v11256_v58 }
 0x6da   :  { %7644 = vmatpush1.bf16.msra.mxu0 %v11257_v11 }
 0x6db   :  { %7646 = vmatprep.subr.bf16.mxu0 %v11258_v7 }
 0x6de   :  { %7648 = vmatpush1.bf16.msra.mxu0 %v11259_v46 }
 0x6df   :  { %7650 = vmatprep.subr.bf16.mxu0 %v11433_v1 }
 0x6e2   :  { %7652 = vmatpush1.bf16.msra.mxu0 %v11434_v37 }
 0x6e3   :  { %7654 = vmatprep.subr.bf16.mxu0 %v11435_v51 }
 0x6e6   :  { %7656 = vmatpush1.bf16.msra.mxu0 %v11436_v9 }
 0x6e7   :  { %7658 = vmatprep.subr.bf16.mxu0 %v11264_v24 }
 0x6ea   :  { %7660 = vmatpush1.bf16.msra.mxu0 %v11361_v31 }
 0x6eb   :  { %7662 = vmatprep.subr.bf16.mxu0 %v11362_v30 }
 0x6ee   :  { %7664 = vmatpush1.bf16.msra.mxu0 %v11363_v20 }
 0x6ef   :  { %7666 = vmatprep.subr.bf16.mxu0 %v11364_v62 }
 0x6f2   :  { %7668 = vmatpush1.bf16.msra.mxu0 %v11365_v0 }
 0x6f3   :  { %7670 = vmatprep.subr.bf16.mxu0 %v11366_v3 }
 0x6f6   :  { %7672 = vmatpush1.bf16.msra.mxu0 %v11271_v44 }
 0x6f7   :  { %7674 = vmatprep.subr.bf16.mxu0 %v11367_v54 }
 0x6fa   :  { %7676 = vmatpush1.bf16.msra.mxu0 %v11368_v15 }
 0x6fb   :  { %7678 = vmatprep.subr.bf16.mxu0 %v11369_v41 }
 0x6fe   :  { %7680 = vmatpush1.bf16.msra.mxu0 %v11279_v45 }
 0x701   :  { %3844 = vmatmul.mubr.f32.vlgmr.msra.gmra.mrb[8].mxu0 %v10050_v52 }
 0x702   :  { %3850 = vmatprep.mubr.f32.mxu0 %v10077_v17 }
 0x705   :  { %3852 = vmatmul.mubr.f32.gmra.mrb[10].mxu0 %v10069_v55 }
 0x7d4   :  { %v3845_v57 = vpop.f32.mrb[8].mxu0 }
 0x7d5   :  { %v10241_v38 = vsub.f32 %v10045_v26, %v3845_v57  ;;  %v3847_v14 = vpop.f32.mrb[9].mxu0 }
 0x7d6   :  { %v10244_v59 = vsub.f32 %v10047_v29, %v3847_v14 }
 0x7d7   :  { %11510 = vst [vmem:[#allocation53_spill] sm:$0xff] %v10241_v38  ;;  %v3862_v47 = vmul.f32 %v10241_v38, %v10241_v38 }
 0x7d8   :  { %11511 = vst [vmem:[#allocation55_spill] sm:$0xff] %v10244_v59  ;;  %v3863_v6 = vmul.f32 %v10244_v59, %v10244_v59  ;;  %v3853_v32 = vpop.f32.mrb[10].mxu0 }
 0x7d9   :  { %v10250_v52 = vand.u32 4294901760, %v3862_v47  ;;  %v10253_v17 = vsub.f32 %v10060_v27, %v3853_v32  ;;  %v3855_v55 = vpop.f32.mrb[11].mxu0 }
 0x7da   :  { %v3867_v26 = vsel %vm159_vm1, %v3863_v6, 0  ;;  %v10257_v57 = vsub.f32 %v10062_v49, %v3855_v55 }
 0x7db   :  { %11512 = vst [vmem:[#allocation56_spill] sm:$0xff] %v10253_v17  ;;  %v10260_v14 = vsub.f32 %v3862_v47, %v10250_v52  ;;  %v10262_v29 = vand.u32 4294901760, %v3867_v26  ;;  %v3864_v59 = vmul.f32 %v10253_v17, %v10253_v17 }
 0x7dc   :  { %11513 = vst [vmem:[#allocation58_spill] sm:$0xff] %v10257_v57  ;;  %v3865_v38 = vmul.f32 %v10257_v57, %v10257_v57 }
 0x7dd   :  { %v11061_v32 = vand.u32 4294901760, %v10260_v14  ;;  %v10270_v27 = vsub.f32 %v3867_v26, %v10262_v29  ;;  %v10272_v6 = vand.u32 4294901760, %v3864_v59 }
 0x7de   :  { %v3870_v49 = vsel %vm159_vm1, %v3865_v38, 0 }
 0x7df   :  { %v10276_v47 = vsub.f32 %v3864_v59, %v10272_v6  ;;  %v10278_v55 = vand.u32 4294901760, %v3870_v49  ;;  %v11062_v53 = vand.u32 4294901760, %v10270_v27  ;;  %v3993_v57 = vsub.f32 %v10260_v14, %v11061_v32 }
 0x7e1   :  { %v10285_v17 = vsub.f32 %v3870_v49, %v10278_v55  ;;  %v3987_v26 = vsub.f32 %v10270_v27, %v11062_v53  ;;  %v4008_v38 = vand.u32 4294901760, %v10276_v47  ;;  %v3994_v48 = vand.u32 4294901760, %v3993_v57  ;;  %v11515_v57 = vld [vmem:[#allocation22_spill] sm:$0xff] }
 0x7e3   :  { %v3988_v43 = vand.u32 4294901760, %v3987_v26  ;;  %v4002_v59 = vand.u32 4294901760, %v10285_v17  ;;  %v4009_v39 = vsub.f32 %v10276_v47, %v4008_v38  ;;  %v11525_v26 = vld [vmem:[#allocation54_spill] sm:$0xff] }
 0x7e5   :  { %3989 = vmatprep.mubr.f32.mxu1 %v3988_v43  ;;  %v4003_v49 = vsub.f32 %v10285_v17, %v4002_v59  ;;  %v4010_v53 = vand.u32 4294901760, %v4009_v39  ;;  %v11514_v43 = vld [vmem:[#allocation91_spill] sm:$0xff] }
 0x7e6   :  { %3995 = vmatmul.mubr.f32.vlgmr.msra.gmra.mrb[8].mxu1 %v3994_v48  ;;  %v11516_v48 = vld [vmem:[#allocation92_spill] sm:$0xff]  ;;  %v11519_v39 = vld [vmem:[#allocation27_spill] sm:$0xff] }
 0x7e7   :  { %7732 = vmatpush1.bf16.msra.mxu1 %v11447_v19  ;;  %v4004_v32 = vand.u32 4294901760, %v4003_v49  ;;  %v11517_v19 = vld [vmem:[#allocation23_spill] sm:$0xff]  ;;  %v11526_v49 = vld [vmem:[#allocation57_spill] sm:$0xff] }
 0x7e8   :  { %7734 = vmatprep.subr.bf16.mxu1 %v11448_v33  ;;  %v11518_v33 = vld [vmem:[#allocation24_spill] sm:$0xff] }
 0x7e9   :  { %4005 = vmatprep.mubr.f32.mxu1 %v4004_v32  ;;  %v11522_v32 = vld [vmem:[#allocation30_spill] sm:$0xff] }
 0x7ea   :  { %4011 = vmatmul.mubr.f32.gmra.mrb[10].mxu1 %v4010_v53  ;;  %v11520_v53 = vld [vmem:[#allocation28_spill] sm:$0xff] }
 0x7eb   :  { %7736 = vmatpush1.bf16.msra.mxu1 %v11449_v5  ;;  %4322 = vmatprep.mubr.f32.mxu1 %v10262_v29  ;;  %v11521_v5 = vld [vmem:[#allocation29_spill] sm:$0xff] }
 0x7ec   :  { %7738 = vmatprep.subr.bf16.mxu1 %v11450_v40  ;;  %v11523_v40 = vld [vmem:[#allocation93_spill] sm:$0xff] }
 0x7ef   :  { %7740 = vmatpush1.bf16.msra.mxu1 %v11451_v2  ;;  %v11524_v2 = vld [vmem:[#allocation94_spill] sm:$0xff] }
 0x7f0   :  { %7742 = vmatprep.subr.bf16.mxu1 %v11514_v43  ;;  %v11527_v43 = vld [vmem:[#allocation59_spill] sm:$0xff] }
 0x7f3   :  { %7744 = vmatpush1.bf16.msra.mxu1 %v11515_v57  ;;  %v11528_v57 = vld [vmem:[#allocation62_spill] sm:$0xff] }
 0x7f4   :  { %7746 = vmatprep.subr.bf16.mxu1 %v11516_v48  ;;  %v11529_v48 = vld [vmem:[#allocation63_spill] sm:$0xff] }
 0x7f7   :  { %7748 = vmatpush1.bf16.msra.mxu1 %v11517_v19  ;;  %v11530_v19 = vld [vmem:[#allocation65_spill] sm:$0xff] }
 0x7f8   :  { %7750 = vmatprep.subr.bf16.mxu1 %v11518_v33  ;;  %v11531_v33 = vld [vmem:[#allocation66_spill] sm:$0xff] }
 0x7fb   :  { %7752 = vmatpush1.bf16.msra.mxu1 %v11519_v39  ;;  %v11532_v39 = vld [vmem:[#allocation64_spill] sm:$0xff] }
 0x7fc   :  { %7754 = vmatprep.subr.bf16.mxu1 %v11520_v53  ;;  %v11533_v53 = vld [vmem:[#allocation95_spill] sm:$0xff] }
 0x7ff   :  { %7756 = vmatpush1.bf16.msra.mxu1 %v11521_v5  ;;  %v11534_v5 = vld [vmem:[#allocation96_spill] sm:$0xff] }
 0x800   :  { %7758 = vmatprep.subr.bf16.mxu1 %v11522_v32  ;;  %v11535_v32 = vld [vmem:[#allocation97_spill] sm:$0xff] }
 0x803   :  { %7760 = vmatpush1.bf16.msra.mxu1 %v11523_v40  ;;  %v11536_v40 = vld [vmem:[#allocation98_spill] sm:$0xff] }
 0x804   :  { %7762 = vmatprep.subr.bf16.mxu1 %v11524_v2  ;;  %v11537_v2 = vld [vmem:[#allocation99_spill] sm:$0xff] }
 0x807   :  { %7764 = vmatpush1.bf16.msra.mxu1 %v11525_v26  ;;  %v11538_v26 = vld [vmem:[#allocation100_spill] sm:$0xff] }
 0x808   :  { %7766 = vmatprep.subr.bf16.mxu1 %v11526_v49  ;;  %v11539_v49 = vld [vmem:[#allocation101_spill] sm:$0xff] }
 0x80b   :  { %7768 = vmatpush1.bf16.msra.mxu1 %v11527_v43  ;;  %v11540_v43 = vld [vmem:[#allocation102_spill] sm:$0xff] }
 0x80c   :  { %7770 = vmatprep.subr.bf16.mxu1 %v11528_v57  ;;  %v11541_v57 = vld [vmem:[#allocation103_spill] sm:$0xff] }
 0x80f   :  { %7772 = vmatpush1.bf16.msra.mxu1 %v11529_v48  ;;  %v11542_v48 = vld [vmem:[#allocation104_spill] sm:$0xff] }
 0x810   :  { %7774 = vmatprep.subr.bf16.mxu1 %v11530_v19  ;;  %v11543_v19 = vld [vmem:[#allocation105_spill] sm:$0xff] }
 0x813   :  { %7776 = vmatpush1.bf16.msra.mxu1 %v11531_v33  ;;  %v11544_v33 = vld [vmem:[#allocation88_spill] sm:$0xff] }
 0x814   :  { %7778 = vmatprep.subr.bf16.mxu1 %v11532_v39  ;;  %v11545_v39 = vld [vmem:[#allocation71_spill] sm:$0xff] }
 0x816   :  { %4324 = vmatmul.mubr.f32.vlgmr.msra.gmra.mrb[8].mxu1 %v10250_v52 }
 0x817   :  { %4330 = vmatprep.mubr.f32.mxu1 %v10278_v55  ;;  %7780 = vmatpush1.bf16.msra.mxu1 %v11533_v53  ;;  %v11546_v53 = vld [vmem:[#allocation73_spill] sm:$0xff] }
 0x818   :  { %7782 = vmatprep.subr.bf16.mxu1 %v11534_v5 }
 0x81a   :  { %4332 = vmatmul.mubr.f32.gmra.mrb[10].mxu1 %v10272_v6 }
 0x81b   :  { %7784 = vmatpush1.bf16.msra.mxu1 %v11535_v32  ;;  %4500 = vmatprep.mubr.f32.mxu1 %v10270_v27  ;;  %v5052_v32 = vld [vmem:[%s10752_s4 + $0x30] sm:$0xff] }
 0x81c   :  { %7786 = vmatprep.subr.bf16.mxu1 %v11536_v40  ;;  %v5053_v40 = vld [vmem:[%s10752_s4 + $0x38] sm:$0xff] }
 0x81f   :  { %7788 = vmatpush1.bf16.msra.mxu1 %v11537_v2  ;;  %v7979_v2 = vpack.c.bf16 %v5053_v40, %v5052_v32  ;;  %v11569_v32 = vld [vmem:[#allocation55_spill] sm:$0xff] }
 0x820   :  { %7790 = vmatprep.subr.bf16.mxu1 %v11538_v26  ;;  %v5054_v26 = vld [vmem:[%s10752_s4 + $0x40] sm:$0xff] }
 0x823   :  { %7792 = vmatpush1.bf16.msra.mxu1 %v11539_v49  ;;  %v5055_v49 = vld [vmem:[%s10752_s4 + $0x48] sm:$0xff] }
 0x824   :  { %7794 = vmatprep.subr.bf16.mxu1 %v11540_v43  ;;  %v7982_v43 = vpack.c.bf16 %v5055_v49, %v5054_v26 }
 0x827   :  { %7796 = vmatpush1.bf16.msra.mxu1 %v11541_v57  ;;  %v5056_v57 = vld [vmem:[%s10752_s4 + $0x50] sm:$0xff] }
 0x828   :  { %7798 = vmatprep.subr.bf16.mxu1 %v11542_v48  ;;  %v5057_v48 = vld [vmem:[%s10752_s4 + $0x58] sm:$0xff] }
 0x82b   :  { %7800 = vmatpush1.bf16.msra.mxu1 %v11543_v19  ;;  %v7985_v19 = vpack.c.bf16 %v5057_v48, %v5056_v57 }
 0x82c   :  { %7802 = vmatprep.subr.bf16.mxu1 %v11544_v33  ;;  %v11548_v33 = vand.u32 4294901760, %v10260_v14 }
 0x82f   :  { %7804 = vmatpush1.bf16.msra.mxu1 %v11483_v12  ;;  %v8430_v12 = vmov 0.0|0.0  }
 0x830   :  { %7806 = vmatprep.subr.bf16.mxu1 %v11484_v10  ;;  %v5046_v10 = vld [vmem:[%s10752_s4] sm:$0xff]  ;;  %7969 = vmatprep.subr.bf16.mxu0 %v8430_v12 }
 0x833   :  { %7808 = vmatpush1.bf16.msra.mxu1 %v11485_v60  ;;  %v11547_v60 = vand.u32 4294901760, %v10270_v27  ;;  %v5051_v27 = vld [vmem:[%s10752_s4 + $0x28] sm:$0xff] }
 0x834   :  { %7810 = vmatprep.subr.bf16.mxu1 %v11486_v56  ;;  %v5049_v56 = vld [vmem:[%s10752_s4 + $0x18] sm:$0xff] }
 0x837   :  { %7812 = vmatpush1.bf16.msra.mxu1 %v11487_v61 }
 0x838   :  { %7814 = vmatprep.subr.bf16.mxu1 %v11488_v36  ;;  %v5050_v36 = vld [vmem:[%s10752_s4 + $0x20] sm:$0xff] }
 0x839   :  { %v7976_v5 = vpack.c.bf16 %v5051_v27, %v5050_v36  ;;  %v11568_v36 = vld [vmem:[#allocation53_spill] sm:$0xff] }
 0x83b   :  { %7816 = vmatpush1.bf16.msra.mxu1 %v11489_v13 }
 0x83c   :  { %7818 = vmatprep.subr.bf16.mxu1 %v11490_v25  ;;  %v5048_v25 = vld [vmem:[%s10752_s4 + $0x10] sm:$0xff] }
 0x83d   :  { %v7973_v61 = vpack.c.bf16 %v5049_v56, %v5048_v25 }
 0x83f   :  { %7820 = vmatpush1.bf16.msra.mxu1 %v11545_v39  ;;  %v11561_v39 = vld [vmem:[#allocation39_spill] sm:$0xff] }
 0x840   :  { %7822 = vmatprep.subr.bf16.mxu1 %v11492_v50  ;;  %v5047_v50 = vld [vmem:[%s10752_s4 + $0x8] sm:$0xff] }
 0x841   :  { %v7970_v13 = vpack.c.bf16 %v5047_v50, %v5046_v10  ;;  %v11564_v10 = vld [vmem:[#allocation82_spill] sm:$0xff]  ;;  %v11566_v50 = vld [vmem:[#allocation51_spill] sm:$0xff] }
 0x843   :  { %7824 = vmatpush1.bf16.msra.mxu1 %v11546_v53  ;;  %7971 = vmatpush1.bf16.msra.mxu0 %v7970_v13  ;;  %v11562_v53 = vld [vmem:[#allocation40_spill] sm:$0xff] }
 0x844   :  { %7826 = vmatprep.subr.bf16.mxu1 %v11248_v18  ;;  %7972 = vmatprep.subr.bf16.mxu0 %v8430_v12  ;;  %v11567_v13 = vld [vmem:[#allocation52_spill] sm:$0xff] }
 0x846   :  { %4503 = vmatmul.mubr.f32.vlgmr.msra.gmra.mrb[8].mxu1 %v10260_v14  ;;  %v11553_v14 = vld [vmem:[#allocation13_spill] sm:$0xff] }
 0x847   :  { %4510 = vmatprep.mubr.f32.mxu1 %v10285_v17  ;;  %7828 = vmatpush1.bf16.msra.mxu1 %v11251_v21  ;;  %v11550_v17 = vld [vmem:[#allocation81_spill] sm:$0xff] }
 0x848   :  { %7830 = vmatprep.subr.bf16.mxu1 %v11252_v63  ;;  %7974 = vmatpush1.bf16.msra.mxu0 %v7973_v61 }
 0x849   :  { %7975 = vmatprep.subr.bf16.mxu0 %v8430_v12 }
 0x84a   :  { %4513 = vmatmul.mubr.f32.gmra.mrb[10].mxu1 %v10276_v47  ;;  %v11554_v47 = vld [vmem:[#allocation85_spill] sm:$0xff] }
 0x84b   :  { %7832 = vmatpush1.bf16.msra.mxu1 %v11254_v23  ;;  %4634 = vmatprep.mubr.f32.mxu1 %v11547_v60  ;;  %v11563_v60 = vld [vmem:[#allocation43_spill] sm:$0xff] }
 0x84c   :  { %7834 = vmatprep.subr.bf16.mxu1 %v11256_v58  ;;  %7977 = vmatpush1.bf16.msra.mxu0 %v7976_v5 }
 0x84d   :  { %7978 = vmatprep.subr.bf16.mxu0 %v8430_v12 }
 0x84f   :  { %7836 = vmatpush1.bf16.msra.mxu1 %v11257_v11 }
 0x850   :  { %7838 = vmatprep.subr.bf16.mxu1 %v11258_v7  ;;  %7980 = vmatpush1.bf16.msra.mxu0 %v7979_v2 }
 0x851   :  { %7981 = vmatprep.subr.bf16.mxu0 %v8430_v12 }
 0x853   :  { %7840 = vmatpush1.bf16.msra.mxu1 %v11259_v46 }
 0x854   :  { %7842 = vmatprep.subr.bf16.mxu1 %v11433_v1  ;;  %7983 = vmatpush1.bf16.msra.mxu0 %v7982_v43 }
 0x855   :  { %7984 = vmatprep.subr.bf16.mxu0 %v8430_v12 }
 0x857   :  { %7844 = vmatpush1.bf16.msra.mxu1 %v11434_v37 }
 0x858   :  { %7846 = vmatprep.subr.bf16.mxu1 %v11435_v51  ;;  %7986 = vmatpush1.bf16.msra.mxu0 %v7985_v19  ;;  %v11570_v19 = vld [vmem:[#allocation56_spill] sm:$0xff] }
 0x859   :  { %7987 = vmatprep.subr.bf16.mxu0 %v8430_v12 }
 0x85b   :  { %7848 = vmatpush1.bf16.msra.mxu1 %v11436_v9 }
 0x85c   :  { %7850 = vmatprep.subr.bf16.mxu1 %v11264_v24 }
 0x85f   :  { %7852 = vmatpush1.bf16.msra.mxu1 %v11361_v31 }
 0x860   :  { %7854 = vmatprep.subr.bf16.mxu1 %v11362_v30 }
 0x863   :  { %7856 = vmatpush1.bf16.msra.mxu1 %v11363_v20 }
 0x864   :  { %7858 = vmatprep.subr.bf16.mxu1 %v11364_v62 }
 0x867   :  { %7860 = vmatpush1.bf16.msra.mxu1 %v11365_v0 }
 0x868   :  { %7862 = vmatprep.subr.bf16.mxu1 %v11366_v3 }
 0x86b   :  { %7864 = vmatpush1.bf16.msra.mxu1 %v11271_v44 }
 0x86c   :  { %7866 = vmatprep.subr.bf16.mxu1 %v11367_v54 }
 0x86f   :  { %7868 = vmatpush1.bf16.msra.mxu1 %v11368_v15 }
 0x870   :  { %7870 = vmatprep.subr.bf16.mxu1 %v11369_v41 }
 0x873   :  { %7872 = vmatpush1.bf16.msra.mxu1 %v11279_v45 }
 0x874   :  { %7874 = vmatprep.subr.bf16.mxu1 %v9558_v16  ;;  %v11549_v16 = vld [vmem:[#allocation11_spill] sm:$0xff] }
 0x876   :  { %4638 = vmatmul.mubr.f32.vlgmr.msra.gmra.mrb[8].mxu1 %v11548_v33 }
 0x877   :  { %4646 = vmatprep.mubr.f32.mxu1 %v4002_v59  ;;  %7876 = vmatpush1.bf16.msra.mxu1 %v9565_v28  ;;  %v11551_v28 = vld [vmem:[#allocation86_spill] sm:$0xff]  ;;  %v11560_v59 = vld [vmem:[#allocation37_spill] sm:$0xff] }
 0x878   :  { %7878 = vmatprep.subr.bf16.mxu1 %v9572_v22  ;;  %v11552_v22 = vld [vmem:[#allocation12_spill] sm:$0xff] }
 0x87a   :  { %4650 = vmatmul.mubr.f32.gmra.mrb[10].mxu1 %v4008_v38  ;;  %v11559_v38 = vld [vmem:[#allocation26_spill] sm:$0xff] }
 0x87b   :  { %7880 = vmatpush1.bf16.msra.mxu1 %v9583_v42  ;;  %4865 = vmatprep.mubr.f32.mxu1 %v10262_v29  ;;  %v11555_v42 = vld [vmem:[#allocation15_spill] sm:$0xff] }
 0x87c   :  { %7882 = vmatprep.subr.bf16.mxu1 %v9590_v35  ;;  %v11556_v35 = vld [vmem:[#allocation16_spill] sm:$0xff] }
 0x87f   :  { %7884 = vmatpush1.bf16.msra.mxu1 %v9600_v8  ;;  %v11557_v8 = vld [vmem:[#allocation17_spill] sm:$0xff] }
 0x880   :  { %7886 = vmatprep.subr.bf16.mxu1 %v9607_v4  ;;  %v11558_v4 = vld [vmem:[#allocation18_spill] sm:$0xff] }
 0x883   :  { %7888 = vmatpush1.bf16.msra.mxu1 %v11549_v16 }
 0x884   :  { %7890 = vmatprep.subr.bf16.mxu1 %v11550_v17  ;;  %v11571_v17 = vld [vmem:[#allocation58_spill] sm:$0xff] }
 0x887   :  { %7892 = vmatpush1.bf16.msra.mxu1 %v11551_v28 }
 0x888   :  { %7894 = vmatprep.subr.bf16.mxu1 %v11552_v22 }
 0x88b   :  { %7896 = vmatpush1.bf16.msra.mxu1 %v11553_v14 }
 0x88c   :  { %7898 = vmatprep.subr.bf16.mxu1 %v11554_v47 }
 0x88f   :  { %7900 = vmatpush1.bf16.msra.mxu1 %v11499_v34 }
 0x890   :  { %7902 = vmatprep.subr.bf16.mxu1 %v11555_v42 }
 0x893   :  { %7904 = vmatpush1.bf16.msra.mxu1 %v11556_v35 }
 0x894   :  { %7906 = vmatprep.subr.bf16.mxu1 %v11557_v8 }
 0x897   :  { %7908 = vmatpush1.bf16.msra.mxu1 %v11558_v4 }
 0x898   :  { %7910 = vmatprep.subr.bf16.mxu1 %v11559_v38 }
 0x89b   :  { %7912 = vmatpush1.bf16.msra.mxu1 %v11560_v59  ;;  %v127_v59 = vld [vmem:[%s10756_s8] sm:$0xff] }
 0x89c   :  { %7914 = vmatprep.subr.bf16.mxu1 %v11561_v39  ;;  %v128_v39 = vld [vmem:[%s10756_s8 + $0x8] sm:$0xff] }
 0x89f   :  { %7916 = vmatpush1.bf16.msra.mxu1 %v11562_v53  ;;  %v5162_v53 = vand.u32 4294901760, %v127_v59 }
 0x8a0   :  { %7918 = vmatprep.subr.bf16.mxu1 %v11563_v60  ;;  %v5165_v60 = vand.u32 4294901760, %v128_v39 }
 0x8a3   :  { %7920 = vmatpush1.bf16.msra.mxu1 %v11564_v10  ;;  %v10543_v10 = vpack.c.bf16 %v5165_v60, %v5162_v53 }
 0x8a4   :  { %7922 = vmatprep.subr.bf16.mxu1 %v11248_v18  ;;  %v5061_v18 = vld [vmem:[%s10752_s4 + $0x78] sm:$0xff] }
 0x8a6   :  { %4867 = vmatmul.mubr.f32.vlgmr.msra.gmra.mrb[8].mxu1 %v10250_v52 }
 0x8a7   :  { %4873 = vmatprep.mubr.f32.mxu1 %v10278_v55  ;;  %7924 = vmatpush1.bf16.msra.mxu1 %v11251_v21  ;;  %v5065_v21 = vld [vmem:[%s10752_s4 + $0x98] sm:$0xff] }
 0x8a8   :  { %7926 = vmatprep.subr.bf16.mxu1 %v11252_v63  ;;  %v5063_v63 = vld [vmem:[%s10752_s4 + $0x88] sm:$0xff] }
 0x8aa   :  { %4875 = vmatmul.mubr.f32.gmra.mrb[10].mxu1 %v10272_v6 }
 0x8ab   :  { %7928 = vmatpush1.bf16.msra.mxu1 %v11254_v23  ;;  %4994 = vmatprep.mubr.f32.mxu1 %v10262_v29  ;;  %v5062_v23 = vld [vmem:[%s10752_s4 + $0x80] sm:$0xff]  ;;  %v11565_v29 = vld [vmem:[#allocation74_spill] sm:$0xff] }
 0x8ac   :  { %7930 = vmatprep.subr.bf16.mxu1 %v11256_v58 }
 0x8af   :  { %7932 = vmatpush1.bf16.msra.mxu1 %v11257_v11  ;;  %v5064_v11 = vld [vmem:[%s10752_s4 + $0x90] sm:$0xff] }
 0x8b0   :  { %7934 = vmatprep.subr.bf16.mxu1 %v11258_v7  ;;  %v7994_v7 = vpack.c.bf16 %v5063_v63, %v5062_v23  ;;  %v132_v23 = vld [vmem:[%s10756_s8 + $0x28] sm:$0xff] }
 0x8b3   :  { %7936 = vmatpush1.bf16.msra.mxu1 %v11259_v46  ;;  %v5059_v46 = vld [vmem:[%s10752_s4 + $0x68] sm:$0xff] }
 0x8b4   :  { %7938 = vmatprep.subr.bf16.mxu1 %v11433_v1 }
 0x8b7   :  { %7940 = vmatpush1.bf16.msra.mxu1 %v11434_v37 }
 0x8b8   :  { %7942 = vmatprep.subr.bf16.mxu1 %v11435_v51 }
 0x8bb   :  { %7944 = vmatpush1.bf16.msra.mxu1 %v11436_v9 }
 0x8bc   :  { %7946 = vmatprep.subr.bf16.mxu1 %v11264_v24  ;;  %v5058_v24 = vld [vmem:[%s10752_s4 + $0x60] sm:$0xff] }
 0x8bf   :  { %7948 = vmatpush1.bf16.msra.mxu1 %v11361_v31  ;;  %v7997_v31 = vpack.c.bf16 %v5065_v21, %v5064_v11  ;;  %v5256_v21 = vsub.f32 %v127_v59, %v5162_v53  ;;  %v10614_v59 = vld [vmem:[%s10754_s6] sm:$0x7]  ;;  %s8431_s6 = smov 96  }
 0x8c0   :  { %7950 = vmatprep.subr.bf16.mxu1 %v11362_v30  ;;  %v5066_v30 = vld [vmem:[%s10752_s4 + $0xa0] sm:$0xff] }
 0x8c3   :  { %7952 = vmatpush1.bf16.msra.mxu1 %v11363_v20  ;;  %v5067_v20 = vld [vmem:[%s10752_s4 + $0xa8] sm:$0xff] }
 0x8c4   :  { %7954 = vmatprep.subr.bf16.mxu1 %v11364_v62  ;;  %v8000_v62 = vpack.c.bf16 %v5067_v20, %v5066_v30  ;;  %v133_v30 = vld [vmem:[%s10756_s8 + $0x30] sm:$0xff]  ;;  %v134_v20 = vld [vmem:[%s10756_s8 + $0x38] sm:$0xff] }
 0x8c7   :  { %7956 = vmatpush1.bf16.msra.mxu1 %v11365_v0  ;;  %v5068_v0 = vld [vmem:[%s10752_s4 + $0xb0] sm:$0xff] }
 0x8c8   :  { %7958 = vmatprep.subr.bf16.mxu1 %v11366_v3  ;;  %v5069_v3 = vld [vmem:[%s10752_s4 + $0xb8] sm:$0xff] }
 0x8cb   :  { %7960 = vmatpush1.bf16.msra.mxu1 %v11271_v44  ;;  %v7988_v44 = vpack.c.bf16 %v5059_v46, %v5058_v24  ;;  %v129_v24 = vld [vmem:[%s10756_s8 + $0x10] sm:$0xff]  ;;  %v130_v46 = vld [vmem:[%s10756_s8 + $0x18] sm:$0xff] }
 0x8cc   :  { %7962 = vmatprep.subr.bf16.mxu1 %v11367_v54  ;;  %v8003_v54 = vpack.c.bf16 %v5069_v3, %v5068_v0  ;;  %v5183_v0 = vand.u32 4294901760, %v134_v20  ;;  %v5257_v3 = vand.u32 4294901760, %v5256_v21 }
 0x8cd   :  { %7989 = vmatpush1.bf16.msra.mxu0 %v7988_v44  ;;  %v5168_v44 = vand.u32 4294901760, %v129_v24 }
 0x8ce   :  { %7990 = vmatprep.subr.bf16.mxu0 %v8430_v12 }
 0x8cf   :  { %7964 = vmatpush1.bf16.msra.mxu1 %v11368_v15 }
 0x8d0   :  { %7966 = vmatprep.subr.bf16.mxu1 %v11369_v41 }
 0x8d3   :  { %7968 = vmatpush1.bf16.msra.mxu1 %v11279_v45  ;;  %v5060_v45 = vld [vmem:[%s10752_s4 + $0x70] sm:$0xff]  ;;  %s6384_s4 = sshll.u32 %s8432_s10, 4  ;;  %s6385_s4 = int_to_ptr.vmem [resolvable:$true] %s6384_s4 }
 0x8d4   :  { %v7991_v58 = vpack.c.bf16 %v5061_v18, %v5060_v45  ;;  %8006 = vmatprep.subr.bf16.mxu1 %v10543_v10  ;;  %v5171_v45 = vand.u32 4294901760, %v130_v46  ;;  %s8396_s13 = scalar_lea.vmem %s6385_s4, 256  ;;  %p8401_p3 = scmp.lt.s32.totalorder %s6385_s4, %s6385_s4 }
 0x8d5   :  { %p8397_p2 = scmp.ne.s32.totalorder %s6385_s4, %s8396_s13  ;;  %p8402_p4 = scmp.lt.s32.totalorder %s8396_s13, %s8396_s13 }
 0x8d6   :  { %4996 = vmatmul.mubr.f32.vlgmr.msra.gmra.mrb[8].mxu1 %v10250_v52  ;;  %7992 = vmatpush1.bf16.msra.mxu0 %v7991_v58  ;;  %v10555_v18 = vpack.c.bf16 %v5171_v45, %v5168_v44  ;;  %v131_v58 = vld [vmem:[%s10756_s8 + $0x20] sm:$0xff] }
 0x8d7   :  { %5002 = vmatprep.mubr.f32.mxu1 %v10278_v55  ;;  %7993 = vmatprep.subr.bf16.mxu0 %v8430_v12  ;;  %v5032_v55 = vsub.s32 5, %v11565_v29  ;;  %v5174_v63 = vand.u32 4294901760, %v131_v58  ;;  %p8403_p5 = por %p8402_p4, %p8401_p3 }
 0x8d8   :  { %8008 = vmatpush3.bf16.msra.mxu1 %v10543_v10 }
 0x8d9   :  { %v5033_v5 = vrot.slane %v11566_v50, %v5032_v55  ;;  %v5037_v2 = vrot.slane %v11567_v13, %v5032_v55  ;;  %8010 = vmatprep.subr.bf16.mxu1 %v10555_v18  ;;  %p8404_p6 = pnand %p8403_p5, %p8397_p2 }
 0x8da   :  { %5004 = vmatmul.mubr.f32.gmra.mrb[10].mxu1 %v10272_v6  ;;  %7995 = vmatpush1.bf16.msra.mxu0 %v7994_v7  ;;  %v5020_v6 = vsub.s32 4, %v11565_v29  ;;  %v5177_v7 = vand.u32 4294901760, %v132_v23 }
 0x8db   :  { %7996 = vmatprep.subr.bf16.mxu0 %v8430_v12 }
 0x8dc   :  { %v5021_v25 = vrot.slane %v11566_v50, %v5020_v6  ;;  %v5025_v56 = vrot.slane %v11567_v13, %v5020_v6  ;;  %8012 = vmatpush3.bf16.msra.mxu1 %v10555_v18  ;;  %v10567_v11 = vpack.c.bf16 %v5177_v7, %v5174_v63 }
 0x8de   :  { %7998 = vmatpush1.bf16.msra.mxu0 %v7997_v31  ;;  %v5263_v31 = vsub.f32 %v128_v39, %v5165_v60  ;;  %8014 = vmatprep.subr.bf16.mxu1 %v10567_v11  ;;  %v11572_v39 = vld [vmem:[#allocation75_spill] sm:$0xff] }
 0x8df   :  { %7999 = vmatprep.subr.bf16.mxu0 %v8430_v12  ;;  %v5073_v53 = vrot.slane %v10614_v59, %v11572_v39 }
 0x8e0   :  { %8016 = vmatpush3.bf16.msra.mxu1 %v10567_v11 }
 0x8e2   :  { %8001 = vmatpush1.bf16.msra.mxu0 %v8000_v62  ;;  %v5180_v62 = vand.u32 4294901760, %v133_v30 }
 0x8e3   :  { %8002 = vmatprep.subr.bf16.mxu0 %v8430_v12 }
 0x8e6   :  { %8004 = vmatpush1.bf16.msra.mxu0 %v8003_v54  ;;  %v5264_v54 = vand.u32 4294901760, %v5263_v31 }
 0x8e7   :  { %8102 = vmatprep.subr.bf16.mxu0 %v10543_v10 }
 0x9a9   :  { %v4997_v15 = vpop.f32.mrb[8].mxu1 }
 0x9aa   :  { %v8201_v41 = vadd.f32 1e-05, %v4997_v15  ;;  %v4999_v1 = vpop.f32.mrb[9].mxu1  ;;  %v10579_v15 = vpack.c.bf16 %v5183_v0, %v5180_v62 }
 0x9ab   :  { %v8202_v37 = vadd.f32 1e-05, %v4999_v1  ;;  %v5265_v1 = vsub.f32 %v5263_v31, %v5264_v54 }
 0x9ac   :  { %8326 = vrsqrt.f32 %v8201_v41  ;;  %v5258_v41 = vsub.f32 %v5256_v21, %v5257_v3  ;;  %8018 = vmatprep.subr.bf16.mxu1 %v10579_v15 }
 0x9ad   :  { %8328 = vrsqrt.f32 %v8202_v37  ;;  %v5005_v51 = vpop.f32.mrb[10].mxu1  ;;  %v5270_v37 = vsub.f32 %v129_v24, %v5168_v44  ;;  %8020 = vmatpush3.bf16.msra.mxu1 %v10579_v15 }
 0x9ae   :  { %v8203_v9 = vadd.f32 1e-05, %v5005_v51  ;;  %v5007_v34 = vpop.f32.mrb[11].mxu1  ;;  %v5277_v51 = vsub.f32 %v130_v46, %v5171_v45 }
 0x9af   :  { %v8204_v52 = vadd.f32 1e-05, %v5007_v34  ;;  %v5266_v34 = vand.u32 4294901760, %v5265_v1 }
 0x9b0   :  { %8330 = vrsqrt.f32 %v8203_v9  ;;  %v5259_v9 = vand.u32 4294901760, %v5258_v41  ;;  %v5278_v29 = vand.u32 4294901760, %v5277_v51 }
 0x9b1   :  { %8332 = vrsqrt.f32 %v8204_v52  ;;  %v5271_v52 = vand.u32 4294901760, %v5270_v37 }
 0x9b2   :  { %v10585_v6 = vpack.c.bf16 %v5266_v34, %v5259_v9  ;;  %v5279_v50 = vsub.f32 %v5277_v51, %v5278_v29 }
 0x9b3   :  { %v5272_v55 = vsub.f32 %v5270_v37, %v5271_v52 }
 0x9b4   :  { %8022 = vmatprep.subr.bf16.mxu1 %v10585_v6 }
 0x9b5   :  { %v5273_v13 = vand.u32 4294901760, %v5272_v55 }
 0x9b6   :  { %v8327_v12 = vpop.eup %8326 }
 0x9b7   :  { %v8329_v61 = vpop.eup %8328  ;;  %v5014_v27 = vmul.f32 %v8327_v12, %v11568_v36  ;;  %v5291_v12 = vsub.f32 %v132_v23, %v5177_v7 }
 0x9b8   :  { %v5015_v40 = vmul.f32 %v8329_v61, %v11569_v32 }
 0x9b9   :  { %v5026_v26 = vmul.f32 %v5021_v25, %v5014_v27  ;;  %v5292_v36 = vand.u32 4294901760, %v5291_v12 }
 0x9ba   :  { %v8331_v49 = vpop.eup %8330  ;;  %v5027_v43 = vmul.f32 %v5025_v56, %v5015_v40  ;;  %v5298_v40 = vsub.f32 %v133_v30, %v5180_v62 }
 0x9bb   :  { %v8333_v57 = vpop.eup %8332  ;;  %v5038_v48 = vadd.f32 %v5033_v5, %v5026_v26  ;;  %v5016_v33 = vmul.f32 %v8331_v49, %v11570_v19  ;;  %v5293_v32 = vsub.f32 %v5291_v12, %v5292_v36 }
 0x9bc   :  { %v5039_v16 = vadd.f32 %v5037_v2, %v5027_v43  ;;  %v5017_v28 = vmul.f32 %v8333_v57, %v11571_v17  ;;  %v5299_v43 = vand.u32 4294901760, %v5298_v40 }
 0x9bd   :  { %v5028_v22 = vmul.f32 %v5021_v25, %v5016_v33  ;;  %v5042_v42 = vmax.f32 %v5038_v48, 0.0  ;;  %v5284_v25 = vsub.f32 %v131_v58, %v5174_v63  ;;  %v5294_v49 = vand.u32 4294901760, %v5293_v32 }
 0x9be   :  { %v5043_v14 = vmax.f32 %v5039_v16, 0.0  ;;  %v5029_v47 = vmul.f32 %v5025_v56, %v5017_v28  ;;  %v5280_v56 = vand.u32 4294901760, %v5279_v50  ;;  %v5300_v19 = vsub.f32 %v5298_v40, %v5299_v43 }
 0x9bf   :  { %v5040_v35 = vadd.f32 %v5033_v5, %v5028_v22  ;;  %v5285_v61 = vand.u32 4294901760, %v5284_v25  ;;  %v10595_v22 = vpack.c.bf16 %v5263_v31, %v5256_v21 }
 0x9c0   :  { %6401 = vmatprep.mubr.msk.f32.mxu0 %vm159_vm1, %v5043_v14  ;;  %v5041_v8 = vadd.f32 %v5037_v2, %v5029_v47  ;;  %v10589_v27 = vpack.c.bf16 %v5280_v56, %v5273_v13  ;;  %v5305_v2 = vsub.f32 %v134_v20, %v5183_v0  ;;  %v5301_v16 = vand.u32 4294901760, %v5300_v19 }
 0x9c1   :  { %5145 = vmatmul.mubr.f32.vlgmr.msra.gmra.mrb[12].mxu0 %v5042_v42  ;;  %v5044_v38 = vmax.f32 %v5040_v35, 0.0  ;;  %v5286_v5 = vsub.f32 %v5284_v25, %v5285_v61  ;;  %v10597_v14 = vpack.c.bf16 %v5277_v51, %v5270_v37  ;;  %v10599_v47 = vpack.c.bf16 %v5291_v12, %v5284_v25 }
 0x9c2   :  { %v5045_v4 = vmax.f32 %v5041_v8, 0.0  ;;  %8104 = vmatpush3.bf16.msra.mxu0 %v10543_v10  ;;  %v5306_v57 = vand.u32 4294901760, %v5305_v2  ;;  %v10601_v42 = vpack.c.bf16 %v5305_v2, %v5298_v40  ;;  %v10603_v35 = vpack.c.bf16 %v5264_v54, %v5257_v3 }
 0x9c3   :  { %8106 = vmatprep.subr.bf16.mxu0 %v10555_v18  ;;  %v5287_v26 = vand.u32 4294901760, %v5286_v5  ;;  %v10605_v8 = vpack.c.bf16 %v5278_v29, %v5271_v52 }
 0x9c4   :  { %6402 = vmatprep.mubr.msk.f32.mxu0 %vm159_vm1, %v5045_v4  ;;  %v5307_v33 = vsub.f32 %v5305_v2, %v5306_v57  ;;  %v10607_v4 = vpack.c.bf16 %v5292_v36, %v5285_v61 }
 0x9c5   :  { %5150 = vmatmul.mubr.f32.gmra.mrb[14].mxu0 %v5044_v38  ;;  %v10591_v48 = vpack.c.bf16 %v5294_v49, %v5287_v26  ;;  %v10609_v38 = vpack.c.bf16 %v5306_v57, %v5299_v43  ;;  %v11573_v49 = vld [vmem:[#allocation49_spill] sm:$0xff] }
 0x9c6   :  { %8108 = vmatpush3.bf16.msra.mxu0 %v10555_v18  ;;  %v5308_v17 = vand.u32 4294901760, %v5307_v33  ;;  %v6338_v43 = vrot.slane %v10614_v59, %v11573_v49 }
 0x9c7   :  { %8110 = vmatprep.subr.bf16.mxu0 %v10567_v11 }
 0x9c8   :  { %v10593_v28 = vpack.c.bf16 %v5308_v17, %v5301_v16 }
 0x9ca   :  { %8112 = vmatpush3.bf16.msra.mxu0 %v10567_v11 }
 0x9cb   :  { %8114 = vmatprep.subr.bf16.mxu0 %v10579_v15 }
 0x9ce   :  { %8116 = vmatpush3.bf16.msra.mxu0 %v10579_v15 }
 0x9cf   :  { %8118 = vmatprep.subr.bf16.mxu0 %v10585_v6 }
 0xa94   :  { %v5146_v60 = vpop.f32.mrb[12].mxu0 }
 0xa95   :  { %v10618_v24 = vadd.f32 %v5146_v60, %v5073_v53  ;;  %v5148_v46 = vpop.f32.mrb[13].mxu0  ;;  %v8348_v60 = vld [vmem:[%s10749_s1] sm:$0xff] }
 0xa97   :  { %v5156_v44 = vsel %vm159_vm1, %v10618_v24, 0 }
 0xa98   :  { %v5234_v45 = vand.u32 4294901760, %v5156_v44  ;;  %v5151_v58 = vpop.f32.mrb[14].mxu0 }
 0xa99   :  { %v10622_v23 = vadd.f32 %v5151_v58, %v5073_v53  ;;  %v5153_v63 = vpop.f32.mrb[15].mxu0  ;;  %v8351_v58 = vld [vmem:[%s10748_s0 + $0x8] sm:$0xff] }
 0xa9a   :  { %v5235_v7 = vsub.f32 %v5156_v44, %v5234_v45 }
 0xa9b   :  { %v5159_v21 = vsel %vm159_vm1, %v10622_v23, 0 }
 0xa9c   :  { %v5244_v31 = vand.u32 4294901760, %v5159_v21  ;;  %v5236_v30 = vand.u32 4294901760, %v5235_v7 }
 0xa9e   :  { %v5245_v20 = vsub.f32 %v5159_v21, %v5244_v31  ;;  %v5237_v62 = vsub.f32 %v5235_v7, %v5236_v30 }
 0xaa0   :  { %v5246_v0 = vand.u32 4294901760, %v5245_v20  ;;  %v5238_v3 = vand.u32 4294901760, %v5237_v62 }
 0xaa2   :  { %v5247_v54 = vsub.f32 %v5245_v20, %v5246_v0  ;;  %6541 = vmatprep.mubr.f32.mxu1 %v5238_v3 }
 0xaa4   :  { %v5248_v41 = vand.u32 4294901760, %v5247_v54 }
 0xaa6   :  { %6542 = vmatmul.mubr.f32.vlgmr.msra.gmra.mrb[12].mxu1 %v5248_v41 }
 0xaa7   :  { %8024 = vmatpush3.bf16.msra.mxu1 %v10585_v6  ;;  %6560 = vmatprep.mubr.f32.mxu1 %v5234_v45 }
 0xaa8   :  { %8026 = vmatprep.subr.bf16.mxu1 %v10589_v27 }
 0xaab   :  { %8028 = vmatpush3.bf16.msra.mxu1 %v10589_v27 }
 0xaac   :  { %8030 = vmatprep.subr.bf16.mxu1 %v10591_v48 }
 0xaaf   :  { %8032 = vmatpush3.bf16.msra.mxu1 %v10591_v48 }
 0xab0   :  { %8034 = vmatprep.subr.bf16.mxu1 %v10593_v28 }
 0xab3   :  { %8036 = vmatpush3.bf16.msra.mxu1 %v10593_v28 }
 0xab4   :  { %8038 = vmatprep.subr.bf16.mxu1 %v10595_v22 }
 0xab6   :  { %6561 = vmatmul.mubr.f32.vlgmr.msra.gmra.mrb[12].mxu1 %v5244_v31 }
 0xab7   :  { %8040 = vmatpush3.bf16.msra.mxu1 %v10595_v22  ;;  %6579 = vmatprep.mubr.f32.mxu1 %v5235_v7 }
 0xab8   :  { %8042 = vmatprep.subr.bf16.mxu1 %v10597_v14 }
 0xabb   :  { %8044 = vmatpush3.bf16.msra.mxu1 %v10597_v14 }
 0xabc   :  { %8046 = vmatprep.subr.bf16.mxu1 %v10599_v47 }
 0xabf   :  { %8048 = vmatpush3.bf16.msra.mxu1 %v10599_v47 }
 0xac0   :  { %8050 = vmatprep.subr.bf16.mxu1 %v10601_v42 }
 0xac3   :  { %8052 = vmatpush3.bf16.msra.mxu1 %v10601_v42 }
 0xac4   :  { %8054 = vmatprep.subr.bf16.mxu1 %v10543_v10 }
 0xac6   :  { %6580 = vmatmul.mubr.f32.vlgmr.msra.gmra.mrb[12].mxu1 %v5245_v20 }
 0xac7   :  { %8056 = vmatpush3.bf16.msra.mxu1 %v10543_v10  ;;  %6598 = vmatprep.mubr.f32.mxu1 %v5236_v30 }
 0xac8   :  { %8058 = vmatprep.subr.bf16.mxu1 %v10555_v18 }
 0xacb   :  { %8060 = vmatpush3.bf16.msra.mxu1 %v10555_v18 }
 0xacc   :  { %8062 = vmatprep.subr.bf16.mxu1 %v10567_v11 }
 0xacf   :  { %8064 = vmatpush3.bf16.msra.mxu1 %v10567_v11 }
 0xad0   :  { %8066 = vmatprep.subr.bf16.mxu1 %v10579_v15 }
 0xad3   :  { %8068 = vmatpush3.bf16.msra.mxu1 %v10579_v15 }
 0xad4   :  { %8070 = vmatprep.subr.bf16.mxu1 %v10603_v35 }
 0xad6   :  { %6599 = vmatmul.mubr.f32.vlgmr.msra.gmra.mrb[12].mxu1 %v5246_v0 }
 0xad7   :  { %8072 = vmatpush3.bf16.msra.mxu1 %v10603_v35  ;;  %6617 = vmatprep.mubr.f32.mxu1 %v5234_v45 }
 0xad8   :  { %8074 = vmatprep.subr.bf16.mxu1 %v10605_v8 }
 0xadb   :  { %8076 = vmatpush3.bf16.msra.mxu1 %v10605_v8 }
 0xadc   :  { %8078 = vmatprep.subr.bf16.mxu1 %v10607_v4 }
 0xadf   :  { %8080 = vmatpush3.bf16.msra.mxu1 %v10607_v4 }
 0xae0   :  { %8082 = vmatprep.subr.bf16.mxu1 %v10609_v38 }
 0xae3   :  { %8084 = vmatpush3.bf16.msra.mxu1 %v10609_v38 }
 0xae4   :  { %8086 = vmatprep.subr.bf16.mxu1 %v10543_v10 }
 0xae6   :  { %6618 = vmatmul.mubr.f32.vlgmr.msra.gmra.mrb[12].mxu1 %v5244_v31 }
 0xae7   :  { %8088 = vmatpush3.bf16.msra.mxu1 %v10543_v10  ;;  %6636 = vmatprep.mubr.f32.mxu1 %v5234_v45  ;;  %v8350_v45 = vld [vmem:[%s10749_s1 + $0x8] sm:$0xff] }
 0xae8   :  { %8090 = vmatprep.subr.bf16.mxu1 %v10555_v18 }
 0xaeb   :  { %8092 = vmatpush3.bf16.msra.mxu1 %v10555_v18 }
 0xaec   :  { %8094 = vmatprep.subr.bf16.mxu1 %v10567_v11 }
 0xaef   :  { %8096 = vmatpush3.bf16.msra.mxu1 %v10567_v11 }
 0xaf0   :  { %8098 = vmatprep.subr.bf16.mxu1 %v10579_v15 }
 0xaf3   :  { %8100 = vmatpush3.bf16.msra.mxu1 %v10579_v15 }
 0xaf6   :  { %6637 = vmatmul.mubr.f32.vlgmr.msra.gmra.mrb[12].mxu1 %v5244_v31 }
 0xbc9   :  { %v6638_v1 = vpop.f32.mrb[12].mxu1 }
 0xbca   :  { %v10666_v37 = vsub.f32 %v10622_v23, %v6638_v1  ;;  %v5731_v51 = vpop.f32.mrb[13].mxu1  ;;  %v6372_v23 = vsub.f32 %v8351_v58, %v8350_v45 }
 0xbcb   :  { %v10669_v9 = vsub.f32 %v10618_v24, %v5731_v51  ;;  %v8349_v24 = vld [vmem:[%s10748_s0] sm:$0xff] }
 0xbcc   :  { %v5744_v34 = vmul.f32 %v10666_v37, %v10666_v37  ;;  %v6371_v46 = vsub.f32 %v8349_v24, %v8348_v60 }
 0xbcd   :  { %v5743_v52 = vmul.f32 %v10669_v9, %v10669_v9 }
 0xbce   :  { %v5749_v29 = vsel %vm159_vm1, %v5744_v34, 0 }
 0xbcf   :  { %v5834_v55 = vand.u32 4294901760, %v5749_v29  ;;  %v5746_v50 = vsel %vm159_vm1, %v5743_v52, 0 }
 0xbd0   :  { %v5824_v25 = vand.u32 4294901760, %v5746_v50 }
 0xbd1   :  { %v5835_v12 = vsub.f32 %v5749_v29, %v5834_v55 }
 0xbd2   :  { %v5825_v13 = vsub.f32 %v5746_v50, %v5824_v25 }
 0xbd3   :  { %v5836_v56 = vand.u32 4294901760, %v5835_v12 }
 0xbd4   :  { %v5826_v61 = vand.u32 4294901760, %v5825_v13 }
 0xbd5   :  { %v5837_v36 = vsub.f32 %v5835_v12, %v5836_v56 }
 0xbd6   :  { %v5827_v5 = vsub.f32 %v5825_v13, %v5826_v61 }
 0xbd7   :  { %v5838_v40 = vand.u32 4294901760, %v5837_v36 }
 0xbd8   :  { %v5828_v32 = vand.u32 4294901760, %v5827_v5 }
 0xbda   :  { %6655 = vmatprep.mubr.f32.mxu0 %v5828_v32 }
 0xbdb   :  { %6656 = vmatmul.mubr.f32.vlgmr.msra.gmra.mrb[16].mxu0 %v5838_v40 }
 0xbdc   :  { %8120 = vmatpush3.bf16.msra.mxu0 %v10585_v6  ;;  %6674 = vmatprep.mubr.f32.mxu0 %v5824_v25 }
 0xbdd   :  { %8122 = vmatprep.subr.bf16.mxu0 %v10589_v27 }
 0xbe0   :  { %8124 = vmatpush3.bf16.msra.mxu0 %v10589_v27 }
 0xbe1   :  { %8126 = vmatprep.subr.bf16.mxu0 %v10591_v48 }
 0xbe4   :  { %8128 = vmatpush3.bf16.msra.mxu0 %v10591_v48  ;;  %v11574_v48 = vld [vmem:[#allocation50_spill] sm:$0xff] }
 0xbe5   :  { %8130 = vmatprep.subr.bf16.mxu0 %v10593_v28  ;;  %v6344_v19 = vrot.slane %v10614_v59, %v11574_v48 }
 0xbe8   :  { %8132 = vmatpush3.bf16.msra.mxu0 %v10593_v28 }
 0xbe9   :  { %8134 = vmatprep.subr.bf16.mxu0 %v10595_v22 }
 0xbeb   :  { %6675 = vmatmul.mubr.f32.vlgmr.msra.gmra.mrb[16].mxu0 %v5834_v55 }
 0xbec   :  { %8136 = vmatpush3.bf16.msra.mxu0 %v10595_v22  ;;  %6693 = vmatprep.mubr.f32.mxu0 %v5825_v13 }
 0xbed   :  { %8138 = vmatprep.subr.bf16.mxu0 %v10597_v14 }
 0xbf0   :  { %8140 = vmatpush3.bf16.msra.mxu0 %v10597_v14 }
 0xbf1   :  { %8142 = vmatprep.subr.bf16.mxu0 %v10599_v47 }
 0xbf4   :  { %8144 = vmatpush3.bf16.msra.mxu0 %v10599_v47 }
 0xbf5   :  { %8146 = vmatprep.subr.bf16.mxu0 %v10601_v42 }
 0xbf8   :  { %8148 = vmatpush3.bf16.msra.mxu0 %v10601_v42 }
 0xbf9   :  { %8150 = vmatprep.subr.bf16.mxu0 %v10543_v10 }
 0xbfb   :  { %6694 = vmatmul.mubr.f32.vlgmr.msra.gmra.mrb[16].mxu0 %v5835_v12 }
 0xbfc   :  { %8152 = vmatpush3.bf16.msra.mxu0 %v10543_v10  ;;  %6712 = vmatprep.mubr.f32.mxu0 %v5826_v61 }
 0xbfd   :  { %8154 = vmatprep.subr.bf16.mxu0 %v10555_v18 }
 0xc00   :  { %8156 = vmatpush3.bf16.msra.mxu0 %v10555_v18 }
 0xc01   :  { %8158 = vmatprep.subr.bf16.mxu0 %v10567_v11 }
 0xc04   :  { %8160 = vmatpush3.bf16.msra.mxu0 %v10567_v11 }
 0xc05   :  { %8162 = vmatprep.subr.bf16.mxu0 %v10579_v15 }
 0xc08   :  { %8164 = vmatpush3.bf16.msra.mxu0 %v10579_v15 }
 0xc09   :  { %8166 = vmatprep.subr.bf16.mxu0 %v10603_v35 }
 0xc0b   :  { %6713 = vmatmul.mubr.f32.vlgmr.msra.gmra.mrb[16].mxu0 %v5836_v56 }
 0xc0c   :  { %8168 = vmatpush3.bf16.msra.mxu0 %v10603_v35  ;;  %6731 = vmatprep.mubr.f32.mxu0 %v5824_v25 }
 0xc0d   :  { %8170 = vmatprep.subr.bf16.mxu0 %v10605_v8 }
 0xc10   :  { %8172 = vmatpush3.bf16.msra.mxu0 %v10605_v8 }
 0xc11   :  { %8174 = vmatprep.subr.bf16.mxu0 %v10607_v4 }
 0xc14   :  { %8176 = vmatpush3.bf16.msra.mxu0 %v10607_v4 }
 0xc15   :  { %8178 = vmatprep.subr.bf16.mxu0 %v10609_v38 }
 0xc18   :  { %8180 = vmatpush3.bf16.msra.mxu0 %v10609_v38 }
 0xc19   :  { %8182 = vmatprep.subr.bf16.mxu0 %v10543_v10 }
 0xc1b   :  { %6732 = vmatmul.mubr.f32.vlgmr.msra.gmra.mrb[16].mxu0 %v5834_v55 }
 0xc1c   :  { %8184 = vmatpush3.bf16.msra.mxu0 %v10543_v10  ;;  %6750 = vmatprep.mubr.f32.mxu0 %v5824_v25 }
 0xc1d   :  { %8186 = vmatprep.subr.bf16.mxu0 %v10555_v18 }
 0xc20   :  { %8188 = vmatpush3.bf16.msra.mxu0 %v10555_v18 }
 0xc21   :  { %8190 = vmatprep.subr.bf16.mxu0 %v10567_v11 }
 0xc24   :  { %8192 = vmatpush3.bf16.msra.mxu0 %v10567_v11 }
 0xc25   :  { %8194 = vmatprep.subr.bf16.mxu0 %v10579_v15 }
 0xc28   :  { %8196 = vmatpush3.bf16.msra.mxu0 %v10579_v15 }
 0xc2b   :  { %6751 = vmatmul.mubr.f32.vlgmr.msra.gmra.mrb[16].mxu0 %v5834_v55 }
 0xcfe   :  { %v6752_v6 = vpop.f32.mrb[16].mxu0 }
 0xcff   :  { %v8205_v27 = vadd.f32 1e-05, %v6752_v6  ;;  %v6321_v2 = vpop.f32.mrb[17].mxu0 }
 0xd00   :  { %v8206_v26 = vadd.f32 1e-05, %v6321_v2 }
 0xd01   :  { %8334 = vrsqrt.f32 %v8205_v27 }
 0xd02   :  { %8336 = vrsqrt.f32 %v8206_v26 }
 0xd0b   :  { %v8335_v10 = vpop.eup %8334 }
 0xd0c   :  { %v8337_v18 = vpop.eup %8336  ;;  %v6334_v57 = vmul.f32 %v8335_v10, %v10666_v37 }
 0xd0d   :  { %v6333_v11 = vmul.f32 %v8337_v18, %v10669_v9 }
 0xd0e   :  { %v6340_v33 = vmul.f32 %v6338_v43, %v6334_v57 }
 0xd0f   :  { %v6339_v15 = vmul.f32 %v6338_v43, %v6333_v11 }
 0xd10   :  { %v6346_v28 = vadd.f32 %v6344_v19, %v6340_v33 }
 0xd11   :  { %v6345_v16 = vadd.f32 %v6344_v19, %v6339_v15 }
 0xd12   :  { %v6348_v22 = vmax.f32 %v6346_v28, 0.0 }
 0xd13   :  { %v6347_v17 = vmax.f32 %v6345_v16, 0.0 }
 0xd15   :  { %6351 = vrot.lane.b32.xlu1 %v6347_v17, %s8431_s6 }
 0xd19   :  { %6353 = vrot.lane.b32.xlu1 %v6348_v22, %s8431_s6 }
 0xd87   :  { %v6352_v14 = vpop.permute.xlu1 %6351 }
 0xd88   :  { %v6357_v47 = vadd.f32 %v6352_v14, %v6347_v17 }
 0xd8a   :  { %v6403_v42 = vmul.f32 -1.442695, %v6357_v47 }
 0xd8b   :  { %v6354_v35 = vpop.permute.xlu1 %6353 }
 0xd8c   :  { %8338 = vpow2.f32 %v6403_v42  ;;  %v6358_v8 = vadd.f32 %v6354_v35, %v6348_v22 }
 0xd8e   :  { %v6404_v4 = vmul.f32 -1.442695, %v6358_v8 }
 0xd90   :  { %8340 = vpow2.f32 %v6404_v4 }
 0xd96   :  { %v8339_v38 = vpop.eup %8338 }
 0xd97   :  { %v6365_v39 = vadd.f32 1.0, %v8339_v38 }
 0xd99   :  { %8342 = vrcp.f32 %v6365_v39 }
 0xd9a   :  { %v8341_v59 = vpop.eup %8340 }
 0xd9b   :  { %v6366_v53 = vadd.f32 1.0, %v8341_v59 }
 0xd9d   :  { %8344 = vrcp.f32 %v6366_v53 }
 0xda3   :  { %v8343_v44 = vpop.eup %8342 }
 0xda4   :  { %v6373_v63 = vmul.f32 %v8343_v44, %v6371_v46 }
 0xda6   :  { %v6375_v7 = vadd.f32 %v8348_v60, %v6373_v63 }
 0xda7   :  { %v8345_v21 = vpop.eup %8344 }
 0xda8   :  { %v6374_v31 = vmul.f32 %v8345_v21, %v6372_v23  ;;  %6377 = vst.msk [vmem:[#allocation7] sm:$0xff] %vm73_vm0, %v6375_v7 }
 0xdaa   :  { %v6376_v30 = vadd.f32 %v8350_v45, %v6374_v31 }
 0xdac   :  { %6378 = vst.msk [vmem:[#allocation7 + $0x8] sm:$0xff] %vm73_vm0, %v6376_v30 }
 0xdad   :  { %8407 = shalt.err (!%p8404_p6)
}
 0xdae   :  { %s8408_s14 = scalar_lea.hbm %s10757_s9, 256 }
 0xdaf   :  { %p8409_p7 = scmp.ne.s32.totalorder %s10757_s9, %s8408_s14  ;;  %p8412_p8 = scmp.lt.u32.totalorder %s8408_s14, %s10757_s9 }
 0xdb1   :  { %p8414_p9 = pnand %p8412_p8, %p8409_p7 }
 0xdb3   :  { %8417 = shalt.err (!%p8414_p9)
}
 0xdb4   :  { %s8433_s21 = smov 128   ;;  %s8434_s7 = smov 8  }
 0xdb5   :  { %6390 = dma.vmem_to_hbm [thread:$0]  %s6385_s4, 256, %s10757_s9, [#allocation4], %s8433_s21, %s8433_s21, %s8434_s7  }
 0xdb6   :  { %8422 = dma.done.wait [#allocation4], 256  }
 0xdb7   :  { %8423 = vsyncadd [#allocation4], 4294967040 }
 0xdb8   :  { %6394 = vsyncpa [#allocation3], 1 }
 0xdb9   :  { %6395 = vsyncpa [#allocation6], 1 }
 0xdba   :  { %6396 = vsyncpa [#allocation4], 1 }

</bundles_post_ra>
